<compile_context>
chip_gen: v6e
topology: v6e:2x2x1
jax: 0.10.0
libtpu: 0.0.40
codegen_flags: <defaults>
</compile_context>

<pallas_src>
import math
import numpy as np
import jax
import jax.numpy as jnp
from jax import lax
from jax.experimental import pallas as pl
from jax.experimental.pallas import tpu as pltpu

# ---- model config (small, consistent with AdapiveSS2D defaults) ----
D_MODEL = 16
EXPAND = 2
D_INNER = EXPAND * D_MODEL          # 32
D_CONV = 3
LORA_RANK = 4
LN_EPS = 1e-5

B, H, W = 2, 16, 16


# ------------------------- fused Pallas kernel -------------------------

def fused_adaptive_ss2d_kernel(x_ref, w_in_ref, wk_ref, cb_ref, mix_ref,
                               g_ref, bt_ref, w_out_ref, o_ref,
                               pad_ref, sh_ref):
    """Whole AdapiveSS2D forward for one batch element, fully VMEM-resident."""
    HW = x_ref.shape[1]
    Di = w_out_ref.shape[0]
    D2 = 2 * Di
    Hh = pad_ref.shape[0] - 2
    Ww = pad_ref.shape[1] - 2

    # ---- stage 1: in_proj (LoRA weight pre-merged) + dynamic_feature_selection ----
    xz = jnp.dot(x_ref[0], w_in_ref[...], preferred_element_type=jnp.float32)   # (HW, 2Di)
    xz3 = xz.reshape(Hh, Ww, D2)                      # layout-preserving split of rows
    mu = jnp.mean(xz3, axis=-1, keepdims=True)
    # torch.var(dim=-1) is unbiased (divide by N-1)
    var = jnp.sum((xz3 - mu) ** 2, axis=-1, keepdims=True) * (1.0 / (D2 - 1))   # (H, W, 1)
    # softmax of the importance scores over the W axis
    m = jnp.max(var, axis=1, keepdims=True)
    e = jnp.exp(var - m)
    s = jnp.sum(e, axis=1, keepdims=True)
    attn = e * pl.reciprocal(s, approx=True)          # EUP reciprocal, off the VALU path
    xzs = xz3 * attn
    xp3 = xzs[..., :Di]                               # (H, W, Di)
    z3 = xzs[..., Di:]                                # (H, W, Di)

    # ---- stage 2: depthwise 3x3 conv (SAME, zero halo) + bias + SiLU ----
    pad_ref[...] = jnp.zeros_like(pad_ref)
    pad_ref[1:Hh + 1, 1:Ww + 1, :] = xp3
    # build the 3 W-shifted copies once (sublane realignment happens only here)
    for kw in range(D_CONV):
        sh_ref[kw, :, :, :] = pad_ref[:, kw:kw + Ww, :]
    wk = wk_ref[...]                                                  # (3, 3, Di)
    acc = jnp.broadcast_to(cb_ref[0], (Hh, Ww, Di)).astype(jnp.float32)  # bias hoisted
    for kh in range(D_CONV):
        for kw in range(D_CONV):
            # H offsets are outer-dim slices (cheap); W offsets already baked into sh_ref.
            acc = acc + sh_ref[kw, kh:kh + Hh, :, :] * wk[kh, kw]
    a3 = acc * jax.nn.sigmoid(acc)                    # SiLU

    # ---- stage 3: forward_core path mix (one MXU matmul) + LayerNorm + gate + out_proj ----
    a_flat = a3.reshape(HW, Di)
    y = jnp.dot(mix_ref[...], a_flat, preferred_element_type=jnp.float32)        # (HW, Di)
    mu_y = jnp.mean(y, axis=-1, keepdims=True)
    var_y = jnp.mean((y - mu_y) ** 2, axis=-1, keepdims=True)         # LayerNorm: biased var
    yln = (y - mu_y) * lax.rsqrt(var_y + LN_EPS)
    yln = yln * g_ref[...] + bt_ref[...]
    z2 = z3.reshape(HW, Di)
    gate = z2 * jax.nn.sigmoid(z2)                                    # SiLU(z)
    out = jnp.dot(yln * gate, w_out_ref[...], preferred_element_type=jnp.float32)  # (HW, Cm)
    o_ref[0] = out


# ------------------------- wrapper -------------------------

def _build_mix_matrix(path_weights, Hh, Ww):
    """Fold softmax(path_weights) and the 4 forward_core scan views into one
    (HW, HW) mixing matrix so that (M @ a_flat)[p] == sum_k p_k * view_k[p]."""
    HW = Hh * Ww
    pp = jax.nn.softmax(path_weights.astype(jnp.float32))
    p = jnp.arange(HW)
    q = HW - 1 - p
    src = jnp.stack([
        p,                                # view 0: identity scan
        (p % Hh) * Ww + (p // Hh),        # view 1: HW-transposed scan
        q,                                # view 2: reversed scan
        (q % Hh) * Ww + (q // Hh),        # view 3: reversed transposed scan
    ], axis=0)                            # (4, HW) source flat indices
    onehot = (src[:, :, None] == jnp.arange(HW)[None, None, :]).astype(jnp.float32)
    return jnp.einsum("k,kpq->pq", pp, onehot)        # (HW, HW)


def adaptive_ss2d_forward(x, params):
    Bn, Hh, Ww, Cm = x.shape
    Di = D_INNER
    HW = Hh * Ww

    mix = _build_mix_matrix(params["path_weights"], Hh, Ww)
    x2 = x.reshape(Bn, HW, Cm)

    out2 = pl.pallas_call(
        fused_adaptive_ss2d_kernel,
        out_shape=jax.ShapeDtypeStruct((Bn, HW, Cm), jnp.float32),
        grid=(Bn,),
        in_specs=[
            pl.BlockSpec((1, HW, Cm), lambda b: (b, 0, 0)),            # x (flattened spatial)
            pl.BlockSpec((Cm, 2 * Di), lambda b: (0, 0)),              # merged in_proj weight
            pl.BlockSpec((D_CONV, D_CONV, Di), lambda b: (0, 0, 0)),   # depthwise conv weight (HWC)
            pl.BlockSpec((1, Di), lambda b: (0, 0)),                   # conv bias
            pl.BlockSpec((HW, HW), lambda b: (0, 0)),                  # path-mix matrix
            pl.BlockSpec((1, Di), lambda b: (0, 0)),                   # LN gamma
            pl.BlockSpec((1, Di), lambda b: (0, 0)),                   # LN beta
            pl.BlockSpec((Di, Cm), lambda b: (0, 0)),                  # merged out_proj weight
        ],
        out_specs=pl.BlockSpec((1, HW, Cm), lambda b: (b, 0, 0)),
        scratch_shapes=[
            pltpu.VMEM((Hh + 2, Ww + 2, Di), jnp.float32),             # zero-halo conv pad
            pltpu.VMEM((D_CONV, Hh + 2, Ww, Di), jnp.float32),         # 3 W-shifted copies
        ],
        compiler_params=pltpu.CompilerParams(dimension_semantics=("parallel",)),
    )(x2, params["w_in_eff"], params["conv_w_hwc"], params["conv_b"], mix,
      params["ln_g"], params["ln_b"], params["w_out_eff"])
    # TODO(synk): kv_cache_update keeps a stateful python-dict cache; on the first
    # (training-mode) call it is the identity, which is what is implemented here.
    return out2.reshape(Bn, Hh, Ww, Cm)


# ------------------------- params & pure-JAX reference -------------------------

def init_params(key):
    ks = jax.random.split(key, 6)
    Cm, Di = D_MODEL, D_INNER

    # in_proj (LoRALinear): weight kaiming-uniform-like, lora_A ~ N(0, .01), lora_B = 0
    bound_in = 1.0 / math.sqrt(Cm)
    in_w = jax.random.uniform(ks[0], (2 * Di, Cm), jnp.float32, -bound_in, bound_in)
    in_la = jax.random.normal(ks[1], (LORA_RANK, Cm), jnp.float32) * 0.01
    in_lb = jnp.zeros((2 * Di, LORA_RANK), jnp.float32)
    w_in_eff = (in_w + in_lb @ in_la * (1.0 / LORA_RANK)).T             # (Cm, 2*Di)

    # depthwise conv2d: weight (Di, 1, 3, 3), bias (Di,)
    bound_c = 1.0 / math.sqrt(D_CONV * D_CONV)
    conv_w = jax.random.uniform(ks[2], (Di, 1, D_CONV, D_CONV), jnp.float32, -bound_c, bound_c)
    conv_b = jax.random.uniform(ks[3], (Di,), jnp.float32, -bound_c, bound_c)

    # out_proj (LoRALinear)
    bound_out = 1.0 / math.sqrt(Di)
    out_w = jax.random.uniform(ks[4], (Cm, Di), jnp.float32, -bound_out, bound_out)
    out_la = jax.random.normal(ks[5], (LORA_RANK, Di), jnp.float32) * 0.01
    out_lb = jnp.zeros((Cm, LORA_RANK), jnp.float32)
    w_out_eff = (out_w + out_lb @ out_la * (1.0 / LORA_RANK)).T         # (Di, Cm)

    return dict(
        w_in_eff=w_in_eff,
        conv_w_nchw=conv_w,
        conv_w_hwc=jnp.transpose(conv_w[:, 0], (1, 2, 0)),              # (3, 3, Di)
        conv_b=conv_b.reshape(1, Di),
        conv_b_flat=conv_b,
        path_weights=jnp.ones((4,), jnp.float32),
        ln_g=jnp.ones((1, Di), jnp.float32),
        ln_b=jnp.zeros((1, Di), jnp.float32),
        w_out_eff=w_out_eff,
    )


def reference_forward(x, p):
    """Pure-JAX replica of the PyTorch forward for a correctness check."""
    Bn, Hh, Ww, Cm = x.shape
    Di = D_INNER
    xz = jnp.einsum("bhwc,cd->bhwd", x, p["w_in_eff"])
    var = jnp.var(xz, axis=-1, ddof=1)
    attn = jax.nn.softmax(var, axis=-1)
    xz = xz * attn[..., None]
    xp, z = xz[..., :Di], xz[..., Di:]
    xc = jnp.transpose(xp, (0, 3, 1, 2))
    conv = lax.conv_general_dilated(
        xc, p["conv_w_nchw"], window_strides=(1, 1), padding="SAME",
        feature_group_count=Di, dimension_numbers=("NCHW", "OIHW", "NCHW"))
    conv = conv + p["conv_b_flat"].reshape(1, Di, 1, 1)
    a = conv * jax.nn.sigmoid(conv)
    x_flat = a.reshape(Bn, Di, Hh * Ww)
    x_t = jnp.transpose(a, (0, 1, 3, 2)).reshape(Bn, Di, Hh * Ww)
    x_hwwh = jnp.stack([x_flat, x_t], axis=1)
    xs = jnp.concatenate([x_hwwh, jnp.flip(x_hwwh, axis=-1)], axis=1)
    views = xs.reshape(Bn, 4, Di, Hh, Ww)
    pp = jax.nn.softmax(p["path_weights"]).reshape(1, 4, 1, 1, 1)
    out_y = (views * pp).sum(axis=1)                                    # (B, Di, H, W)
    yh = jnp.transpose(out_y, (0, 2, 3, 1))
    mu = yh.mean(-1, keepdims=True)
    vv = ((yh - mu) ** 2).mean(-1, keepdims=True)
    yln = (yh - mu) / jnp.sqrt(vv + LN_EPS) * p["ln_g"].reshape(Di) + p["ln_b"].reshape(Di)
    y = yln * (z * jax.nn.sigmoid(z))
    return jnp.einsum("bhwd,dc->bhwc", y, p["w_out_eff"])


if __name__ == "__main__":
    key = jax.random.PRNGKey(0)
    kx, kp = jax.random.split(key)
    x = jax.random.normal(kx, (B, H, W, D_MODEL), jnp.float32)
    params = init_params(kp)

    fwd = jax.jit(adaptive_ss2d_forward)
    out = jax.block_until_ready(fwd(x, params))
    assert out.shape == (B, H, W, D_MODEL)

    ref = jax.block_until_ready(reference_forward(x, params))
    np.testing.assert_allclose(np.asarray(out), np.asarray(ref), rtol=2e-2, atol=2e-2)
    print("KERNEL_OK")
</pallas_src>

<mosaic_0001>
module attributes {stable_mosaic.version = 11 : i64} {
  func.func @fused_adaptive_ss2d_kernel(%arg0: i32, %arg1: memref<1x256x16xf32, #tpu.memory_space<vmem>>, %arg2: memref<16x64xf32, #tpu.memory_space<vmem>>, %arg3: memref<3x3x32xf32, #tpu.memory_space<vmem>>, %arg4: memref<1x32xf32, #tpu.memory_space<vmem>>, %arg5: memref<256x256xf32, #tpu.memory_space<vmem>>, %arg6: memref<1x32xf32, #tpu.memory_space<vmem>>, %arg7: memref<1x32xf32, #tpu.memory_space<vmem>>, %arg8: memref<32x16xf32, #tpu.memory_space<vmem>>, %arg9: memref<1x256x16xf32, #tpu.memory_space<vmem>>, %arg10: memref<18x18x32xf32, #tpu.memory_space<vmem>>, %arg11: memref<3x18x16x32xf32, #tpu.memory_space<vmem>>) attributes {dimension_semantics = [#tpu.dimension_semantics<parallel>], iteration_bounds = array<i64: 2>, scalar_prefetch = 0 : i64, scratch_operands = 2 : i64, tpu.core_type = #tpu.core_type<tc>, window_params = [{transform_indices = @transform_0, window_bounds = array<i64: 1, 256, 16>}, {pipeline_mode = #tpu.pipeline_mode<synchronous>, transform_indices = @transform_1, window_bounds = array<i64: 16, 64>}, {pipeline_mode = #tpu.pipeline_mode<synchronous>, transform_indices = @transform_2, window_bounds = array<i64: 3, 3, 32>}, {pipeline_mode = #tpu.pipeline_mode<synchronous>, transform_indices = @transform_3, window_bounds = array<i64: 1, 32>}, {pipeline_mode = #tpu.pipeline_mode<synchronous>, transform_indices = @transform_4, window_bounds = array<i64: 256, 256>}, {pipeline_mode = #tpu.pipeline_mode<synchronous>, transform_indices = @transform_5, window_bounds = array<i64: 1, 32>}, {pipeline_mode = #tpu.pipeline_mode<synchronous>, transform_indices = @transform_6, window_bounds = array<i64: 1, 32>}, {pipeline_mode = #tpu.pipeline_mode<synchronous>, transform_indices = @transform_7, window_bounds = array<i64: 32, 16>}, {transform_indices = @transform_8, window_bounds = array<i64: 1, 256, 16>}]} {
    %c0 = arith.constant 0 : index
    %c0_0 = arith.constant 0 : index
    %c0_1 = arith.constant 0 : index
    %0 = vector.load %arg1[%c0, %c0_0, %c0_1] : memref<1x256x16xf32, #tpu.memory_space<vmem>>, vector<1x256x16xf32>
    %1 = vector.shape_cast %0 : vector<1x256x16xf32> to vector<256x16xf32>
    %c0_2 = arith.constant 0 : index
    %c0_3 = arith.constant 0 : index
    %2 = vector.load %arg2[%c0_2, %c0_3] : memref<16x64xf32, #tpu.memory_space<vmem>>, vector<16x64xf32>
    %cst = arith.constant dense<0.000000e+00> : vector<256x64xf32>
    %3 = tpu.matmul %1, %2, %cst {dimension_numbers = #tpu.dot_dimension_numbers<[1], [0], [0], [1], [0, 0, 1, 1], [], []>} : vector<256x16xf32>, vector<16x64xf32>, vector<256x64xf32> -> vector<256x64xf32>
    %4 = vector.shape_cast %3 : vector<256x64xf32> to vector<16x16x64xf32>
    %cst_4 = arith.constant dense<0.000000e+00> : vector<16x16xf32>
    %5 = vector.multi_reduction <add>, %4, %cst_4 [2] : vector<16x16x64xf32> to vector<16x16xf32>
    %6 = vector.shape_cast %5 : vector<16x16xf32> to vector<16x16x1xf32>
    %cst_5 = arith.constant 6.400000e+01 : f32
    %7 = vector.broadcast %cst_5 : f32 to vector<16x16x1xf32>
    %8 = arith.divf %6, %7 : vector<16x16x1xf32>
    %9 = vector.broadcast %8 : vector<16x16x1xf32> to vector<16x16x64xf32>
    %10 = arith.subf %4, %9 : vector<16x16x64xf32>
    %11 = arith.mulf %10, %10 : vector<16x16x64xf32>
    %cst_6 = arith.constant dense<0.000000e+00> : vector<16x16xf32>
    %12 = vector.multi_reduction <add>, %11, %cst_6 [2] : vector<16x16x64xf32> to vector<16x16xf32>
    %13 = vector.shape_cast %12 : vector<16x16xf32> to vector<16x16x1xf32>
    %cst_7 = arith.constant 0.0158730168 : f32
    %14 = vector.broadcast %cst_7 : f32 to vector<16x16x1xf32>
    %15 = arith.mulf %13, %14 : vector<16x16x1xf32>
    %cst_8 = arith.constant dense<0xFF800000> : vector<16x1xf32>
    %16 = vector.multi_reduction <maximumf>, %15, %cst_8 [1] : vector<16x16x1xf32> to vector<16x1xf32>
    %17 = vector.shape_cast %16 : vector<16x1xf32> to vector<16x1x1xf32>
    %18 = vector.broadcast %17 : vector<16x1x1xf32> to vector<16x16x1xf32>
    %19 = arith.subf %15, %18 : vector<16x16x1xf32>
    %20 = math.exp %19 : vector<16x16x1xf32>
    %cst_9 = arith.constant dense<0.000000e+00> : vector<16x1xf32>
    %21 = vector.multi_reduction <add>, %20, %cst_9 [1] : vector<16x16x1xf32> to vector<16x1xf32>
    %22 = vector.shape_cast %21 : vector<16x1xf32> to vector<16x1x1xf32>
    %23 = tpu.reciprocal %22 {approx = true} : vector<16x1x1xf32> -> vector<16x1x1xf32>
    %24 = vector.broadcast %23 : vector<16x1x1xf32> to vector<16x16x1xf32>
    %25 = arith.mulf %20, %24 : vector<16x16x1xf32>
    %26 = vector.broadcast %25 : vector<16x16x1xf32> to vector<16x16x64xf32>
    %27 = arith.mulf %4, %26 : vector<16x16x64xf32>
    %28 = vector.extract_strided_slice %27 {offsets = [0, 0, 0], sizes = [16, 16, 32], strides = [1, 1, 1]} : vector<16x16x64xf32> to vector<16x16x32xf32>
    %29 = vector.extract_strided_slice %27 {offsets = [0, 0, 32], sizes = [16, 16, 32], strides = [1, 1, 1]} : vector<16x16x64xf32> to vector<16x16x32xf32>
    %cst_10 = arith.constant 0.000000e+00 : f32
    %30 = vector.broadcast %cst_10 : f32 to vector<18x18x32xf32>
    %c0_11 = arith.constant 0 : index
    %c0_12 = arith.constant 0 : index
    %c0_13 = arith.constant 0 : index
    %31 = vector.load %arg10[%c0_11, %c0_12, %c0_13] : memref<18x18x32xf32, #tpu.memory_space<vmem>>, vector<18x18x32xf32>
    tpu.vector_store %arg10[%c0_11, %c0_12, %c0_13], %30 {strides = array<i32>} : memref<18x18x32xf32, #tpu.memory_space<vmem>>, vector<18x18x32xf32>,
    %c1 = arith.constant 1 : index
    %c1_14 = arith.constant 1 : index
    %c0_15 = arith.constant 0 : index
    %32 = vector.load %arg10[%c1, %c1_14, %c0_15] : memref<18x18x32xf32, #tpu.memory_space<vmem>>, vector<16x16x32xf32>
    tpu.vector_store %arg10[%c1, %c1_14, %c0_15], %28 {strides = array<i32>} : memref<18x18x32xf32, #tpu.memory_space<vmem>>, vector<16x16x32xf32>,
    %c0_16 = arith.constant 0 : index
    %c0_17 = arith.constant 0 : index
    %c0_18 = arith.constant 0 : index
    %33 = vector.load %arg10[%c0_16, %c0_17, %c0_18] : memref<18x18x32xf32, #tpu.memory_space<vmem>>, vector<18x16x32xf32>
    %c0_19 = arith.constant 0 : index
    %c0_20 = arith.constant 0 : index
    %c0_21 = arith.constant 0 : index
    %c0_22 = arith.constant 0 : index
    %34 = vector.load %arg11[%c0_19, %c0_20, %c0_21, %c0_22] : memref<3x18x16x32xf32, #tpu.memory_space<vmem>>, vector<1x18x16x32xf32>
    %35 = vector.shape_cast %34 : vector<1x18x16x32xf32> to vector<18x16x32xf32>
    %36 = vector.shape_cast %33 : vector<18x16x32xf32> to vector<1x18x16x32xf32>
    tpu.vector_store %arg11[%c0_19, %c0_20, %c0_21, %c0_22], %36 {strides = array<i32>} : memref<3x18x16x32xf32, #tpu.memory_space<vmem>>, vector<1x18x16x32xf32>,
    %c0_23 = arith.constant 0 : index
    %c1_24 = arith.constant 1 : index
    %c0_25 = arith.constant 0 : index
    %37 = vector.load %arg10[%c0_23, %c1_24, %c0_25] : memref<18x18x32xf32, #tpu.memory_space<vmem>>, vector<18x16x32xf32>
    %c1_26 = arith.constant 1 : index
    %c0_27 = arith.constant 0 : index
    %c0_28 = arith.constant 0 : index
    %c0_29 = arith.constant 0 : index
    %38 = vector.load %arg11[%c1_26, %c0_27, %c0_28, %c0_29] : memref<3x18x16x32xf32, #tpu.memory_space<vmem>>, vector<1x18x16x32xf32>
    %39 = vector.shape_cast %38 : vector<1x18x16x32xf32> to vector<18x16x32xf32>
    %40 = vector.shape_cast %37 : vector<18x16x32xf32> to vector<1x18x16x32xf32>
    tpu.vector_store %arg11[%c1_26, %c0_27, %c0_28, %c0_29], %40 {strides = array<i32>} : memref<3x18x16x32xf32, #tpu.memory_space<vmem>>, vector<1x18x16x32xf32>,
    %c0_30 = arith.constant 0 : index
    %c2 = arith.constant 2 : index
    %c0_31 = arith.constant 0 : index
    %41 = vector.load %arg10[%c0_30, %c2, %c0_31] : memref<18x18x32xf32, #tpu.memory_space<vmem>>, vector<18x16x32xf32>
    %c2_32 = arith.constant 2 : index
    %c0_33 = arith.constant 0 : index
    %c0_34 = arith.constant 0 : index
    %c0_35 = arith.constant 0 : index
    %42 = vector.load %arg11[%c2_32, %c0_33, %c0_34, %c0_35] : memref<3x18x16x32xf32, #tpu.memory_space<vmem>>, vector<1x18x16x32xf32>
    %43 = vector.shape_cast %42 : vector<1x18x16x32xf32> to vector<18x16x32xf32>
    %44 = vector.shape_cast %41 : vector<18x16x32xf32> to vector<1x18x16x32xf32>
    tpu.vector_store %arg11[%c2_32, %c0_33, %c0_34, %c0_35], %44 {strides = array<i32>} : memref<3x18x16x32xf32, #tpu.memory_space<vmem>>, vector<1x18x16x32xf32>,
    %c0_36 = arith.constant 0 : index
    %c0_37 = arith.constant 0 : index
    %c0_38 = arith.constant 0 : index
    %45 = vector.load %arg3[%c0_36, %c0_37, %c0_38] : memref<3x3x32xf32, #tpu.memory_space<vmem>>, vector<3x3x32xf32>
    %c0_39 = arith.constant 0 : index
    %c0_40 = arith.constant 0 : index
    %46 = vector.load %arg4[%c0_39, %c0_40] : memref<1x32xf32, #tpu.memory_space<vmem>>, vector<1x32xf32>
    %47 = vector.shape_cast %46 : vector<1x32xf32> to vector<32xf32>
    %48 = vector.shape_cast %47 : vector<32xf32> to vector<1x1x32xf32>
    %49 = vector.broadcast %48 : vector<1x1x32xf32> to vector<16x16x32xf32>
    %c0_41 = arith.constant 0 : index
    %c0_42 = arith.constant 0 : index
    %c0_43 = arith.constant 0 : index
    %c0_44 = arith.constant 0 : index
    %50 = vector.load %arg11[%c0_41, %c0_42, %c0_43, %c0_44] : memref<3x18x16x32xf32, #tpu.memory_space<vmem>>, vector<1x16x16x32xf32>
    %51 = vector.shape_cast %50 : vector<1x16x16x32xf32> to vector<16x16x32xf32>
    %52 = vector.extract_strided_slice %45 {offsets = [0, 0, 0], sizes = [1, 1, 32], strides = [1, 1, 1]} : vector<3x3x32xf32> to vector<1x1x32xf32>
    %53 = vector.shape_cast %52 : vector<1x1x32xf32> to vector<32xf32>
    %54 = vector.shape_cast %53 : vector<32xf32> to vector<1x1x32xf32>
    %55 = vector.broadcast %54 : vector<1x1x32xf32> to vector<16x16x32xf32>
    %56 = arith.mulf %51, %55 : vector<16x16x32xf32>
    %57 = arith.addf %49, %56 : vector<16x16x32xf32>
    %c1_45 = arith.constant 1 : index
    %c0_46 = arith.constant 0 : index
    %c0_47 = arith.constant 0 : index
    %c0_48 = arith.constant 0 : index
    %58 = vector.load %arg11[%c1_45, %c0_46, %c0_47, %c0_48] : memref<3x18x16x32xf32, #tpu.memory_space<vmem>>, vector<1x16x16x32xf32>
    %59 = vector.shape_cast %58 : vector<1x16x16x32xf32> to vector<16x16x32xf32>
    %60 = vector.extract_strided_slice %45 {offsets = [0, 1, 0], sizes = [1, 1, 32], strides = [1, 1, 1]} : vector<3x3x32xf32> to vector<1x1x32xf32>
    %61 = vector.shape_cast %60 : vector<1x1x32xf32> to vector<32xf32>
    %62 = vector.shape_cast %61 : vector<32xf32> to vector<1x1x32xf32>
    %63 = vector.broadcast %62 : vector<1x1x32xf32> to vector<16x16x32xf32>
    %64 = arith.mulf %59, %63 : vector<16x16x32xf32>
    %65 = arith.addf %57, %64 : vector<16x16x32xf32>
    %c2_49 = arith.constant 2 : index
    %c0_50 = arith.constant 0 : index
    %c0_51 = arith.constant 0 : index
    %c0_52 = arith.constant 0 : index
    %66 = vector.load %arg11[%c2_49, %c0_50, %c0_51, %c0_52] : memref<3x18x16x32xf32, #tpu.memory_space<vmem>>, vector<1x16x16x32xf32>
    %67 = vector.shape_cast %66 : vector<1x16x16x32xf32> to vector<16x16x32xf32>
    %68 = vector.extract_strided_slice %45 {offsets = [0, 2, 0], sizes = [1, 1, 32], strides = [1, 1, 1]} : vector<3x3x32xf32> to vector<1x1x32xf32>
    %69 = vector.shape_cast %68 : vector<1x1x32xf32> to vector<32xf32>
    %70 = vector.shape_cast %69 : vector<32xf32> to vector<1x1x32xf32>
    %71 = vector.broadcast %70 : vector<1x1x32xf32> to vector<16x16x32xf32>
    %72 = arith.mulf %67, %71 : vector<16x16x32xf32>
    %73 = arith.addf %65, %72 : vector<16x16x32xf32>
    %c0_53 = arith.constant 0 : index
    %c1_54 = arith.constant 1 : index
    %c0_55 = arith.constant 0 : index
    %c0_56 = arith.constant 0 : index
    %74 = vector.load %arg11[%c0_53, %c1_54, %c0_55, %c0_56] : memref<3x18x16x32xf32, #tpu.memory_space<vmem>>, vector<1x16x16x32xf32>
    %75 = vector.shape_cast %74 : vector<1x16x16x32xf32> to vector<16x16x32xf32>
    %76 = vector.extract_strided_slice %45 {offsets = [1, 0, 0], sizes = [1, 1, 32], strides = [1, 1, 1]} : vector<3x3x32xf32> to vector<1x1x32xf32>
    %77 = vector.shape_cast %76 : vector<1x1x32xf32> to vector<32xf32>
    %78 = vector.shape_cast %77 : vector<32xf32> to vector<1x1x32xf32>
    %79 = vector.broadcast %78 : vector<1x1x32xf32> to vector<16x16x32xf32>
    %80 = arith.mulf %75, %79 : vector<16x16x32xf32>
    %81 = arith.addf %73, %80 : vector<16x16x32xf32>
    %c1_57 = arith.constant 1 : index
    %c1_58 = arith.constant 1 : index
    %c0_59 = arith.constant 0 : index
    %c0_60 = arith.constant 0 : index
    %82 = vector.load %arg11[%c1_57, %c1_58, %c0_59, %c0_60] : memref<3x18x16x32xf32, #tpu.memory_space<vmem>>, vector<1x16x16x32xf32>
    %83 = vector.shape_cast %82 : vector<1x16x16x32xf32> to vector<16x16x32xf32>
    %84 = vector.extract_strided_slice %45 {offsets = [1, 1, 0], sizes = [1, 1, 32], strides = [1, 1, 1]} : vector<3x3x32xf32> to vector<1x1x32xf32>
    %85 = vector.shape_cast %84 : vector<1x1x32xf32> to vector<32xf32>
    %86 = vector.shape_cast %85 : vector<32xf32> to vector<1x1x32xf32>
    %87 = vector.broadcast %86 : vector<1x1x32xf32> to vector<16x16x32xf32>
    %88 = arith.mulf %83, %87 : vector<16x16x32xf32>
    %89 = arith.addf %81, %88 : vector<16x16x32xf32>
    %c2_61 = arith.constant 2 : index
    %c1_62 = arith.constant 1 : index
    %c0_63 = arith.constant 0 : index
    %c0_64 = arith.constant 0 : index
    %90 = vector.load %arg11[%c2_61, %c1_62, %c0_63, %c0_64] : memref<3x18x16x32xf32, #tpu.memory_space<vmem>>, vector<1x16x16x32xf32>
    %91 = vector.shape_cast %90 : vector<1x16x16x32xf32> to vector<16x16x32xf32>
    %92 = vector.extract_strided_slice %45 {offsets = [1, 2, 0], sizes = [1, 1, 32], strides = [1, 1, 1]} : vector<3x3x32xf32> to vector<1x1x32xf32>
    %93 = vector.shape_cast %92 : vector<1x1x32xf32> to vector<32xf32>
    %94 = vector.shape_cast %93 : vector<32xf32> to vector<1x1x32xf32>
    %95 = vector.broadcast %94 : vector<1x1x32xf32> to vector<16x16x32xf32>
    %96 = arith.mulf %91, %95 : vector<16x16x32xf32>
    %97 = arith.addf %89, %96 : vector<16x16x32xf32>
    %c0_65 = arith.constant 0 : index
    %c2_66 = arith.constant 2 : index
    %c0_67 = arith.constant 0 : index
    %c0_68 = arith.constant 0 : index
    %98 = vector.load %arg11[%c0_65, %c2_66, %c0_67, %c0_68] : memref<3x18x16x32xf32, #tpu.memory_space<vmem>>, vector<1x16x16x32xf32>
    %99 = vector.shape_cast %98 : vector<1x16x16x32xf32> to vector<16x16x32xf32>
    %100 = vector.extract_strided_slice %45 {offsets = [2, 0, 0], sizes = [1, 1, 32], strides = [1, 1, 1]} : vector<3x3x32xf32> to vector<1x1x32xf32>
    %101 = vector.shape_cast %100 : vector<1x1x32xf32> to vector<32xf32>
    %102 = vector.shape_cast %101 : vector<32xf32> to vector<1x1x32xf32>
    %103 = vector.broadcast %102 : vector<1x1x32xf32> to vector<16x16x32xf32>
    %104 = arith.mulf %99, %103 : vector<16x16x32xf32>
    %105 = arith.addf %97, %104 : vector<16x16x32xf32>
    %c1_69 = arith.constant 1 : index
    %c2_70 = arith.constant 2 : index
    %c0_71 = arith.constant 0 : index
    %c0_72 = arith.constant 0 : index
    %106 = vector.load %arg11[%c1_69, %c2_70, %c0_71, %c0_72] : memref<3x18x16x32xf32, #tpu.memory_space<vmem>>, vector<1x16x16x32xf32>
    %107 = vector.shape_cast %106 : vector<1x16x16x32xf32> to vector<16x16x32xf32>
    %108 = vector.extract_strided_slice %45 {offsets = [2, 1, 0], sizes = [1, 1, 32], strides = [1, 1, 1]} : vector<3x3x32xf32> to vector<1x1x32xf32>
    %109 = vector.shape_cast %108 : vector<1x1x32xf32> to vector<32xf32>
    %110 = vector.shape_cast %109 : vector<32xf32> to vector<1x1x32xf32>
    %111 = vector.broadcast %110 : vector<1x1x32xf32> to vector<16x16x32xf32>
    %112 = arith.mulf %107, %111 : vector<16x16x32xf32>
    %113 = arith.addf %105, %112 : vector<16x16x32xf32>
    %c2_73 = arith.constant 2 : index
    %c2_74 = arith.constant 2 : index
    %c0_75 = arith.constant 0 : index
    %c0_76 = arith.constant 0 : index
    %114 = vector.load %arg11[%c2_73, %c2_74, %c0_75, %c0_76] : memref<3x18x16x32xf32, #tpu.memory_space<vmem>>, vector<1x16x16x32xf32>
    %115 = vector.shape_cast %114 : vector<1x16x16x32xf32> to vector<16x16x32xf32>
    %116 = vector.extract_strided_slice %45 {offsets = [2, 2, 0], sizes = [1, 1, 32], strides = [1, 1, 1]} : vector<3x3x32xf32> to vector<1x1x32xf32>
    %117 = vector.shape_cast %116 : vector<1x1x32xf32> to vector<32xf32>
    %118 = vector.shape_cast %117 : vector<32xf32> to vector<1x1x32xf32>
    %119 = vector.broadcast %118 : vector<1x1x32xf32> to vector<16x16x32xf32>
    %120 = arith.mulf %115, %119 : vector<16x16x32xf32>
    %121 = arith.addf %113, %120 : vector<16x16x32xf32>
    %122 = arith.negf %121 : vector<16x16x32xf32>
    %123 = math.exp %122 : vector<16x16x32xf32>
    %cst_77 = arith.constant 1.000000e+00 : f32
    %124 = vector.broadcast %cst_77 : f32 to vector<16x16x32xf32>
    %125 = arith.addf %124, %123 : vector<16x16x32xf32>
    %126 = arith.divf %124, %125 : vector<16x16x32xf32>
    %127 = arith.mulf %121, %126 : vector<16x16x32xf32>
    %128 = vector.shape_cast %127 : vector<16x16x32xf32> to vector<256x32xf32>
    %c0_78 = arith.constant 0 : index
    %c0_79 = arith.constant 0 : index
    %129 = vector.load %arg5[%c0_78, %c0_79] : memref<256x256xf32, #tpu.memory_space<vmem>>, vector<256x256xf32>
    %cst_80 = arith.constant dense<0.000000e+00> : vector<256x32xf32>
    %130 = tpu.matmul %129, %128, %cst_80 {dimension_numbers = #tpu.dot_dimension_numbers<[1], [0], [0], [1], [0, 0, 1, 1], [], []>} : vector<256x256xf32>, vector<256x32xf32>, vector<256x32xf32> -> vector<256x32xf32>
    %cst_81 = arith.constant dense<0.000000e+00> : vector<256xf32>
    %131 = vector.multi_reduction <add>, %130, %cst_81 [1] : vector<256x32xf32> to vector<256xf32>
    %132 = vector.shape_cast %131 : vector<256xf32> to vector<256x1xf32>
    %cst_82 = arith.constant 3.200000e+01 : f32
    %133 = vector.broadcast %cst_82 : f32 to vector<256x1xf32>
    %134 = arith.divf %132, %133 : vector<256x1xf32>
    %135 = vector.broadcast %134 : vector<256x1xf32> to vector<256x32xf32>
    %136 = arith.subf %130, %135 : vector<256x32xf32>
    %137 = arith.mulf %136, %136 : vector<256x32xf32>
    %cst_83 = arith.constant dense<0.000000e+00> : vector<256xf32>
    %138 = vector.multi_reduction <add>, %137, %cst_83 [1] : vector<256x32xf32> to vector<256xf32>
    %139 = vector.shape_cast %138 : vector<256xf32> to vector<256x1xf32>
    %cst_84 = arith.constant 3.200000e+01 : f32
    %140 = vector.broadcast %cst_84 : f32 to vector<256x1xf32>
    %141 = arith.divf %139, %140 : vector<256x1xf32>
    %142 = vector.broadcast %134 : vector<256x1xf32> to vector<256x32xf32>
    %143 = arith.subf %130, %142 : vector<256x32xf32>
    %cst_85 = arith.constant 9.99999974E-6 : f32
    %144 = vector.broadcast %cst_85 : f32 to vector<256x1xf32>
    %145 = arith.addf %141, %144 : vector<256x1xf32>
    %146 = math.rsqrt %145 : vector<256x1xf32>
    %147 = vector.broadcast %146 : vector<256x1xf32> to vector<256x32xf32>
    %148 = arith.mulf %143, %147 : vector<256x32xf32>
    %c0_86 = arith.constant 0 : index
    %c0_87 = arith.constant 0 : index
    %149 = vector.load %arg6[%c0_86, %c0_87] : memref<1x32xf32, #tpu.memory_space<vmem>>, vector<1x32xf32>
    %150 = vector.broadcast %149 : vector<1x32xf32> to vector<256x32xf32>
    %151 = arith.mulf %148, %150 : vector<256x32xf32>
    %c0_88 = arith.constant 0 : index
    %c0_89 = arith.constant 0 : index
    %152 = vector.load %arg7[%c0_88, %c0_89] : memref<1x32xf32, #tpu.memory_space<vmem>>, vector<1x32xf32>
    %153 = vector.broadcast %152 : vector<1x32xf32> to vector<256x32xf32>
    %154 = arith.addf %151, %153 : vector<256x32xf32>
    %155 = vector.shape_cast %29 : vector<16x16x32xf32> to vector<256x32xf32>
    %156 = arith.negf %155 : vector<256x32xf32>
    %157 = math.exp %156 : vector<256x32xf32>
    %cst_90 = arith.constant 1.000000e+00 : f32
    %158 = vector.broadcast %cst_90 : f32 to vector<256x32xf32>
    %159 = arith.addf %158, %157 : vector<256x32xf32>
    %160 = arith.divf %158, %159 : vector<256x32xf32>
    %161 = arith.mulf %155, %160 : vector<256x32xf32>
    %162 = arith.mulf %154, %161 : vector<256x32xf32>
    %c0_91 = arith.constant 0 : index
    %c0_92 = arith.constant 0 : index
    %163 = vector.load %arg8[%c0_91, %c0_92] : memref<32x16xf32, #tpu.memory_space<vmem>>, vector<32x16xf32>
    %cst_93 = arith.constant dense<0.000000e+00> : vector<256x16xf32>
    %164 = tpu.matmul %162, %163, %cst_93 {dimension_numbers = #tpu.dot_dimension_numbers<[1], [0], [0], [1], [0, 0, 1, 1], [], []>} : vector<256x32xf32>, vector<32x16xf32>, vector<256x16xf32> -> vector<256x16xf32>
    %c0_94 = arith.constant 0 : index
    %c0_95 = arith.constant 0 : index
    %c0_96 = arith.constant 0 : index
    %165 = vector.load %arg9[%c0_94, %c0_95, %c0_96] : memref<1x256x16xf32, #tpu.memory_space<vmem>>, vector<1x256x16xf32>
    %166 = vector.shape_cast %165 : vector<1x256x16xf32> to vector<256x16xf32>
    %167 = vector.shape_cast %164 : vector<256x16xf32> to vector<1x256x16xf32>
    tpu.vector_store %arg9[%c0_94, %c0_95, %c0_96], %167 {strides = array<i32>} : memref<1x256x16xf32, #tpu.memory_space<vmem>>, vector<1x256x16xf32>,
    return
  }
  func.func @transform_0(%arg0: i32) -> (i32, i32, i32) {
    %c0_i32 = arith.constant 0 : i32
    %c0_i32_0 = arith.constant 0 : i32
    %c0_i32_1 = arith.constant 0 : i32
    return %arg0, %c0_i32, %c0_i32_0 : i32, i32, i32
  }
  func.func @transform_1(%arg0: i32) -> (i32, i32) {
    %c0_i32 = arith.constant 0 : i32
    %c0_i32_0 = arith.constant 0 : i32
    %c0_i32_1 = arith.constant 0 : i32
    return %c0_i32, %c0_i32_0 : i32, i32
  }
  func.func @transform_2(%arg0: i32) -> (i32, i32, i32) {
    %c0_i32 = arith.constant 0 : i32
    %c0_i32_0 = arith.constant 0 : i32
    %c0_i32_1 = arith.constant 0 : i32
    %c0_i32_2 = arith.constant 0 : i32
    return %c0_i32, %c0_i32_0, %c0_i32_1 : i32, i32, i32
  }
  func.func @transform_3(%arg0: i32) -> (i32, i32) {
    %c0_i32 = arith.constant 0 : i32
    %c0_i32_0 = arith.constant 0 : i32
    %c0_i32_1 = arith.constant 0 : i32
    return %c0_i32, %c0_i32_0 : i32, i32
  }
  func.func @transform_4(%arg0: i32) -> (i32, i32) {
    %c0_i32 = arith.constant 0 : i32
    %c0_i32_0 = arith.constant 0 : i32
    %c0_i32_1 = arith.constant 0 : i32
    return %c0_i32, %c0_i32_0 : i32, i32
  }
  func.func @transform_5(%arg0: i32) -> (i32, i32) {
    %c0_i32 = arith.constant 0 : i32
    %c0_i32_0 = arith.constant 0 : i32
    %c0_i32_1 = arith.constant 0 : i32
    return %c0_i32, %c0_i32_0 : i32, i32
  }
  func.func @transform_6(%arg0: i32) -> (i32, i32) {
    %c0_i32 = arith.constant 0 : i32
    %c0_i32_0 = arith.constant 0 : i32
    %c0_i32_1 = arith.constant 0 : i32
    return %c0_i32, %c0_i32_0 : i32, i32
  }
  func.func @transform_7(%arg0: i32) -> (i32, i32) {
    %c0_i32 = arith.constant 0 : i32
    %c0_i32_0 = arith.constant 0 : i32
    %c0_i32_1 = arith.constant 0 : i32
    return %c0_i32, %c0_i32_0 : i32, i32
  }
  func.func @transform_8(%arg0: i32) -> (i32, i32, i32) {
    %c0_i32 = arith.constant 0 : i32
    %c0_i32_0 = arith.constant 0 : i32
    %c0_i32_1 = arith.constant 0 : i32
    return %arg0, %c0_i32, %c0_i32_0 : i32, i32, i32
  }
}

</mosaic_0001>

<bundles_post_ra>
// kernel: adaptive_ss2d_forward.1
= control target key start
LH: loop header
LB: loop body
LE: loop exit
PB: predicated region body
PF: predicated region fallthrough
CT: control target
= control target key end

     0   :  { %13 = vsyncpa [#allocation5], 0  ;;  %s8430_s0 = inlined_call_operand.vmem [shape: f32[2,256,16], index: 0, kind: input, shape index: {}]   ;;  %s8431_s1 = inlined_call_operand.vmem [shape: f32[16,64], index: 1, kind: input, shape index: {}]   ;;  %s8432_s2 = inlined_call_operand.vmem [shape: f32[3,3,32], index: 2, kind: input, shape index: {}]   ;;  %s8433_s3 = inlined_call_operand.vmem [shape: f32[1,32], index: 3, kind: input, shape index: {}]   ;;  %s8434_s4 = inlined_call_operand.vmem [shape: f32[256,256], index: 4, kind: input, shape index: {}]   ;;  %s8435_s5 = inlined_call_operand.vmem [shape: f32[1,32], index: 5, kind: input, shape index: {}]   ;;  %s8436_s6 = inlined_call_operand.vmem [shape: f32[1,32], index: 6, kind: input, shape index: {}]   ;;  %s8437_s7 = inlined_call_operand.vmem [shape: f32[32,16], index: 7, kind: input, shape index: {}]   ;;  %s8438_s8 = inlined_call_operand.hbm [shape: f32[2,256,16], index: 8, kind: output, shape index: {}]  }
   0x1   :  { %15 = vsyncpa [#allocation5 + $0x1], 0  ;;  %s5390_s27 = smov 0   ;;  %s5392_s28 = smov 0  }
   0x2   :  { %s5394_s29 = smov 0   ;;  %s5396_s30 = smov 0  }
   0x3 LB: > { %s5411_s9 = sadd.s32 4294967295, %s5338_s30   ;;  %s4430_s10 = sadd.s32 4294967294, %s5338_s30   ;;  %s5338_s30 = sphi %s5396_s30, %s8642_s30   ;;  %s5334_s29 = sphi %s5394_s29, %s8641_s29   ;;  %s5330_s28 = sphi %s5392_s28, %s8640_s28   ;;  %s5326_s27 = sphi %s5390_s27, %s8639_s27  }
   0x4   : > { %s5415_s11 = sadd.s32 1, %s5338_s30   ;;  %s201_s12 = sadd.s32 1, %s5334_s29 }
   0x5   : > { %s198_s13 = ssub.s32 %s5338_s30, %s5415_s11  ;;  %p211_p0 = scmp.ne.s32.totalorder %s5334_s29, %s5330_s28 }
   0x6   : > { %p199_p1 = scmp.eq.s32.totalorder %s198_s13, 0  ;;  %p212_p2 = scmp.eq.s32.totalorder %s5411_s9, 1 }
   0x7   : > { %p217_p3 = scmp.ne.s32.totalorder %s5330_s28, %s5326_s27  ;;  %p218_p4 = scmp.eq.s32.totalorder %s4430_s10, 1 }
   0x8   : > { %s5426_s14 = scalar_select %p199_p1, %s5334_s29, %s201_s12  }
   0x9   : > { %p5428_p5 = por %p212_p2, %p211_p0  ;;  %p5432_p6 = por %p218_p4, %p217_p3 }
   0xa   : > { %p4433_p7 = scmp.ge.s32.totalorder %s5338_s30, 1  ;;  %p265_p8 = scmp.lt.s32.totalorder %s5338_s30, 3 }
   0xc   : > { %p266_p9 = pnand %p4433_p7, %p265_p8 }
   0xe   : > { %269 = sbr.rel (%p266_p9) target bundleno = 1777 (0x6f1), region = 52 }
  0x13   : > { %v337_v0 = vld [vmem:[%s8431_s1 + $0x8] sm:$0xff]  ;;  %v336_v1 = vld [vmem:[%s8431_s1] sm:$0xff]  ;;  %p299_p10 = scmp.lt.s32.totalorder %s5411_s9, 1  ;;  %vm338_vm0 = vcmask 130048   ;;  %vm660_vm1 = vcmask 523264   ;;  %vm1382_vm2 = vcmask 261120  }
  0x14   : > { %4645 = vmatprep.subr.mxu0 %v337_v0  ;;  %vm1385_vm3 = vcmask 254976   ;;  %s4574_s24 = sshll.u32 %s5411_s9, 12  ;;  %s5342_s17 = smov [#allocation4]  }
  0x15   : > { %4646 = vmatpush3.msra.mxu0 %v337_v0  ;;  %s300_s21 = scalar_select %p299_p10, %s5411_s9, 1 }
  0x16   : > { %4647 = vmatprep.subr.mxu0 %v336_v1  ;;  %s8380_s12 = scalar_lea.hbm %s8438_s8, %s4574_s24  ;;  %s5282_s18 = sshll.u32 %s5342_s17, 4  ;;  %s5283_s18 = int_to_ptr.vmem [resolvable:$false] %s5282_s18 }
  0x17   : > { %4648 = vmatpush3.msra.mxu0 %v336_v1  ;;  %s4573_s22 = sshll.u32 %s300_s21, 8  ;;  %s5341_s21 = smov 96  }
  0x18   : > { %s5449_s25 = scalar_lea.vmem %s8430_s0, %s4573_s22  ;;  %s5284_s19 = scalar_lea.vmem %s5283_s18, 8192 }
  0x19   : > { %v304_v2 = vld [vmem:[%s5449_s25] sm:$0xff]  ;;  %v305_v3 = vld [vmem:[%s5449_s25 + $0x8] sm:$0xff]  ;;  %v306_v4 = vld [vmem:[%s5449_s25 + $0x10] sm:$0xff] }
  0x1a   : > { %4649 = vmatprep.mubr.msk.f32.mxu0 %vm338_vm0, %v304_v2  ;;  %v307_v5 = vld [vmem:[%s5449_s25 + $0x18] sm:$0xff]  ;;  %v308_v6 = vld [vmem:[%s5449_s25 + $0x20] sm:$0xff]  ;;  %v309_v7 = vld [vmem:[%s5449_s25 + $0x28] sm:$0xff] }
  0x1b   : > { %4650 = vmatmul.mubr.msk.f32.vlgmr.msra.gmra.mxu0 %vm338_vm0, %v305_v3  ;;  %v310_v8 = vld [vmem:[%s5449_s25 + $0x30] sm:$0xff]  ;;  %v311_v9 = vld [vmem:[%s5449_s25 + $0x38] sm:$0xff]  ;;  %v312_v10 = vld [vmem:[%s5449_s25 + $0x40] sm:$0xff] }
  0x1c   : > { %4652 = vmatprep.mubr.msk.f32.mxu0 %vm338_vm0, %v306_v4  ;;  %v313_v11 = vld [vmem:[%s5449_s25 + $0x48] sm:$0xff]  ;;  %v314_v12 = vld [vmem:[%s5449_s25 + $0x50] sm:$0xff]  ;;  %v315_v13 = vld [vmem:[%s5449_s25 + $0x58] sm:$0xff] }
  0x1d   : > { %v316_v14 = vld [vmem:[%s5449_s25 + $0x60] sm:$0xff]  ;;  %v317_v15 = vld [vmem:[%s5449_s25 + $0x68] sm:$0xff]  ;;  %v318_v16 = vld [vmem:[%s5449_s25 + $0x70] sm:$0xff] }
  0x1e   : > { %v319_v17 = vld [vmem:[%s5449_s25 + $0x78] sm:$0xff]  ;;  %v320_v18 = vld [vmem:[%s5449_s25 + $0x80] sm:$0xff]  ;;  %v321_v19 = vld [vmem:[%s5449_s25 + $0x88] sm:$0xff] }
  0x1f   : > { %4653 = vmatmul.mubr.msk.f32.gmra.mxu0 %vm338_vm0, %v307_v5  ;;  %v322_v20 = vld [vmem:[%s5449_s25 + $0x90] sm:$0xff]  ;;  %v323_v21 = vld [vmem:[%s5449_s25 + $0x98] sm:$0xff]  ;;  %v324_v22 = vld [vmem:[%s5449_s25 + $0xa0] sm:$0xff] }
  0x20   : > { %4655 = vmatprep.mubr.msk.f32.mxu0 %vm338_vm0, %v308_v6  ;;  %v325_v23 = vld [vmem:[%s5449_s25 + $0xa8] sm:$0xff]  ;;  %v326_v24 = vld [vmem:[%s5449_s25 + $0xb0] sm:$0xff]  ;;  %v327_v25 = vld [vmem:[%s5449_s25 + $0xb8] sm:$0xff] }
  0x21   : > { %v328_v26 = vld [vmem:[%s5449_s25 + $0xc0] sm:$0xff]  ;;  %v329_v27 = vld [vmem:[%s5449_s25 + $0xc8] sm:$0xff]  ;;  %v330_v28 = vld [vmem:[%s5449_s25 + $0xd0] sm:$0xff] }
  0x22   : > { %v331_v29 = vld [vmem:[%s5449_s25 + $0xd8] sm:$0xff]  ;;  %v332_v30 = vld [vmem:[%s5449_s25 + $0xe0] sm:$0xff]  ;;  %v333_v31 = vld [vmem:[%s5449_s25 + $0xe8] sm:$0xff] }
  0x23   : > { %4656 = vmatmul.mubr.msk.f32.gmra.mxu0 %vm338_vm0, %v309_v7  ;;  %v334_v32 = vld [vmem:[%s5449_s25 + $0xf0] sm:$0xff]  ;;  %v335_v33 = vld [vmem:[%s5449_s25 + $0xf8] sm:$0xff] }
  0x24   : > { %4658 = vmatprep.mubr.msk.f32.mxu0 %vm338_vm0, %v310_v8 }
  0x27   : > { %4659 = vmatmul.mubr.msk.f32.gmra.mxu0 %vm338_vm0, %v311_v9 }
  0x28   : > { %4661 = vmatprep.mubr.msk.f32.mxu0 %vm338_vm0, %v312_v10 }
  0x2b   : > { %4662 = vmatmul.mubr.msk.f32.gmra.mxu0 %vm338_vm0, %v313_v11 }
  0x2c   : > { %4664 = vmatprep.mubr.msk.f32.mxu0 %vm338_vm0, %v314_v12 }
  0x2f   : > { %4665 = vmatmul.mubr.msk.f32.gmra.mxu0 %vm338_vm0, %v315_v13 }
  0x30   : > { %4667 = vmatprep.mubr.msk.f32.mxu0 %vm338_vm0, %v316_v14 }
  0x33   : > { %4668 = vmatmul.mubr.msk.f32.gmra.mxu0 %vm338_vm0, %v317_v15 }
  0x34   : > { %4670 = vmatprep.mubr.msk.f32.mxu0 %vm338_vm0, %v318_v16 }
  0x37   : > { %4671 = vmatmul.mubr.msk.f32.gmra.mxu0 %vm338_vm0, %v319_v17 }
  0x38   : > { %4673 = vmatprep.mubr.msk.f32.mxu0 %vm338_vm0, %v320_v18 }
  0x3b   : > { %4674 = vmatmul.mubr.msk.f32.gmra.mxu0 %vm338_vm0, %v321_v19 }
  0x3c   : > { %4676 = vmatprep.mubr.msk.f32.mxu0 %vm338_vm0, %v322_v20 }
  0x3f   : > { %4677 = vmatmul.mubr.msk.f32.gmra.mxu0 %vm338_vm0, %v323_v21 }
  0x40   : > { %4679 = vmatprep.mubr.msk.f32.mxu0 %vm338_vm0, %v324_v22 }
  0x43   : > { %4680 = vmatmul.mubr.msk.f32.gmra.mxu0 %vm338_vm0, %v325_v23 }
  0x44   : > { %4682 = vmatprep.mubr.msk.f32.mxu0 %vm338_vm0, %v326_v24 }
  0x47   : > { %4683 = vmatmul.mubr.msk.f32.gmra.mxu0 %vm338_vm0, %v327_v25 }
  0x48   : > { %4685 = vmatprep.mubr.msk.f32.mxu0 %vm338_vm0, %v328_v26 }
  0x4b   : > { %4686 = vmatmul.mubr.msk.f32.gmra.mxu0 %vm338_vm0, %v329_v27 }
  0x4c   : > { %4688 = vmatprep.mubr.msk.f32.mxu0 %vm338_vm0, %v330_v28 }
  0x4f   : > { %4689 = vmatmul.mubr.msk.f32.gmra.mxu0 %vm338_vm0, %v331_v29 }
  0x50   : > { %4691 = vmatprep.mubr.msk.f32.mxu0 %vm338_vm0, %v332_v30 }
  0x53   : > { %4692 = vmatmul.mubr.msk.f32.gmra.mxu0 %vm338_vm0, %v333_v31 }
  0x54   : > { %4694 = vmatprep.mubr.msk.f32.mxu0 %vm338_vm0, %v334_v32 }
  0x57   : > { %4695 = vmatmul.mubr.msk.f32.gmra.mxu0 %vm338_vm0, %v335_v33 }
  0xdb   : > { %v5515_v34 = vpop.f32.mrf.mxu0 }
  0xdc   : > { %v664_v10 = vsel %vm660_vm1, %v5515_v34, 0.0 }
  0xdd   : > { %v5517_v35 = vpop.f32.mrf.mxu0 }
  0xde   : > { %v661_v14 = vsel %vm660_vm1, %v5517_v35, 0.0 }
  0xdf   : > { %v5519_v36 = vpop.f32.mrf.mxu0 }
  0xe0   : > { %v670_v6 = vsel %vm660_vm1, %v5519_v36, 0.0 }
  0xe1   : > { %v5521_v37 = vpop.f32.mrf.mxu0 }
  0xe2   : > { %v667_v11 = vsel %vm660_vm1, %v5521_v37, 0.0 }
  0xe3   : > { %v5523_v38 = vpop.f32.mrf.mxu0 }
  0xe4   : > { %8510 = vst [vmem:[#allocation7_spill] sm:$0xff] %v5523_v38  ;;  %v676_v2 = vsel %vm660_vm1, %v5523_v38, 0.0 }
  0xe5   : > { %v5525_v39 = vpop.f32.mrf.mxu0 }
  0xe6   : > { %v673_v7 = vsel %vm660_vm1, %v5525_v39, 0.0 }
  0xe7   : > { %v5527_v40 = vpop.f32.mrf.mxu0 }
  0xe8   : > { %8511 = vst [vmem:[#allocation8_spill] sm:$0xff] %v5527_v40  ;;  %v682_v58 = vsel %vm660_vm1, %v5527_v40, 0.0 }
  0xe9   : > { %v5529_v41 = vpop.f32.mrf.mxu0 }
  0xea   : > { %8512 = vst [vmem:[#allocation9_spill] sm:$0xff] %v5529_v41  ;;  %v679_v62 = vsel %vm660_vm1, %v5529_v41, 0.0 }
  0xeb   : > { %v5531_v42 = vpop.f32.mrf.mxu0 }
  0xec   : > { %v688_v43 = vsel %vm660_vm1, %v5531_v42, 0.0 }
  0xed   : > { %689 = vadd.xlane.f32.xlu1 %v688_v43  ;;  %v5535_v44 = vpop.f32.mrf.mxu0 }
  0xee   : > { %v685_v45 = vsel %vm660_vm1, %v5535_v44, 0.0 }
  0xef   : > { %686 = vadd.xlane.f32.xlu0 %v685_v45  ;;  %v5539_v46 = vpop.f32.mrf.mxu0 }
  0xf0   : > { %v694_v47 = vsel %vm660_vm1, %v5539_v46, 0.0 }
  0xf1   : > { %695 = vadd.xlane.f32.xlu1 %v694_v47  ;;  %v5543_v48 = vpop.f32.mrf.mxu0 }
  0xf2   : > { %v691_v50 = vsel %vm660_vm1, %v5543_v48, 0.0 }
  0xf3   : > { %v5545_v49 = vpop.f32.mrf.mxu0 }
  0xf4   : > { %v700_v51 = vsel %vm660_vm1, %v5545_v49, 0.0 }
  0xf5   : > { %692 = vadd.xlane.f32.xlu1 %v691_v50  ;;  %701 = vadd.xlane.f32.xlu0 %v700_v51  ;;  %v5551_v52 = vpop.f32.mrf.mxu0 }
  0xf6   : > { %v697_v54 = vsel %vm660_vm1, %v5551_v52, 0.0 }
  0xf7   : > { %v5553_v53 = vpop.f32.mrf.mxu0 }
  0xf8   : > { %v706_v55 = vsel %vm660_vm1, %v5553_v53, 0.0 }
  0xf9   : > { %698 = vadd.xlane.f32.xlu0 %v697_v54  ;;  %707 = vadd.xlane.f32.xlu1 %v706_v55  ;;  %v5559_v56 = vpop.f32.mrf.mxu0 }
  0xfa   : > { %v703_v59 = vsel %vm660_vm1, %v5559_v56, 0.0 }
  0xfb   : > { %v5561_v57 = vpop.f32.mrf.mxu0 }
  0xfc   : > { %v712_v63 = vsel %vm660_vm1, %v5561_v57, 0.0 }
  0xfd   : > { %683 = vadd.xlane.f32.xlu1 %v682_v58  ;;  %704 = vadd.xlane.f32.xlu0 %v703_v59  ;;  %v5567_v60 = vpop.f32.mrf.mxu0 }
  0xfe   : > { %v709_v3 = vsel %vm660_vm1, %v5567_v60, 0.0 }
  0xff   : > { %v5569_v61 = vpop.f32.mrf.mxu0 }
 0x100   : > { %8513 = vst [vmem:[#allocation10_spill] sm:$0xff] %v5569_v61  ;;  %v718_v31 = vsel %vm660_vm1, %v5569_v61, 0.0 }
 0x101   : > { %680 = vadd.xlane.f32.xlu0 %v679_v62  ;;  %713 = vadd.xlane.f32.xlu1 %v712_v63  ;;  %v5575_v0 = vpop.f32.mrf.mxu0 }
 0x102   : > { %8514 = vst [vmem:[#allocation11_spill] sm:$0xff] %v5575_v0  ;;  %v715_v33 = vsel %vm660_vm1, %v5575_v0, 0.0 }
 0x103   : > { %v5577_v1 = vpop.f32.mrf.mxu0 }
 0x104   : > { %8515 = vst [vmem:[#allocation12_spill] sm:$0xff] %v5577_v1  ;;  %v724_v29 = vsel %vm660_vm1, %v5577_v1, 0.0 }
 0x105   : > { %677 = vadd.xlane.f32.xlu1 %v676_v2  ;;  %710 = vadd.xlane.f32.xlu0 %v709_v3  ;;  %v5583_v4 = vpop.f32.mrf.mxu0 }
 0x106   : > { %8516 = vst [vmem:[#allocation13_spill] sm:$0xff] %v5583_v4  ;;  %v721_v32 = vsel %vm660_vm1, %v5583_v4, 0.0 }
 0x107   : > { %v5585_v5 = vpop.f32.mrf.mxu0 }
 0x108   : > { %8517 = vst [vmem:[#allocation14_spill] sm:$0xff] %v5585_v5  ;;  %v730_v27 = vsel %vm660_vm1, %v5585_v5, 0.0 }
 0x109   : > { %671 = vadd.xlane.f32.xlu1 %v670_v6  ;;  %674 = vadd.xlane.f32.xlu0 %v673_v7  ;;  %v5591_v8 = vpop.f32.mrf.mxu0 }
 0x10a   : > { %8518 = vst [vmem:[#allocation15_spill] sm:$0xff] %v5591_v8  ;;  %v727_v30 = vsel %vm660_vm1, %v5591_v8, 0.0 }
 0x10b   : > { %v5593_v9 = vpop.f32.mrf.mxu0 }
 0x10c   : > { %8519 = vst [vmem:[#allocation16_spill] sm:$0xff] %v5593_v9  ;;  %v736_v25 = vsel %vm660_vm1, %v5593_v9, 0.0 }
 0x10d   : > { %665 = vadd.xlane.f32.xlu1 %v664_v10  ;;  %668 = vadd.xlane.f32.xlu0 %v667_v11  ;;  %v5599_v12 = vpop.f32.mrf.mxu0 }
 0x10e   : > { %8520 = vst [vmem:[#allocation17_spill] sm:$0xff] %v5599_v12  ;;  %v733_v28 = vsel %vm660_vm1, %v5599_v12, 0.0 }
 0x10f   : > { %v5601_v13 = vpop.f32.mrf.mxu0 }
 0x110   : > { %8521 = vst [vmem:[#allocation18_spill] sm:$0xff] %v5601_v13  ;;  %v742_v15 = vsel %vm660_vm1, %v5601_v13, 0.0 }
 0x111   : > { %662 = vadd.xlane.f32.xlu0 %v661_v14  ;;  %743 = vadd.xlane.f32.xlu1 %v742_v15  ;;  %v5607_v16 = vpop.f32.mrf.mxu0 }
 0x112   : > { %v739_v18 = vsel %vm660_vm1, %v5607_v16, 0.0 }
 0x113   : > { %v5609_v17 = vpop.f32.mrf.mxu0 }
 0x114   : > { %8522 = vst [vmem:[#allocation19_spill] sm:$0xff] %v5609_v17  ;;  %v748_v19 = vsel %vm660_vm1, %v5609_v17, 0.0 }
 0x115   : > { %740 = vadd.xlane.f32.xlu0 %v739_v18  ;;  %749 = vadd.xlane.f32.xlu1 %v748_v19  ;;  %v5615_v20 = vpop.f32.mrf.mxu0 }
 0x116   : > { %8523 = vst [vmem:[#allocation20_spill] sm:$0xff] %v5615_v20  ;;  %v745_v22 = vsel %vm660_vm1, %v5615_v20, 0.0 }
 0x117   : > { %v5617_v21 = vpop.f32.mrf.mxu0 }
 0x118   : > { %8524 = vst [vmem:[#allocation21_spill] sm:$0xff] %v5617_v21  ;;  %v754_v23 = vsel %vm660_vm1, %v5617_v21, 0.0 }
 0x119   : > { %746 = vadd.xlane.f32.xlu0 %v745_v22  ;;  %755 = vadd.xlane.f32.xlu1 %v754_v23  ;;  %v5623_v24 = vpop.f32.mrf.mxu0 }
 0x11a   : > { %8525 = vst [vmem:[#allocation22_spill] sm:$0xff] %v5623_v24  ;;  %v751_v26 = vsel %vm660_vm1, %v5623_v24, 0.0 }
 0x11d   : > { %737 = vadd.xlane.f32.xlu1 %v736_v25  ;;  %752 = vadd.xlane.f32.xlu0 %v751_v26 }
 0x121   : > { %731 = vadd.xlane.f32.xlu1 %v730_v27  ;;  %734 = vadd.xlane.f32.xlu0 %v733_v28 }
 0x125   : > { %725 = vadd.xlane.f32.xlu1 %v724_v29  ;;  %728 = vadd.xlane.f32.xlu0 %v727_v30 }
 0x129   : > { %719 = vadd.xlane.f32.xlu1 %v718_v31  ;;  %722 = vadd.xlane.f32.xlu0 %v721_v32 }
 0x12d   : > { %716 = vadd.xlane.f32.xlu0 %v715_v33 }
 0x176   : > { %v690_v43 = vpop.xlane.xlu1 %689 }
 0x177   : > { %v767_v45 = vmul.f32 0.015625, %v690_v43 }
 0x178   : > { %v687_v47 = vpop.xlane.xlu0 %686 }
 0x179   : > { %v766_v50 = vmul.f32 0.015625, %v687_v47  ;;  %v799_v51 = vsub.f32 %v5531_v42, %v767_v45 }
 0x17a   : > { %v696_v54 = vpop.xlane.xlu1 %695 }
 0x17b   : > { %v769_v55 = vmul.f32 0.015625, %v696_v54  ;;  %v831_v58 = vmul.f32 %v799_v51, %v799_v51  ;;  %v798_v59 = vsub.f32 %v5535_v44, %v766_v50 }
 0x17d   : > { %v881_v62 = vsel %vm660_vm1, %v831_v58, 0.0  ;;  %v830_v63 = vmul.f32 %v798_v59, %v798_v59  ;;  %v801_v2 = vsub.f32 %v5539_v46, %v769_v55 }
 0x17e   : > { %v693_v3 = vpop.xlane.xlu1 %692  ;;  %v702_v6 = vpop.xlane.xlu0 %701  ;;  %882 = vadd.xlane.f32.xlu1 %v881_v62 }
 0x17f   : > { %v768_v7 = vmul.f32 0.015625, %v693_v3  ;;  %v771_v10 = vmul.f32 0.015625, %v702_v6  ;;  %v878_v11 = vsel %vm660_vm1, %v830_v63, 0.0  ;;  %v833_v14 = vmul.f32 %v801_v2, %v801_v2 }
 0x180   : > { %879 = vadd.xlane.f32.xlu0 %v878_v11 }
 0x181   : > { %v887_v15 = vsel %vm660_vm1, %v833_v14, 0.0  ;;  %v803_v18 = vsub.f32 %v5545_v49, %v771_v10  ;;  %v800_v19 = vsub.f32 %v5543_v48, %v768_v7 }
 0x182   : > { %v699_v22 = vpop.xlane.xlu0 %698  ;;  %v708_v23 = vpop.xlane.xlu1 %707  ;;  %888 = vadd.xlane.f32.xlu1 %v887_v15 }
 0x183   : > { %v770_v25 = vmul.f32 0.015625, %v699_v22  ;;  %v773_v26 = vmul.f32 0.015625, %v708_v23  ;;  %v835_v27 = vmul.f32 %v803_v18, %v803_v18  ;;  %v832_v28 = vmul.f32 %v800_v19, %v800_v19 }
 0x185   : > { %v893_v29 = vsel %vm660_vm1, %v835_v27, 0.0  ;;  %v884_v30 = vsel %vm660_vm1, %v832_v28, 0.0  ;;  %v805_v31 = vsub.f32 %v5553_v53, %v773_v26  ;;  %v802_v32 = vsub.f32 %v5551_v52, %v770_v25 }
 0x186   : > { %v684_v33 = vpop.xlane.xlu1 %683  ;;  %v705_v43 = vpop.xlane.xlu0 %704  ;;  %894 = vadd.xlane.f32.xlu1 %v893_v29  ;;  %885 = vadd.xlane.f32.xlu0 %v884_v30 }
 0x187   : > { %v765_v45 = vmul.f32 0.015625, %v684_v33  ;;  %v772_v47 = vmul.f32 0.015625, %v705_v43  ;;  %v837_v50 = vmul.f32 %v805_v31, %v805_v31  ;;  %v834_v51 = vmul.f32 %v802_v32, %v802_v32 }
 0x189   : > { %v899_v54 = vsel %vm660_vm1, %v837_v50, 0.0  ;;  %v890_v55 = vsel %vm660_vm1, %v834_v51, 0.0  ;;  %v797_v58 = vsub.f32 %v5527_v40, %v765_v45  ;;  %v804_v59 = vsub.f32 %v5559_v56, %v772_v47 }
 0x18a   : > { %v681_v62 = vpop.xlane.xlu0 %680  ;;  %v714_v63 = vpop.xlane.xlu1 %713  ;;  %900 = vadd.xlane.f32.xlu1 %v899_v54  ;;  %891 = vadd.xlane.f32.xlu0 %v890_v55 }
 0x18b   : > { %v764_v2 = vmul.f32 0.015625, %v681_v62  ;;  %v775_v3 = vmul.f32 0.015625, %v714_v63  ;;  %v829_v6 = vmul.f32 %v797_v58, %v797_v58  ;;  %v836_v7 = vmul.f32 %v804_v59, %v804_v59 }
 0x18d   : > { %v875_v10 = vsel %vm660_vm1, %v829_v6, 0.0  ;;  %v896_v11 = vsel %vm660_vm1, %v836_v7, 0.0  ;;  %v807_v14 = vsub.f32 %v5561_v57, %v775_v3  ;;  %v796_v15 = vsub.f32 %v5529_v41, %v764_v2 }
 0x18e   : > { %v678_v18 = vpop.xlane.xlu1 %677  ;;  %v711_v19 = vpop.xlane.xlu0 %710  ;;  %876 = vadd.xlane.f32.xlu1 %v875_v10  ;;  %897 = vadd.xlane.f32.xlu0 %v896_v11 }
 0x18f   : > { %v763_v22 = vmul.f32 0.015625, %v678_v18  ;;  %v774_v23 = vmul.f32 0.015625, %v711_v19  ;;  %v839_v25 = vmul.f32 %v807_v14, %v807_v14  ;;  %v828_v26 = vmul.f32 %v796_v15, %v796_v15 }
 0x191   : > { %v905_v27 = vsel %vm660_vm1, %v839_v25, 0.0  ;;  %v872_v28 = vsel %vm660_vm1, %v828_v26, 0.0  ;;  %v795_v29 = vsub.f32 %v5523_v38, %v763_v22  ;;  %v806_v30 = vsub.f32 %v5567_v60, %v774_v23 }
 0x192   : > { %v672_v31 = vpop.xlane.xlu1 %671  ;;  %v675_v32 = vpop.xlane.xlu0 %674  ;;  %906 = vadd.xlane.f32.xlu1 %v905_v27  ;;  %873 = vadd.xlane.f32.xlu0 %v872_v28 }
 0x193   : > { %v761_v33 = vmul.f32 0.015625, %v672_v31  ;;  %v762_v43 = vmul.f32 0.015625, %v675_v32  ;;  %v827_v45 = vmul.f32 %v795_v29, %v795_v29  ;;  %v838_v47 = vmul.f32 %v806_v30, %v806_v30 }
 0x195   : > { %v869_v50 = vsel %vm660_vm1, %v827_v45, 0.0  ;;  %v902_v51 = vsel %vm660_vm1, %v838_v47, 0.0  ;;  %v793_v54 = vsub.f32 %v5519_v36, %v761_v33  ;;  %v794_v55 = vsub.f32 %v5525_v39, %v762_v43 }
 0x196   : > { %v666_v58 = vpop.xlane.xlu1 %665  ;;  %v669_v59 = vpop.xlane.xlu0 %668  ;;  %870 = vadd.xlane.f32.xlu1 %v869_v50  ;;  %903 = vadd.xlane.f32.xlu0 %v902_v51 }
 0x197   : > { %v759_v62 = vmul.f32 0.015625, %v666_v58  ;;  %v760_v63 = vmul.f32 0.015625, %v669_v59  ;;  %v825_v2 = vmul.f32 %v793_v54, %v793_v54  ;;  %v826_v3 = vmul.f32 %v794_v55, %v794_v55 }
 0x199   : > { %v863_v6 = vsel %vm660_vm1, %v825_v2, 0.0  ;;  %v866_v7 = vsel %vm660_vm1, %v826_v3, 0.0  ;;  %v791_v10 = vsub.f32 %v5515_v34, %v759_v62  ;;  %v792_v11 = vsub.f32 %v5521_v37, %v760_v63 }
 0x19a   : > { %v663_v14 = vpop.xlane.xlu0 %662  ;;  %v744_v15 = vpop.xlane.xlu1 %743  ;;  %864 = vadd.xlane.f32.xlu1 %v863_v6  ;;  %867 = vadd.xlane.f32.xlu0 %v866_v7 }
 0x19b   : > { %v758_v18 = vmul.f32 0.015625, %v663_v14  ;;  %v785_v19 = vmul.f32 0.015625, %v744_v15  ;;  %v823_v22 = vmul.f32 %v791_v10, %v791_v10  ;;  %v824_v23 = vmul.f32 %v792_v11, %v792_v11 }
 0x19d   : > { %v857_v25 = vsel %vm660_vm1, %v823_v22, 0.0  ;;  %v860_v26 = vsel %vm660_vm1, %v824_v23, 0.0  ;;  %v817_v27 = vsub.f32 %v5601_v13, %v785_v19  ;;  %v790_v28 = vsub.f32 %v5517_v35, %v758_v18 }
 0x19e   : > { %v741_v29 = vpop.xlane.xlu0 %740  ;;  %v750_v30 = vpop.xlane.xlu1 %749  ;;  %858 = vadd.xlane.f32.xlu1 %v857_v25  ;;  %861 = vadd.xlane.f32.xlu0 %v860_v26 }
 0x19f   : > { %v784_v31 = vmul.f32 0.015625, %v741_v29  ;;  %v787_v32 = vmul.f32 0.015625, %v750_v30  ;;  %v849_v33 = vmul.f32 %v817_v27, %v817_v27  ;;  %v822_v43 = vmul.f32 %v790_v28, %v790_v28 }
 0x1a1   : > { %v935_v45 = vsel %vm660_vm1, %v849_v33, 0.0  ;;  %v854_v47 = vsel %vm660_vm1, %v822_v43, 0.0  ;;  %v819_v50 = vsub.f32 %v5609_v17, %v787_v32  ;;  %v816_v51 = vsub.f32 %v5607_v16, %v784_v31 }
 0x1a2   : > { %v747_v54 = vpop.xlane.xlu0 %746  ;;  %936 = vadd.xlane.f32.xlu1 %v935_v45  ;;  %v756_v55 = vpop.xlane.xlu1 %755  ;;  %855 = vadd.xlane.f32.xlu0 %v854_v47 }
 0x1a3   : > { %v786_v58 = vmul.f32 0.015625, %v747_v54  ;;  %v789_v59 = vmul.f32 0.015625, %v756_v55  ;;  %v851_v62 = vmul.f32 %v819_v50, %v819_v50  ;;  %v848_v63 = vmul.f32 %v816_v51, %v816_v51 }
 0x1a5   : > { %v941_v2 = vsel %vm660_vm1, %v851_v62, 0.0  ;;  %v932_v3 = vsel %vm660_vm1, %v848_v63, 0.0  ;;  %v821_v6 = vsub.f32 %v5617_v21, %v789_v59  ;;  %v818_v7 = vsub.f32 %v5615_v20, %v786_v58 }
 0x1a6   : > { %942 = vadd.xlane.f32.xlu1 %v941_v2  ;;  %v738_v10 = vpop.xlane.xlu1 %737  ;;  %933 = vadd.xlane.f32.xlu0 %v932_v3  ;;  %v753_v11 = vpop.xlane.xlu0 %752 }
 0x1a7   : > { %v783_v14 = vmul.f32 0.015625, %v738_v10  ;;  %v788_v15 = vmul.f32 0.015625, %v753_v11  ;;  %v853_v18 = vmul.f32 %v821_v6, %v821_v6  ;;  %v850_v19 = vmul.f32 %v818_v7, %v818_v7 }
 0x1a9   : > { %v947_v22 = vsel %vm660_vm1, %v853_v18, 0.0  ;;  %v938_v23 = vsel %vm660_vm1, %v850_v19, 0.0  ;;  %v815_v25 = vsub.f32 %v5593_v9, %v783_v14  ;;  %v820_v26 = vsub.f32 %v5623_v24, %v788_v15 }
 0x1aa   : > { %948 = vadd.xlane.f32.xlu1 %v947_v22  ;;  %v732_v27 = vpop.xlane.xlu1 %731  ;;  %939 = vadd.xlane.f32.xlu0 %v938_v23  ;;  %v735_v28 = vpop.xlane.xlu0 %734 }
 0x1ab   : > { %v781_v29 = vmul.f32 0.015625, %v732_v27  ;;  %v782_v30 = vmul.f32 0.015625, %v735_v28  ;;  %v847_v31 = vmul.f32 %v815_v25, %v815_v25  ;;  %v852_v32 = vmul.f32 %v820_v26, %v820_v26 }
 0x1ad   : > { %v929_v33 = vsel %vm660_vm1, %v847_v31, 0.0  ;;  %v944_v43 = vsel %vm660_vm1, %v852_v32, 0.0  ;;  %v813_v45 = vsub.f32 %v5585_v5, %v781_v29  ;;  %v814_v47 = vsub.f32 %v5599_v12, %v782_v30 }
 0x1ae   : > { %930 = vadd.xlane.f32.xlu1 %v929_v33  ;;  %v726_v50 = vpop.xlane.xlu1 %725  ;;  %945 = vadd.xlane.f32.xlu0 %v944_v43  ;;  %v729_v51 = vpop.xlane.xlu0 %728  ;;  %v8439_v43 = vmov 0.0  }
 0x1af   : > { %v779_v54 = vmul.f32 0.015625, %v726_v50  ;;  %v780_v55 = vmul.f32 0.015625, %v729_v51  ;;  %v845_v58 = vmul.f32 %v813_v45, %v813_v45  ;;  %v846_v59 = vmul.f32 %v814_v47, %v814_v47  ;;  %1402 = vst.msk [vmem:[#allocation2 + $0x90] sm:$0xff] %vm1382_vm2, %v8439_v43  ;;  %1403 = vst.msk [vmem:[#allocation2 + $0x98] sm:$0xff] %vm1382_vm2, %v8439_v43  ;;  %2893 = vmatprep.subr.mxu0 %v8439_v43 }
 0x1b0   : > { %1404 = vst.msk [vmem:[#allocation2 + $0xa0] sm:$0x3] %vm1385_vm3, %v8439_v43  ;;  %1386 = vst.msk [vmem:[#allocation2 + $0x10] sm:$0x3] %vm1385_vm3, %v8439_v43  ;;  %4753 = vmatprep.subr.mxu1 %v8439_v43 }
 0x1b1   : > { %v923_v62 = vsel %vm660_vm1, %v845_v58, 0.0  ;;  %v926_v63 = vsel %vm660_vm1, %v846_v59, 0.0  ;;  %v811_v2 = vsub.f32 %v5577_v1, %v779_v54  ;;  %v812_v3 = vsub.f32 %v5591_v8, %v780_v55  ;;  %1383 = vst.msk [vmem:[#allocation2] sm:$0xff] %vm1382_vm2, %v8439_v43  ;;  %1384 = vst.msk [vmem:[#allocation2 + $0x8] sm:$0xff] %vm1382_vm2, %v8439_v43 }
 0x1b2   : > { %924 = vadd.xlane.f32.xlu1 %v923_v62  ;;  %v720_v6 = vpop.xlane.xlu1 %719  ;;  %927 = vadd.xlane.f32.xlu0 %v926_v63  ;;  %v723_v7 = vpop.xlane.xlu0 %722  ;;  %1387 = vst.msk [vmem:[#allocation2 + $0x18] sm:$0xff] %vm1382_vm2, %v8439_v43  ;;  %1388 = vst.msk [vmem:[#allocation2 + $0x20] sm:$0xff] %vm1382_vm2, %v8439_v43 }
 0x1b3   : > { %v777_v10 = vmul.f32 0.015625, %v720_v6  ;;  %v778_v11 = vmul.f32 0.015625, %v723_v7  ;;  %v843_v14 = vmul.f32 %v811_v2, %v811_v2  ;;  %v844_v15 = vmul.f32 %v812_v3, %v812_v3  ;;  %1389 = vst.msk [vmem:[#allocation2 + $0x28] sm:$0x3] %vm1385_vm3, %v8439_v43  ;;  %1392 = vst.msk [vmem:[#allocation2 + $0x40] sm:$0x3] %vm1385_vm3, %v8439_v43 }
 0x1b4   : > { %1390 = vst.msk [vmem:[#allocation2 + $0x30] sm:$0xff] %vm1382_vm2, %v8439_v43  ;;  %1391 = vst.msk [vmem:[#allocation2 + $0x38] sm:$0xff] %vm1382_vm2, %v8439_v43 }
 0x1b5   : > { %v917_v18 = vsel %vm660_vm1, %v843_v14, 0.0  ;;  %v920_v19 = vsel %vm660_vm1, %v844_v15, 0.0  ;;  %v809_v22 = vsub.f32 %v5569_v61, %v777_v10  ;;  %v810_v23 = vsub.f32 %v5583_v4, %v778_v11  ;;  %1393 = vst.msk [vmem:[#allocation2 + $0x48] sm:$0xff] %vm1382_vm2, %v8439_v43  ;;  %1394 = vst.msk [vmem:[#allocation2 + $0x50] sm:$0xff] %vm1382_vm2, %v8439_v43 }
 0x1b6   : > { %918 = vadd.xlane.f32.xlu1 %v917_v18  ;;  %921 = vadd.xlane.f32.xlu0 %v920_v19  ;;  %v717_v25 = vpop.xlane.xlu0 %716  ;;  %1395 = vst.msk [vmem:[#allocation2 + $0x58] sm:$0x3] %vm1385_vm3, %v8439_v43  ;;  %1398 = vst.msk [vmem:[#allocation2 + $0x70] sm:$0x3] %vm1385_vm3, %v8439_v43 }
 0x1b7   : > { %v776_v26 = vmul.f32 0.015625, %v717_v25  ;;  %v841_v27 = vmul.f32 %v809_v22, %v809_v22  ;;  %v842_v28 = vmul.f32 %v810_v23, %v810_v23  ;;  %1396 = vst.msk [vmem:[#allocation2 + $0x60] sm:$0xff] %vm1382_vm2, %v8439_v43  ;;  %1397 = vst.msk [vmem:[#allocation2 + $0x68] sm:$0xff] %vm1382_vm2, %v8439_v43 }
 0x1b8   : > { %1399 = vst.msk [vmem:[#allocation2 + $0x78] sm:$0xff] %vm1382_vm2, %v8439_v43  ;;  %1400 = vst.msk [vmem:[#allocation2 + $0x80] sm:$0xff] %vm1382_vm2, %v8439_v43 }
 0x1b9   : > { %v911_v29 = vsel %vm660_vm1, %v841_v27, 0.0  ;;  %v914_v30 = vsel %vm660_vm1, %v842_v28, 0.0  ;;  %v808_v31 = vsub.f32 %v5575_v0, %v776_v26  ;;  %1401 = vst.msk [vmem:[#allocation2 + $0x88] sm:$0x3] %vm1385_vm3, %v8439_v43  ;;  %1407 = vst.msk [vmem:[#allocation2 + $0xb8] sm:$0x3] %vm1385_vm3, %v8439_v43  ;;  %v1731_v28 = vlaneseq }
 0x1ba   : > { %912 = vadd.xlane.f32.xlu1 %v911_v29  ;;  %915 = vadd.xlane.f32.xlu0 %v914_v30  ;;  %1405 = vst.msk [vmem:[#allocation2 + $0xa8] sm:$0xff] %vm1382_vm2, %v8439_v43  ;;  %1406 = vst.msk [vmem:[#allocation2 + $0xb0] sm:$0xff] %vm1382_vm2, %v8439_v43 }
 0x1bb   : > { %v840_v32 = vmul.f32 %v808_v31, %v808_v31  ;;  %1408 = vst.msk [vmem:[#allocation2 + $0xc0] sm:$0xff] %vm1382_vm2, %v8439_v43  ;;  %1409 = vst.msk [vmem:[#allocation2 + $0xc8] sm:$0xff] %vm1382_vm2, %v8439_v43 }
 0x1bc   : > { %1410 = vst.msk [vmem:[#allocation2 + $0xd0] sm:$0x3] %vm1385_vm3, %v8439_v43  ;;  %1413 = vst.msk [vmem:[#allocation2 + $0xe8] sm:$0x3] %vm1385_vm3, %v8439_v43 }
 0x1bd   : > { %v908_v33 = vsel %vm660_vm1, %v840_v32, 0.0  ;;  %1411 = vst.msk [vmem:[#allocation2 + $0xd8] sm:$0xff] %vm1382_vm2, %v8439_v43  ;;  %1412 = vst.msk [vmem:[#allocation2 + $0xe0] sm:$0xff] %vm1382_vm2, %v8439_v43 }
 0x1be   : > { %909 = vadd.xlane.f32.xlu0 %v908_v33  ;;  %1414 = vst.msk [vmem:[#allocation2 + $0xf0] sm:$0xff] %vm1382_vm2, %v8439_v43  ;;  %1415 = vst.msk [vmem:[#allocation2 + $0xf8] sm:$0xff] %vm1382_vm2, %v8439_v43 }
 0x1bf   : > { %1416 = vst.msk [vmem:[#allocation2 + $0x100] sm:$0x3] %vm1385_vm3, %v8439_v43  ;;  %1419 = vst.msk [vmem:[#allocation2 + $0x118] sm:$0x3] %vm1385_vm3, %v8439_v43 }
 0x1c0   : > { %1417 = vst.msk [vmem:[#allocation2 + $0x108] sm:$0xff] %vm1382_vm2, %v8439_v43  ;;  %1418 = vst.msk [vmem:[#allocation2 + $0x110] sm:$0xff] %vm1382_vm2, %v8439_v43 }
 0x1c1   : > { %1420 = vst.msk [vmem:[#allocation2 + $0x120] sm:$0xff] %vm1382_vm2, %v8439_v43  ;;  %1421 = vst.msk [vmem:[#allocation2 + $0x128] sm:$0xff] %vm1382_vm2, %v8439_v43 }
 0x1c2   : > { %1422 = vst.msk [vmem:[#allocation2 + $0x130] sm:$0x3] %vm1385_vm3, %v8439_v43  ;;  %1425 = vst.msk [vmem:[#allocation2 + $0x148] sm:$0x3] %vm1385_vm3, %v8439_v43 }
 0x1c3   : > { %1423 = vst.msk [vmem:[#allocation2 + $0x138] sm:$0xff] %vm1382_vm2, %v8439_v43  ;;  %1424 = vst.msk [vmem:[#allocation2 + $0x140] sm:$0xff] %vm1382_vm2, %v8439_v43 }
 0x1c4   : > { %1426 = vst.msk [vmem:[#allocation2 + $0x150] sm:$0xff] %vm1382_vm2, %v8439_v43  ;;  %1427 = vst.msk [vmem:[#allocation2 + $0x158] sm:$0xff] %vm1382_vm2, %v8439_v43 }
 0x1c5   : > { %1428 = vst.msk [vmem:[#allocation2 + $0x160] sm:$0x3] %vm1385_vm3, %v8439_v43  ;;  %1431 = vst.msk [vmem:[#allocation2 + $0x178] sm:$0x3] %vm1385_vm3, %v8439_v43 }
 0x1c6   : > { %1429 = vst.msk [vmem:[#allocation2 + $0x168] sm:$0xff] %vm1382_vm2, %v8439_v43  ;;  %1430 = vst.msk [vmem:[#allocation2 + $0x170] sm:$0xff] %vm1382_vm2, %v8439_v43 }
 0x1c7   : > { %1432 = vst.msk [vmem:[#allocation2 + $0x180] sm:$0xff] %vm1382_vm2, %v8439_v43  ;;  %1433 = vst.msk [vmem:[#allocation2 + $0x188] sm:$0xff] %vm1382_vm2, %v8439_v43 }
 0x1c8   : > { %1434 = vst.msk [vmem:[#allocation2 + $0x190] sm:$0x3] %vm1385_vm3, %v8439_v43  ;;  %1437 = vst.msk [vmem:[#allocation2 + $0x1a8] sm:$0x3] %vm1385_vm3, %v8439_v43 }
 0x1c9   : > { %1435 = vst.msk [vmem:[#allocation2 + $0x198] sm:$0xff] %vm1382_vm2, %v8439_v43  ;;  %1436 = vst.msk [vmem:[#allocation2 + $0x1a0] sm:$0xff] %vm1382_vm2, %v8439_v43 }
 0x207   : > { %v883_v45 = vpop.xlane.xlu1 %882 }
 0x208   : > { %v959_v50 = vmul.f32 0.015873017, %v883_v45 }
 0x209   : > { %v880_v47 = vpop.xlane.xlu0 %879 }
 0x20a   : > { %v958_v51 = vmul.f32 0.015873017, %v880_v47 }
 0x20b   : > { %v889_v54 = vpop.xlane.xlu1 %888 }
 0x20c   : > { %v1010_v55 = vmax.f32 %v958_v51, %v959_v50  ;;  %v961_v2 = vmul.f32 0.015873017, %v889_v54 }
 0x20e   : > { %v1011_v58 = vrot.slane %v1010_v55, 4 }
 0x20f   : > { %v895_v59 = vpop.xlane.xlu1 %894  ;;  %v886_v62 = vpop.xlane.xlu0 %885 }
 0x210   : > { %v1012_v63 = vmax.f32 %v1010_v55, %v1011_v58  ;;  %v960_v3 = vmul.f32 0.015873017, %v886_v62  ;;  %v5817_v15 = vmul.f32 0.015873017, %v895_v59 }
 0x212   : > { %v1013_v6 = vrot.slane %v1012_v63, 2  ;;  %v1017_v7 = vmax.f32 %v960_v3, %v961_v2 }
 0x213   : > { %v901_v10 = vpop.xlane.xlu1 %900  ;;  %v892_v11 = vpop.xlane.xlu0 %891 }
 0x214   : > { %v1014_v14 = vmax.f32 %v1012_v63, %v1013_v6  ;;  %v1018_v18 = vrot.slane %v1017_v7, 4  ;;  %v5819_v19 = vmul.f32 0.015873017, %v892_v11  ;;  %v5823_v32 = vmul.f32 0.015873017, %v901_v10 }
 0x215   : > { %v1732_v63 = vshrl.u32 %v1731_v28, 7 }
 0x216   : > { %v1015_v22 = vrot.slane %v1014_v14, 1  ;;  %v1019_v23 = vmax.f32 %v1017_v7, %v1018_v18  ;;  %v1024_v25 = vmax.f32 %v5819_v19, %v5817_v15 }
 0x217   : > { %v877_v26 = vpop.xlane.xlu1 %876  ;;  %v898_v27 = vpop.xlane.xlu0 %897  ;;  %v5835_v28 = vsub.s32 0, %v1732_v63 }
 0x218   : > { %v1016_v29 = vmax.f32 %v1014_v14, %v1015_v22  ;;  %v1020_v30 = vrot.slane %v1019_v23, 2  ;;  %v1025_v31 = vrot.slane %v1024_v25, 4  ;;  %v5825_v33 = vmul.f32 0.015873017, %v898_v27 }
 0x219   : > { %v5829_v18 = vmul.f32 0.015873017, %v877_v26  ;;  %v1689_v26 = vld [vmem:[%s8432_s2] sm:$0x7] }
 0x21a   : > { %v1102_v45 = vsub.f32 %v958_v51, %v1016_v29  ;;  %v1103_v47 = vsub.f32 %v959_v50, %v1016_v29  ;;  %v1021_v54 = vmax.f32 %v1019_v23, %v1020_v30  ;;  %v1026_v55 = vmax.f32 %v1024_v25, %v1025_v31 }
 0x21b   : > { %v1031_v58 = vmax.f32 %v5825_v33, %v5823_v32  ;;  %v907_v59 = vpop.xlane.xlu1 %906  ;;  %v874_v62 = vpop.xlane.xlu0 %873  ;;  %v5851_v1 = vrot.slane %v1689_v26, %v5835_v28 }
 0x21c   : > { %v1142_v6 = vmul.f32 1.442695, %v1102_v45  ;;  %v1144_v7 = vmul.f32 1.442695, %v1103_v47  ;;  %v1022_v11 = vrot.slane %v1021_v54, 1  ;;  %v1027_v14 = vrot.slane %v1026_v55, 2 }
 0x21d   : > { %v1032_v10 = vrot.slane %v1031_v58, 4  ;;  %v5831_v22 = vmul.f32 0.015873017, %v874_v62  ;;  %v5840_v47 = vsub.s32 1, %v1732_v63 }
 0x21e   : > { %4860 = vpow2.f32 %v1142_v6  ;;  %v1023_v51 = vmax.f32 %v1021_v54, %v1022_v11  ;;  %v1028_v50 = vmax.f32 %v1026_v55, %v1027_v14  ;;  %v5842_v55 = vmul.f32 0.015873017, %v907_v59 }
 0x21f   : > { %4862 = vpow2.f32 %v1144_v7  ;;  %v1033_v23 = vmax.f32 %v1031_v58, %v1032_v10  ;;  %v1003_v25 = vmax.f32 %v5831_v22, %v5829_v18  ;;  %v871_v27 = vpop.xlane.xlu1 %870  ;;  %v904_v29 = vpop.xlane.xlu0 %903  ;;  %v5846_v14 = vsub.s32 2, %v1732_v63 }
 0x220   : > { %v1104_v30 = vsub.f32 %v960_v3, %v1023_v51  ;;  %v1105_v31 = vsub.f32 %v961_v2, %v1023_v51  ;;  %v1029_v45 = vrot.slane %v1028_v50, 1  ;;  %v5844_v62 = vmul.f32 0.015873017, %v904_v29 }
 0x221   : > { %v1034_v54 = vrot.slane %v1033_v23, 2  ;;  %v1004_v58 = vrot.slane %v1003_v25, 4  ;;  %8526 = vst [vmem:[#allocation23_spill] sm:$0xff] %v5846_v14 }
 0x222   : > { %v1146_v6 = vmul.f32 1.442695, %v1104_v30  ;;  %v1148_v7 = vmul.f32 1.442695, %v1105_v31  ;;  %v1030_v11 = vmax.f32 %v1028_v50, %v1029_v45  ;;  %v1038_v10 = vmax.f32 %v5844_v62, %v5842_v55 }
 0x223   : > { %v1035_v3 = vmax.f32 %v1033_v23, %v1034_v54  ;;  %v1005_v2 = vmax.f32 %v1003_v25, %v1004_v58  ;;  %v865_v51 = vpop.xlane.xlu1 %864  ;;  %v868_v43 = vpop.xlane.xlu0 %867  ;;  %v5855_v30 = vmul.f32 0.015873017, %v871_v27  ;;  %v5860_v54 = vrot.slane %v1689_v26, %v5840_v47 }
 0x224   : > { %4864 = vpow2.f32 %v1146_v6  ;;  %v1106_v59 = vsub.f32 %v5819_v19, %v1030_v11  ;;  %v1107_v29 = vsub.f32 %v5817_v15, %v1030_v11  ;;  %v1039_v23 = vrot.slane %v1038_v10, 4  ;;  %v1690_v15 = vld [vmem:[%s8432_s2 + $0x4] sm:$0x7] }
 0x225   : > { %4866 = vpow2.f32 %v1148_v7  ;;  %v1036_v63 = vrot.slane %v1035_v3, 1  ;;  %v1006_v50 = vrot.slane %v1005_v2, 2  ;;  %v5857_v45 = vmul.f32 0.015873017, %v868_v43 }
 0x226   : > { %v1150_v25 = vmul.f32 1.442695, %v1106_v59  ;;  %v1152_v31 = vmul.f32 1.442695, %v1107_v29  ;;  %v1040_v6 = vmax.f32 %v1038_v10, %v1039_v23  ;;  %v5866_v19 = vrot.slane %v1689_v26, %v5846_v14 }
 0x227   : > { %v1037_v58 = vmax.f32 %v1035_v3, %v1036_v63  ;;  %v1007_v4 = vmax.f32 %v1005_v2, %v1006_v50  ;;  %v862_v61 = vpop.xlane.xlu0 %861  ;;  %v5868_v27 = vmul.f32 0.015873017, %v865_v51  ;;  %v996_v43 = vmax.f32 %v5857_v45, %v5855_v30  ;;  %v859_v7 = vpop.xlane.xlu1 %858 }
 0x228   : > { %8527 = vst [vmem:[#allocation24_spill] sm:$0xff] %v5866_v19  ;;  %4868 = vpow2.f32 %v1150_v25  ;;  %v5872_v11 = vmul.f32 0.015873017, %v862_v61  ;;  %v1041_v59 = vrot.slane %v1040_v6, 2  ;;  %v5879_v51 = vrot.slane %v1690_v15, %v5835_v28 }
 0x229   : > { %4870 = vpow2.f32 %v1152_v31  ;;  %v1108_v3 = vsub.f32 %v5825_v33, %v1037_v58  ;;  %v1109_v2 = vsub.f32 %v5823_v32, %v1037_v58  ;;  %v1008_v10 = vrot.slane %v1007_v4, 1 }
 0x22a   : > { %v997_v29 = vrot.slane %v996_v43, 4  ;;  %v989_v26 = vmax.f32 %v5872_v11, %v5868_v27  ;;  %8528 = vst [vmem:[#allocation25_spill] sm:$0xff] %v5879_v51  ;;  %v5884_v31 = vrot.slane %v1690_v15, %v5840_v47  ;;  %v1042_v32 = vmax.f32 %v1040_v6, %v1041_v59 }
 0x22b   : > { %v5881_v63 = vpop.eup %4860  ;;  %v1154_v50 = vmul.f32 1.442695, %v1108_v3  ;;  %v1156_v23 = vmul.f32 1.442695, %v1109_v2  ;;  %v1009_v61 = vmax.f32 %v1007_v4, %v1008_v10  ;;  %v856_v25 = vpop.xlane.xlu0 %855  ;;  %v5888_v0 = vmul.f32 0.015873017, %v859_v7 }
 0x22c   : > { %8529 = vst [vmem:[#allocation26_spill] sm:$0xff] %v5884_v31  ;;  %v5886_v33 = vpop.eup %4862  ;;  %v998_v58 = vmax.f32 %v996_v43, %v997_v29  ;;  %v990_v5 = vrot.slane %v989_v26, 4  ;;  %v1043_v4 = vrot.slane %v1042_v32, 1  ;;  %v937_v9 = vpop.xlane.xlu1 %936  ;;  %v5895_v7 = vrot.slane %v1690_v15, %v5846_v14 }
 0x22d   : > { %v1218_v8 = vadd.f32 %v5886_v33, %v5881_v63  ;;  %4872 = vpow2.f32 %v1154_v50  ;;  %v1100_v40 = vsub.f32 %v5831_v22, %v1009_v61  ;;  %v1101_v3 = vsub.f32 %v5829_v18, %v1009_v61 }
 0x22e   : > { %4874 = vpow2.f32 %v1156_v23  ;;  %v999_v2 = vrot.slane %v998_v58, 2  ;;  %v991_v10 = vmax.f32 %v989_v26, %v990_v5  ;;  %8530 = vst [vmem:[#allocation27_spill] sm:$0xff] %v5895_v7  ;;  %v1044_v59 = vmax.f32 %v1042_v32, %v1043_v4 }
 0x22f   : > { %v1219_v12 = vrot.slane %v1218_v8, 4  ;;  %v1138_v21 = vmul.f32 1.442695, %v1100_v40  ;;  %v1140_v6 = vmul.f32 1.442695, %v1101_v3  ;;  %v934_v43 = vpop.xlane.xlu0 %933 }
 0x230   : > { %v1000_v29 = vmax.f32 %v998_v58, %v999_v2  ;;  %v992_v24 = vrot.slane %v991_v10, 2  ;;  %v5897_v50 = vmul.f32 0.015873017, %v856_v25  ;;  %v5901_v23 = vmul.f32 0.015873017, %v937_v9 }
 0x231   : > { %v5899_v22 = vpop.eup %4864  ;;  %v1220_v18 = vadd.f32 %v1219_v12, %v1218_v8  ;;  %4876 = vpow2.f32 %v1138_v21  ;;  %v5903_v5 = vmul.f32 0.015873017, %v934_v43  ;;  %v1110_v40 = vsub.f32 %v5844_v62, %v1044_v59 }
 0x232   : > { %v5905_v26 = vpop.eup %4866  ;;  %4878 = vpow2.f32 %v1140_v6  ;;  %v1111_v15 = vsub.f32 %v5842_v55, %v1044_v59  ;;  %v1001_v61 = vrot.slane %v1000_v29, 1  ;;  %v993_v58 = vmax.f32 %v991_v10, %v992_v24 }
 0x233   : > { %v1221_v32 = vrot.slane %v1220_v18, 2  ;;  %v1225_v25 = vadd.f32 %v5905_v26, %v5899_v22  ;;  %v982_v8 = vmax.f32 %v5897_v50, %v5888_v0  ;;  %v1158_v9 = vmul.f32 1.442695, %v1110_v40  ;;  %v940_v51 = vpop.xlane.xlu0 %939 }
 0x234   : > { %v1160_v12 = vmul.f32 1.442695, %v1111_v15  ;;  %v1002_v21 = vmax.f32 %v1000_v29, %v1001_v61  ;;  %v1073_v3 = vmax.f32 %v5903_v5, %v5901_v23  ;;  %v994_v55 = vrot.slane %v993_v58, 1  ;;  %v943_v61 = vpop.xlane.xlu1 %942 }
 0x235   : > { %v5915_v4 = vpop.eup %4868  ;;  %v1222_v62 = vadd.f32 %v1221_v32, %v1220_v18  ;;  %v1226_v2 = vrot.slane %v1225_v25, 4  ;;  %v983_v6 = vrot.slane %v982_v8, 4  ;;  %4880 = vpow2.f32 %v1158_v9 }
 0x236   : > { %v5917_v43 = vpop.eup %4870  ;;  %v1098_v24 = vsub.f32 %v5857_v45, %v1002_v21  ;;  %v1099_v10 = vsub.f32 %v5855_v30, %v1002_v21  ;;  %v1074_v59 = vrot.slane %v1073_v3, 4  ;;  %4882 = vpow2.f32 %v1160_v12 }
 0x237   : > { %v1223_v40 = vrot.slane %v1222_v62, 1  ;;  %v1227_v15 = vadd.f32 %v1226_v2, %v1225_v25  ;;  %v1232_v29 = vadd.f32 %v5917_v43, %v5915_v4  ;;  %v995_v32 = vmax.f32 %v993_v58, %v994_v55 }
 0x238   : > { %v1134_v17 = vmul.f32 1.442695, %v1098_v24  ;;  %v1136_v18 = vmul.f32 1.442695, %v1099_v10  ;;  %v984_v20 = vmax.f32 %v982_v8, %v983_v6  ;;  %v1075_v9 = vmax.f32 %v1073_v3, %v1074_v59 }
 0x239   : > { %v1224_v38 = vadd.f32 %v1223_v40, %v1222_v62  ;;  %v1228_v7 = vrot.slane %v1227_v15, 2  ;;  %v1233_v31 = vrot.slane %v1232_v29, 4  ;;  %v1096_v30 = vsub.f32 %v5872_v11, %v995_v32  ;;  %v949_v11 = vpop.xlane.xlu1 %948 }
 0x23a   : > { %v5923_v45 = vpop.eup %4872  ;;  %4884 = vpow2.f32 %v1134_v17  ;;  %v1097_v25 = vsub.f32 %v5868_v27, %v995_v32  ;;  %v985_v21 = vrot.slane %v984_v20, 2  ;;  %v1076_v58 = vrot.slane %v1075_v9, 2 }
 0x23b   : > { %v5927_v2 = vpop.eup %4874  ;;  %4886 = vrcp.f32 %v1224_v38  ;;  %v1229_v12 = vadd.f32 %v1228_v7, %v1227_v15  ;;  %v1234_v24 = vadd.f32 %v1233_v31, %v1232_v29  ;;  %v1130_v3 = vmul.f32 1.442695, %v1096_v30 }
 0x23c   : > { %v1239_v8 = vadd.f32 %v5927_v2, %v5923_v45  ;;  %4888 = vpow2.f32 %v1136_v18  ;;  %v1132_v62 = vmul.f32 1.442695, %v1097_v25  ;;  %v986_v17 = vmax.f32 %v984_v20, %v985_v21  ;;  %v946_v18 = vpop.xlane.xlu0 %945 }
 0x23d   : > { %v1230_v55 = vrot.slane %v1229_v12, 1  ;;  %v1235_v6 = vrot.slane %v1234_v24, 2  ;;  %v1077_v10 = vmax.f32 %v1075_v9, %v1076_v58  ;;  %4890 = vpow2.f32 %v1130_v3 }
 0x23e   : > { %v5931_v59 = vpop.eup %4876  ;;  %v1240_v27 = vrot.slane %v1239_v8, 4  ;;  %v5933_v40 = vmul.f32 0.015873017, %v943_v61  ;;  %v5935_v38 = vmul.f32 0.015873017, %v940_v51  ;;  %4892 = vpow2.f32 %v1132_v62 }
 0x23f   : > { %8531 = vst [vmem:[#allocation28_spill] sm:$0xff] %v5931_v59  ;;  %v5937_v31 = vpop.eup %4878  ;;  %v1231_v7 = vadd.f32 %v1230_v55, %v1229_v12  ;;  %v1236_v15 = vadd.f32 %v1235_v6, %v1234_v24  ;;  %v987_v29 = vrot.slane %v986_v17, 1  ;;  %v1078_v9 = vrot.slane %v1077_v10, 1  ;;  %v931_v6 = vpop.xlane.xlu1 %930 }
 0x240   : > { %8532 = vst [vmem:[#allocation29_spill] sm:$0xff] %v5937_v31  ;;  %v1241_v32 = vadd.f32 %v1240_v27, %v1239_v8  ;;  %v1211_v20 = vadd.f32 %v5937_v31, %v5931_v59  ;;  %v1080_v30 = vmax.f32 %v5935_v38, %v5933_v40  ;;  %v5943_v51 = vmul.f32 0.015873017, %v949_v11 }
 0x241   : > { %4894 = vrcp.f32 %v1231_v7  ;;  %v1237_v61 = vrot.slane %v1236_v15, 1  ;;  %v988_v25 = vmax.f32 %v986_v17, %v987_v29  ;;  %v1079_v12 = vmax.f32 %v1077_v10, %v1078_v9 }
 0x242   : > { %v1242_v21 = vrot.slane %v1241_v32, 2  ;;  %v1212_v58 = vrot.slane %v1211_v20, 4  ;;  %v1081_v24 = vrot.slane %v1080_v30, 4  ;;  %v5945_v3 = vpop.eup %4880  ;;  %v5949_v27 = vmul.f32 0.015873017, %v946_v18 }
 0x243   : > { %v1238_v62 = vadd.f32 %v1237_v61, %v1236_v15  ;;  %v1094_v8 = vsub.f32 %v5897_v50, %v988_v25  ;;  %v1095_v55 = vsub.f32 %v5888_v0, %v988_v25  ;;  %v5951_v31 = vpop.eup %4882  ;;  %v1120_v11 = vsub.f32 %v5903_v5, %v1079_v12  ;;  %v928_v50 = vpop.xlane.xlu0 %927 }
 0x244   : > { %v1243_v7 = vadd.f32 %v1242_v21, %v1241_v32  ;;  %v1213_v17 = vadd.f32 %v1212_v58, %v1211_v20  ;;  %v1121_v29 = vsub.f32 %v5901_v23, %v1079_v12  ;;  %v1246_v10 = vadd.f32 %v5951_v31, %v5945_v3 }
 0x245   : > { %4896 = vrcp.f32 %v1238_v62  ;;  %v1126_v15 = vmul.f32 1.442695, %v1094_v8  ;;  %v1128_v9 = vmul.f32 1.442695, %v1095_v55  ;;  %v1178_v25 = vmul.f32 1.442695, %v1120_v11  ;;  %v925_v11 = vpop.xlane.xlu1 %924 }
 0x246   : > { %v1244_v61 = vrot.slane %v1243_v7, 1  ;;  %v1214_v0 = vrot.slane %v1213_v17, 2  ;;  %v1180_v18 = vmul.f32 1.442695, %v1121_v29  ;;  %v1247_v41 = vrot.slane %v1246_v10, 4 }
 0x247   : > { %v5957_v14 = vpop.eup %4884  ;;  %4898 = vpow2.f32 %v1126_v15  ;;  %v1082_v32 = vmax.f32 %v1080_v30, %v1081_v24  ;;  %v1087_v5 = vmax.f32 %v5949_v27, %v5943_v51  ;;  %v5963_v58 = vmul.f32 0.015873017, %v931_v6 }
 0x248   : > { %v5961_v23 = vpop.eup %4886  ;;  %v1245_v20 = vadd.f32 %v1244_v61, %v1243_v7  ;;  %v1215_v21 = vadd.f32 %v1214_v0, %v1213_v17  ;;  %4900 = vpow2.f32 %v1128_v9  ;;  %v1248_v8 = vadd.f32 %v1247_v41, %v1246_v10  ;;  %v922_v9 = vpop.xlane.xlu0 %921 }
 0x249   : > { %v5965_v12 = vpop.eup %4888  ;;  %v1327_v62 = vmul.f32 %v5961_v23, %v5886_v33  ;;  %4902 = vpow2.f32 %v1178_v25  ;;  %v1083_v55 = vrot.slane %v1082_v32, 2  ;;  %v1088_v29 = vrot.slane %v1087_v5, 4 }
 0x24a   : > { %8533 = vst [vmem:[#allocation30_spill] sm:$0xff] %v5965_v12  ;;  %4904 = vrcp.f32 %v1245_v20  ;;  %v1216_v30 = vrot.slane %v1215_v21, 1  ;;  %v1204_v24 = vadd.f32 %v5965_v12, %v5957_v14  ;;  %v5971_v7 = vpop.eup %4890  ;;  %v1249_v17 = vrot.slane %v1248_v8, 2 }
 0x24b   : > { %v5974_v6 = vmul.f32 %v5531_v42, %v1327_v62  ;;  %4906 = vpow2.f32 %v1180_v18  ;;  %v1084_v15 = vmax.f32 %v1082_v32, %v1083_v55  ;;  %v5976_v33 = vpop.eup %4892  ;;  %v1089_v10 = vmax.f32 %v1087_v5, %v1088_v29 }
 0x24c   : > { %v1205_v41 = vrot.slane %v1204_v24, 4  ;;  %v5978_v61 = vmul.f32 0.015873017, %v925_v11  ;;  %v5980_v0 = vmul.f32 0.015873017, %v928_v50  ;;  %v5984_v25 = vadd.f32 %v1216_v30, %v1215_v21 }
 0x24d   : > { %8534 = vst [vmem:[#allocation31_spill] sm:$0xff] %v5974_v6  ;;  %1448 = vst.msk [vmem:[#allocation2 + $0x81] sm:$0xff] %vm1382_vm2, %v5974_v6  ;;  %v1250_v20 = vadd.f32 %v1249_v17, %v1248_v8  ;;  %v1197_v42 = vadd.f32 %v5976_v33, %v5971_v7  ;;  %v1085_v18 = vrot.slane %v1084_v15, 1  ;;  %v1090_v55 = vrot.slane %v1089_v10, 2 }
 0x24e   : > { %v4895_v32 = vpop.eup %4894  ;;  %v1206_v62 = vadd.f32 %v1205_v41, %v1204_v24  ;;  %v1066_v5 = vmax.f32 %v5980_v0, %v5963_v58  ;;  %v5990_v11 = vmul.f32 0.015873017, %v922_v9 }
 0x24f   : > { %v1328_v50 = vmul.f32 %v4895_v32, %v5899_v22  ;;  %v1329_v29 = vmul.f32 %v4895_v32, %v5905_v26  ;;  %v1251_v6 = vrot.slane %v1250_v20, 1  ;;  %v1198_v21 = vrot.slane %v1197_v42, 4 }
 0x250   : > { %v1207_v30 = vrot.slane %v1206_v62, 2  ;;  %v1086_v8 = vmax.f32 %v1084_v15, %v1085_v18  ;;  %v1091_v17 = vmax.f32 %v1089_v10, %v1090_v55  ;;  %v1067_v12 = vrot.slane %v1066_v5, 4 }
 0x251   : > { %v5995_v19 = vmul.f32 %v1328_v50, %v5543_v48  ;;  %v5998_v24 = vmul.f32 %v5539_v46, %v1329_v29  ;;  %v1252_v41 = vadd.f32 %v1251_v6, %v1250_v20  ;;  %v1199_v59 = vadd.f32 %v1198_v21, %v1197_v42  ;;  %v919_v29 = vpop.xlane.xlu1 %918 }
 0x252   : > { %v4897_v9 = vpop.eup %4896  ;;  %v1208_v13 = vadd.f32 %v1207_v30, %v1206_v62  ;;  %v1122_v22 = vsub.f32 %v5935_v38, %v1086_v8  ;;  %v1123_v26 = vsub.f32 %v5933_v40, %v1086_v8  ;;  %v1092_v32 = vrot.slane %v1091_v17, 1  ;;  %v916_v40 = vpop.xlane.xlu0 %915 }
 0x253   : > { %1449 = vst.msk [vmem:[#allocation2 + $0x91] sm:$0xff] %vm1382_vm2, %v5995_v19  ;;  %1450 = vst.msk [vmem:[#allocation2 + $0x99] sm:$0xff] %vm1382_vm2, %v5998_v24  ;;  %v1330_v48 = vmul.f32 %v4897_v9, %v5915_v4  ;;  %v1331_v46 = vmul.f32 %v4897_v9, %v5917_v43  ;;  %4908 = vrcp.f32 %v1252_v41  ;;  %v1200_v6 = vrot.slane %v1199_v59, 2 }
 0x254   : > { %v6008_v15 = vpop.eup %4898  ;;  %v1209_v10 = vrot.slane %v1208_v13, 1  ;;  %v1182_v20 = vmul.f32 1.442695, %v1122_v22  ;;  %v1184_v38 = vmul.f32 1.442695, %v1123_v26  ;;  %v1093_v42 = vmax.f32 %v1091_v17, %v1092_v32  ;;  %v1554_v18 = vld [vmem:[#allocation2 + $0x81] sm:$0xff] }
 0x255   : > { %v6010_v62 = vpop.eup %4900  ;;  %v6013_v55 = vmul.f32 %v1330_v48, %v5551_v52  ;;  %v6016_v50 = vmul.f32 %v5545_v49, %v1331_v46  ;;  %v1201_v4 = vadd.f32 %v1200_v6, %v1199_v59  ;;  %v1068_v43 = vmax.f32 %v1066_v5, %v1067_v12  ;;  %1591 = vst.msk [vmem:[#allocation3 + $0x178] sm:$0xff] %vm1382_vm2, %v1554_v18  ;;  %v1627_v21 = vld [vmem:[#allocation2 + $0x82] sm:$0xff] }
 0x256   : > { %v6019_v30 = vpop.eup %4902  ;;  %v1210_v8 = vadd.f32 %v1209_v10, %v1208_v13  ;;  %v1190_v17 = vadd.f32 %v6010_v62, %v6008_v15  ;;  %4910 = vpow2.f32 %v1182_v20  ;;  %v1124_v41 = vsub.f32 %v5949_v27, %v1093_v42  ;;  %1664 = vst.msk [vmem:[#allocation3 + $0x298] sm:$0xff] %vm1382_vm2, %v1627_v21 }
 0x257   : > { %8535 = vst [vmem:[#allocation32_spill] sm:$0xff] %v6016_v50  ;;  %v4905_v52 = vpop.eup %4904  ;;  %1451 = vst.msk [vmem:[#allocation2 + $0xa9] sm:$0xff] %vm1382_vm2, %v6013_v55  ;;  %v1202_v49 = vrot.slane %v1201_v4, 1  ;;  %4912 = vpow2.f32 %v1184_v38  ;;  %v1125_v59 = vsub.f32 %v5943_v51, %v1093_v42  ;;  %v1069_v13 = vrot.slane %v1068_v43, 2 }
 0x258   : > { %1452 = vst.msk [vmem:[#allocation2 + $0xb1] sm:$0xff] %vm1382_vm2, %v6016_v50  ;;  %v6030_v12 = vpop.eup %4906  ;;  %v1332_v5 = vmul.f32 %v4905_v52, %v5923_v45  ;;  %v1333_v27 = vmul.f32 %v4905_v52, %v5927_v2  ;;  %v1191_v9 = vrot.slane %v1190_v17, 4  ;;  %v1186_v22 = vmul.f32 1.442695, %v1124_v41  ;;  %v910_v45 = vpop.xlane.xlu0 %909 }
 0x259   : > { %v1203_v26 = vadd.f32 %v1202_v49, %v1201_v4  ;;  %v1281_v32 = vadd.f32 %v6030_v12, %v6019_v30  ;;  %v1188_v48 = vmul.f32 1.442695, %v1125_v59  ;;  %v1070_v46 = vmax.f32 %v1068_v43, %v1069_v13  ;;  %v913_v43 = vpop.xlane.xlu1 %912 }
 0x25a   : > { %v1483_v6 = vld [vmem:[#allocation2 + $0x90] sm:$0xff]  ;;  %v1484_v10 = vld [vmem:[#allocation2 + $0x98] sm:$0xff]  ;;  %v6037_v20 = vmul.f32 %v1332_v5, %v5559_v56  ;;  %v6040_v51 = vmul.f32 %v5553_v53, %v1333_v27  ;;  %v1192_v38 = vadd.f32 %v1191_v9, %v1190_v17  ;;  %4914 = vpow2.f32 %v1186_v22 }
 0x25b   : > { %v1556_v2 = vld [vmem:[#allocation2 + $0x99] sm:$0xff]  ;;  %1519 = vst.msk [vmem:[#allocation3 + $0x60] sm:$0xff] %vm1382_vm2, %v1483_v6  ;;  %1520 = vst.msk [vmem:[#allocation3 + $0x68] sm:$0xff] %vm1382_vm2, %v1484_v10  ;;  %v1282_v42 = vrot.slane %v1281_v32, 4  ;;  %4916 = vpow2.f32 %v1188_v48  ;;  %v1071_v18 = vrot.slane %v1070_v46, 1  ;;  %v1059_v4 = vmax.f32 %v5990_v11, %v5978_v61  ;;  %v1555_v53 = vld [vmem:[#allocation2 + $0x91] sm:$0xff] }
 0x25c   : > { %8536 = vst [vmem:[#allocation33_spill] sm:$0xff] %v6037_v20  ;;  %8537 = vst [vmem:[#allocation34_spill] sm:$0xff] %v6040_v51  ;;  %v1629_v56 = vld [vmem:[#allocation2 + $0x9a] sm:$0xff]  ;;  %v1628_v21 = vld [vmem:[#allocation2 + $0x92] sm:$0xff]  ;;  %v1193_v17 = vrot.slane %v1192_v38, 2  ;;  %4918 = vrcp.f32 %v1203_v26 }
 0x25d   : > { %1593 = vst.msk [vmem:[#allocation3 + $0x188] sm:$0xff] %vm1382_vm2, %v1556_v2  ;;  %1453 = vst.msk [vmem:[#allocation2 + $0xc1] sm:$0xff] %vm1382_vm2, %v6037_v20  ;;  %v6051_v41 = vmul.f32 0.015873017, %v919_v29  ;;  %v6053_v52 = vmul.f32 0.015873017, %v916_v40  ;;  %v1283_v49 = vadd.f32 %v1282_v42, %v1281_v32  ;;  %v1072_v59 = vmax.f32 %v1070_v46, %v1071_v18 }
 0x25e   : > { %1454 = vst.msk [vmem:[#allocation2 + $0xc9] sm:$0xff] %vm1382_vm2, %v6040_v51  ;;  %1666 = vst.msk [vmem:[#allocation3 + $0x2a8] sm:$0xff] %vm1382_vm2, %v1629_v56  ;;  %v1060_v13 = vrot.slane %v1059_v4, 4  ;;  %v6058_v5 = vmul.f32 0.015873017, %v910_v45  ;;  %v1485_v27 = vld [vmem:[#allocation2 + $0xa8] sm:$0xff]  ;;  %v1194_v22 = vadd.f32 %v1193_v17, %v1192_v38  ;;  %4920 = vrcp.f32 %v1210_v8 }
 0x25f   : > { %1592 = vst.msk [vmem:[#allocation3 + $0x180] sm:$0xff] %vm1382_vm2, %v1555_v53  ;;  %1665 = vst.msk [vmem:[#allocation3 + $0x2a0] sm:$0xff] %vm1382_vm2, %v1628_v21  ;;  %v1486_v9 = vld [vmem:[#allocation2 + $0xb0] sm:$0xff]  ;;  %v6060_v48 = vmul.f32 0.015873017, %v913_v43  ;;  %v1052_v40 = vmax.f32 %v6053_v52, %v6051_v41  ;;  %v1284_v26 = vrot.slane %v1283_v49, 2  ;;  %v1118_v32 = vsub.f32 %v5980_v0, %v1072_v59 }
 0x260   : > { %v1558_v29 = vld [vmem:[#allocation2 + $0xb1] sm:$0xff]  ;;  %1521 = vst.msk [vmem:[#allocation3 + $0x70] sm:$0xff] %vm1382_vm2, %v1485_v27  ;;  %1522 = vst.msk [vmem:[#allocation3 + $0x78] sm:$0xff] %vm1382_vm2, %v1486_v9  ;;  %v1119_v46 = vsub.f32 %v5963_v58, %v1072_v59  ;;  %v1061_v6 = vmax.f32 %v1059_v4, %v1060_v13  ;;  %v1557_v38 = vld [vmem:[#allocation2 + $0xa9] sm:$0xff]  ;;  %v4909_v2 = vpop.eup %4908  ;;  %v1195_v42 = vrot.slane %v1194_v22, 1  ;;  %v1326_v43 = vmul.f32 %v5961_v23, %v5881_v63 }
 0x261   : > { %1595 = vst.msk [vmem:[#allocation3 + $0x198] sm:$0xff] %vm1382_vm2, %v1558_v29  ;;  %v1631_v10 = vld [vmem:[#allocation2 + $0xb2] sm:$0xff]  ;;  %v1630_v45 = vld [vmem:[#allocation2 + $0xaa] sm:$0xff]  ;;  %v1053_v18 = vrot.slane %v1052_v40, 4  ;;  %v1045_v8 = vmax.f32 %v6058_v5, %v6060_v48  ;;  %1594 = vst.msk [vmem:[#allocation3 + $0x190] sm:$0xff] %vm1382_vm2, %v1557_v38  ;;  %v1334_v58 = vmul.f32 %v4909_v2, %v5945_v3  ;;  %v1335_v0 = vmul.f32 %v4909_v2, %v5951_v31 }
 0x262   : > { %1668 = vst.msk [vmem:[#allocation3 + $0x2b8] sm:$0xff] %vm1382_vm2, %v1631_v10  ;;  %1667 = vst.msk [vmem:[#allocation3 + $0x2b0] sm:$0xff] %vm1382_vm2, %v1630_v45  ;;  %v1285_v4 = vadd.f32 %v1284_v26, %v1283_v49  ;;  %v1174_v56 = vmul.f32 1.442695, %v1118_v32  ;;  %v1196_v53 = vadd.f32 %v1195_v42, %v1194_v22  ;;  %v1176_v21 = vmul.f32 1.442695, %v1119_v46 }
 0x263   : > { %v1062_v17 = vrot.slane %v1061_v6, 2  ;;  %v1054_v59 = vmax.f32 %v1052_v40, %v1053_v18  ;;  %v6081_v13 = vld [vmem:[%s8432_s2 + $0x8] sm:$0x7]  ;;  %v6083_v63 = vpop.eup %4910  ;;  %v6086_v23 = vmul.f32 %v1334_v58, %v5567_v60  ;;  %v6089_v3 = vmul.f32 %v5561_v57, %v1335_v0 }
 0x264   : > { %v1286_v31 = vrot.slane %v1285_v4, 1  ;;  %4922 = vpow2.f32 %v1174_v56  ;;  %v6091_v22 = vpop.eup %4912  ;;  %v1046_v26 = vrot.slane %v1045_v8, 4  ;;  %v1487_v60 = vld [vmem:[#allocation2 + $0xc0] sm:$0xff]  ;;  %v6103_v10 = vmul.f32 %v1326_v43, %v5535_v44 }
 0x265   : > { %8538 = vst [vmem:[#allocation35_spill] sm:$0xff] %v6086_v23  ;;  %8539 = vst [vmem:[#allocation36_spill] sm:$0xff] %v6089_v3  ;;  %v1488_v49 = vld [vmem:[#allocation2 + $0xc8] sm:$0xff]  ;;  %4924 = vpow2.f32 %v1176_v21  ;;  %v1063_v40 = vmax.f32 %v1061_v6, %v1062_v17  ;;  %v1055_v29 = vrot.slane %v1054_v59, 2  ;;  %v1288_v6 = vadd.f32 %v6091_v22, %v6083_v63  ;;  %v6132_v21 = vld [vmem:[%s8433_s3] ss:$0 sm:$0xff] }
 0x266   : > { %v1560_v27 = vld [vmem:[#allocation2 + $0xc9] sm:$0xff]  ;;  %1524 = vst.msk [vmem:[#allocation3 + $0x88] sm:$0xff] %vm1382_vm2, %v1488_v49  ;;  %v1559_v57 = vld [vmem:[#allocation2 + $0xc1] sm:$0xff]  ;;  %1455 = vst.msk [vmem:[#allocation2 + $0xd9] sm:$0xff] %vm1382_vm2, %v6086_v23  ;;  %v1287_v46 = vadd.f32 %v1286_v31, %v1285_v4  ;;  %4926 = vrcp.f32 %v1196_v53  ;;  %v1047_v2 = vmax.f32 %v1045_v8, %v1046_v26  ;;  %v6114_v58 = vrot.slane %v6081_v13, %v5835_v28 }
 0x267   : > { %v1633_v9 = vld [vmem:[#allocation2 + $0xca] sm:$0xff]  ;;  %1597 = vst.msk [vmem:[#allocation3 + $0x1a8] sm:$0xff] %vm1382_vm2, %v1560_v27  ;;  %v1632_v32 = vld [vmem:[#allocation2 + $0xc2] sm:$0xff]  ;;  %1456 = vst.msk [vmem:[#allocation2 + $0xe1] sm:$0xff] %vm1382_vm2, %v6089_v3  ;;  %v1064_v38 = vrot.slane %v1063_v40, 1  ;;  %v1056_v45 = vmax.f32 %v1054_v59, %v1055_v29  ;;  %v6116_v0 = vpop.eup %4914  ;;  %v1289_v44 = vrot.slane %v1288_v6, 4  ;;  %v6122_v4 = vrot.slane %v6081_v13, %v5840_v47 }
 0x268   : > { %1670 = vst.msk [vmem:[#allocation3 + $0x2c8] sm:$0xff] %vm1382_vm2, %v1633_v9  ;;  %1523 = vst.msk [vmem:[#allocation3 + $0x80] sm:$0xff] %vm1382_vm2, %v1487_v60  ;;  %v6108_v42 = vld [vmem:[#allocation3 + $0x78] sm:$0xff]  ;;  %4928 = vrcp.f32 %v1287_v46  ;;  %v6126_v8 = vpop.eup %4916  ;;  %v1048_v28 = vrot.slane %v1047_v2, 2 }
 0x269   : > { %1596 = vst.msk [vmem:[#allocation3 + $0x1a0] sm:$0xff] %vm1382_vm2, %v1559_v57  ;;  %1669 = vst.msk [vmem:[#allocation3 + $0x2c0] sm:$0xff] %vm1382_vm2, %v1632_v32  ;;  %v6110_v18 = vld [vmem:[#allocation3 + $0x198] sm:$0xff]  ;;  %v1750_v43 = vmul.f32 %v5851_v1, %v6108_v42  ;;  %v1065_v56 = vmax.f32 %v1063_v40, %v1064_v38  ;;  %v1057_v53 = vrot.slane %v1056_v45, 1  ;;  %4930 = vrcp.f32 %v5984_v25  ;;  %v4919_v17 = vpop.eup %4918 }
 0x26a   : > { %1447 = vst.msk [vmem:[#allocation2 + $0x79] sm:$0xff] %vm1382_vm2, %v6103_v10  ;;  %v1290_v59 = vadd.f32 %v1289_v44, %v1288_v6  ;;  %v1295_v47 = vadd.f32 %v6126_v8, %v6116_v0  ;;  %v6141_v49 = vmul.f32 %v5860_v54, %v6110_v18  ;;  %v1049_v40 = vmax.f32 %v1047_v2, %v1048_v28 }
 0x26b   : > { %v6137_v31 = vadd.f32 %v6132_v21, %v1750_v43  ;;  %v1116_v27 = vsub.f32 %v5990_v11, %v1065_v56  ;;  %v1117_v25 = vsub.f32 %v5978_v61, %v1065_v56  ;;  %v1058_v9 = vmax.f32 %v1056_v45, %v1057_v53  ;;  %v6145_v29 = vpop.eup %4920 }
 0x26c   : > { %v1291_v26 = vrot.slane %v1290_v59, 2  ;;  %v1296_v60 = vrot.slane %v1295_v47, 4  ;;  %v1320_v57 = vmul.f32 %v4919_v17, %v5971_v7  ;;  %v1321_v32 = vmul.f32 %v4919_v17, %v5976_v33 }
 0x26d   : > { %v1170_v46 = vmul.f32 1.442695, %v1116_v27  ;;  %v1172_v6 = vmul.f32 1.442695, %v1117_v25  ;;  %v1114_v38 = vsub.f32 %v6053_v52, %v1058_v9  ;;  %v1115_v44 = vsub.f32 %v6051_v41, %v1058_v9  ;;  %v1489_v33 = vld [vmem:[#allocation2 + $0xd8] sm:$0xff] }
 0x26e   : > { %v1490_v43 = vld [vmem:[#allocation2 + $0xe0] sm:$0xff]  ;;  %v1292_v23 = vadd.f32 %v1291_v26, %v1290_v59  ;;  %v1297_v61 = vadd.f32 %v1296_v60, %v1295_v47  ;;  %v1050_v45 = vrot.slane %v1049_v40, 1  ;;  %v6152_v2 = vmul.f32 %v1320_v57, %v5521_v37  ;;  %1525 = vst.msk [vmem:[#allocation3 + $0x90] sm:$0xff] %vm1382_vm2, %v1489_v33 }
 0x26f   : > { %v1562_v11 = vld [vmem:[#allocation2 + $0xe1] sm:$0xff]  ;;  %1526 = vst.msk [vmem:[#allocation3 + $0x98] sm:$0xff] %vm1382_vm2, %v1490_v43  ;;  %v1561_v56 = vld [vmem:[#allocation2 + $0xd9] sm:$0xff]  ;;  %4932 = vpow2.f32 %v1170_v46  ;;  %v1166_v53 = vmul.f32 1.442695, %v1114_v38  ;;  %v6157_v41 = vmul.f32 %v5519_v36, %v1321_v32  ;;  %v1322_v60 = vmul.f32 %v6145_v29, %v5957_v14 }
 0x270   : > { %1599 = vst.msk [vmem:[#allocation3 + $0x1b8] sm:$0xff] %vm1382_vm2, %v1562_v11  ;;  %v1635_v7 = vld [vmem:[#allocation2 + $0xe2] sm:$0xff]  ;;  %v1168_v52 = vmul.f32 1.442695, %v1115_v44  ;;  %1598 = vst.msk [vmem:[#allocation3 + $0x1b0] sm:$0xff] %vm1382_vm2, %v1561_v56  ;;  %v1293_v37 = vrot.slane %v1292_v23, 1  ;;  %4934 = vpow2.f32 %v1172_v6  ;;  %v1051_v47 = vmax.f32 %v1049_v40, %v1050_v45 }
 0x271   : > { %1672 = vst.msk [vmem:[#allocation3 + $0x2d8] sm:$0xff] %vm1382_vm2, %v1635_v7  ;;  %v1481_v28 = vld [vmem:[#allocation2 + $0x78] sm:$0xff]  ;;  %v1482_v17 = vld [vmem:[#allocation2 + $0x80] sm:$0xff]  ;;  %v1298_v59 = vrot.slane %v1297_v61, 2  ;;  %1441 = vst.msk [vmem:[#allocation2 + $0x31] sm:$0xff] %vm1382_vm2, %v6152_v2  ;;  %v6166_v9 = vpop.eup %4922  ;;  %4936 = vpow2.f32 %v1166_v53  ;;  %v6184_v45 = vmul.f32 %v1322_v60, %v5525_v39 }
 0x272   : > { %1517 = vst.msk [vmem:[#allocation3 + $0x50] sm:$0xff] %vm1382_vm2, %v1481_v28  ;;  %1518 = vst.msk [vmem:[#allocation3 + $0x58] sm:$0xff] %vm1382_vm2, %v1482_v17  ;;  %v1553_v36 = vld [vmem:[#allocation2 + $0x79] sm:$0xff]  ;;  %v4506_v26 = vmul.f32 -1.442695, %v6152_v2  ;;  %v6177_v57 = vpop.eup %4924  ;;  %v1294_v32 = vadd.f32 %v1293_v37, %v1292_v23  ;;  %4938 = vpow2.f32 %v1168_v52  ;;  %v1112_v6 = vsub.f32 %v6058_v5, %v1051_v47  ;;  %v1472_v38 = vld [vmem:[#allocation2 + $0x8] sm:$0xff] }
 0x273   : > { %v1626_v27 = vld [vmem:[#allocation2 + $0x7a] sm:$0xff]  ;;  %1442 = vst.msk [vmem:[#allocation2 + $0x39] sm:$0xff] %vm1382_vm2, %v6157_v41  ;;  %v4507_v40 = vmul.f32 -1.442695, %v6157_v41  ;;  %1590 = vst.msk [vmem:[#allocation3 + $0x170] sm:$0xff] %vm1382_vm2, %v1553_v36  ;;  %v1299_v46 = vadd.f32 %v1298_v59, %v1297_v61  ;;  %v1544_v44 = vld [vmem:[#allocation2 + $0x9] sm:$0xff]  ;;  %v4927_v43 = vpop.eup %4926  ;;  %v1274_v11 = vadd.f32 %v6177_v57, %v6166_v9  ;;  %v1113_v14 = vsub.f32 %v6060_v48, %v1051_v47 }
 0x274   : > { %v1634_v25 = vld [vmem:[#allocation2 + $0xda] sm:$0xff]  ;;  %1663 = vst.msk [vmem:[#allocation3 + $0x290] sm:$0xff] %vm1382_vm2, %v1626_v27  ;;  %4940 = vpow2.f32 %v4506_v26  ;;  %1508 = vst.msk [vmem:[#allocation3 + $0x8] sm:$0xff] %vm1382_vm2, %v1472_v38  ;;  %v1617_v23 = vld [vmem:[#allocation2 + $0xa] sm:$0xff]  ;;  %v1162_v33 = vmul.f32 1.442695, %v1112_v6  ;;  %v1319_v56 = vmul.f32 %v4927_v43, %v6010_v62  ;;  %v1318_v28 = vmul.f32 %v4927_v43, %v6008_v15 }
 0x275   : > { %1671 = vst.msk [vmem:[#allocation3 + $0x2d0] sm:$0xff] %vm1382_vm2, %v1634_v25  ;;  %1581 = vst.msk [vmem:[#allocation3 + $0x128] sm:$0xff] %vm1382_vm2, %v1544_v44  ;;  %v1471_v61 = vld [vmem:[#allocation2] sm:$0xff]  ;;  %4942 = vrcp.f32 %v1294_v32  ;;  %v1300_v5 = vrot.slane %v1299_v46, 1  ;;  %v4929_v48 = vpop.eup %4928  ;;  %v1275_v53 = vrot.slane %v1274_v11, 4  ;;  %v6200_v47 = vld [vmem:[#allocation3 + $0x2b8] sm:$0xff] }
 0x276   : > { %v1543_v7 = vld [vmem:[#allocation2 + $0x1] sm:$0xff]  ;;  %1654 = vst.msk [vmem:[#allocation3 + $0x248] sm:$0xff] %vm1382_vm2, %v1617_v23  ;;  %1507 = vst.msk [vmem:[#allocation3] sm:$0xff] %vm1382_vm2, %v1471_v61  ;;  %v1164_v52 = vmul.f32 1.442695, %v1113_v14  ;;  %4944 = vpow2.f32 %v4507_v40  ;;  %v6196_v17 = vpop.eup %4930  ;;  %v1344_v62 = vmul.f32 %v4929_v48, %v6019_v30  ;;  %v1345_v37 = vmul.f32 %v4929_v48, %v6030_v12  ;;  %v6208_v40 = vld [vmem:[#allocation3 + $0x88] sm:$0xff] }
 0x277   : > { %1580 = vst.msk [vmem:[#allocation3 + $0x120] sm:$0xff] %vm1382_vm2, %v1543_v7  ;;  %v1616_v39 = vld [vmem:[#allocation2 + $0x2] sm:$0xff]  ;;  %1443 = vst.msk [vmem:[#allocation2 + $0x49] sm:$0xff] %vm1382_vm2, %v6184_v45  ;;  %v1301_v59 = vadd.f32 %v1300_v5, %v1299_v46  ;;  %4946 = vpow2.f32 %v1162_v33  ;;  %v1276_v36 = vadd.f32 %v1275_v53, %v1274_v11  ;;  %v6203_v15 = vmul.f32 %v5515_v34, %v1319_v56  ;;  %v6210_v60 = vld [vmem:[#allocation3 + $0x1a8] sm:$0xff] }
 0x278   : > { %1653 = vst.msk [vmem:[#allocation3 + $0x240] sm:$0xff] %vm1382_vm2, %v1616_v39  ;;  %4948 = vpow2.f32 %v1164_v52  ;;  %v6206_v27 = vmul.f32 %v1318_v28, %v5517_v35  ;;  %v1475_v25 = vld [vmem:[#allocation2 + $0x30] sm:$0xff]  ;;  %v6213_v30 = vmul.f32 %v1344_v62, %v5607_v16  ;;  %v8541_v12 = vld [vmem:[#allocation18_spill] sm:$0xff]  ;;  %v4508_v6 = vmul.f32 -1.442695, %v6184_v45  ;;  %v8543_v11 = vld [vmem:[#allocation28_spill] sm:$0xff] }
 0x279   : > { %v1547_v26 = vld [vmem:[#allocation2 + $0x31] sm:$0xff]  ;;  %v6216_v32 = vmul.f32 %v8541_v12, %v1345_v37  ;;  %4950 = vrcp.f32 %v1301_v59  ;;  %1511 = vst.msk [vmem:[#allocation3 + $0x20] sm:$0xff] %vm1382_vm2, %v1475_v25  ;;  %v1277_v38 = vrot.slane %v1276_v36, 2  ;;  %v4505_v44 = vmul.f32 -1.442695, %v6203_v15  ;;  %1440 = vst.msk [vmem:[#allocation2 + $0x21] sm:$0xff] %vm1382_vm2, %v6203_v15 }
 0x27a   : > { %8540 = vst [vmem:[#allocation37_spill] sm:$0xff] %v6213_v30  ;;  %1584 = vst.msk [vmem:[#allocation3 + $0x140] sm:$0xff] %vm1382_vm2, %v1547_v26  ;;  %v1476_v34 = vld [vmem:[#allocation2 + $0x38] sm:$0xff]  ;;  %v4504_v16 = vmul.f32 -1.442695, %v6206_v27  ;;  %v1324_v14 = vmul.f32 %v6196_v17, %v8543_v11  ;;  %4952 = vpow2.f32 %v4508_v6  ;;  %v1882_v23 = vadd.f32 %v6141_v49, %v6137_v31  ;;  %v2318_v33 = vld [vmem:[#allocation3 + $0x98] sm:$0xff] }
 0x27b   : > { %8542 = vst [vmem:[#allocation18_spill] sm:$0xff] %v6216_v32  ;;  %v1548_v35 = vld [vmem:[#allocation2 + $0x39] sm:$0xff]  ;;  %1439 = vst.msk [vmem:[#allocation2 + $0x19] sm:$0xff] %vm1382_vm2, %v6206_v27  ;;  %v4512_v56 = vmul.f32 -1.442695, %v6103_v10  ;;  %v1278_v39 = vadd.f32 %v1277_v38, %v1276_v36  ;;  %4954 = vpow2.f32 %v4505_v44  ;;  %v8546_v52 = vld [vmem:[#allocation23_spill] sm:$0xff]  ;;  %v2354_v44 = vmul.f32 %v6114_v58, %v2318_v33 }
 0x27c   : > { %v1620_v46 = vld [vmem:[#allocation2 + $0x32] sm:$0xff]  ;;  %1512 = vst.msk [vmem:[#allocation3 + $0x28] sm:$0xff] %vm1382_vm2, %v1476_v34  ;;  %1585 = vst.msk [vmem:[#allocation3 + $0x148] sm:$0xff] %vm1382_vm2, %v1548_v35  ;;  %v1621_v43 = vld [vmem:[#allocation2 + $0x3a] sm:$0xff]  ;;  %v6249_v28 = vrot.slane %v6081_v13, %v8546_v52  ;;  %v6253_v31 = vpop.eup %4932  ;;  %4956 = vpow2.f32 %v4504_v16 }
 0x27d   : > { %1657 = vst.msk [vmem:[#allocation3 + $0x260] sm:$0xff] %vm1382_vm2, %v1620_v46  ;;  %1465 = vst.msk [vmem:[#allocation2 + $0x151] sm:$0xff] %vm1382_vm2, %v6213_v30  ;;  %v8544_v61 = vld [vmem:[#allocation24_spill] sm:$0xff]  ;;  %v8545_v48 = vld [vmem:[#allocation9_spill] sm:$0xff]  ;;  %v6259_v35 = vpop.eup %4934  ;;  %v1279_v46 = vrot.slane %v1278_v39, 1  ;;  %4958 = vpow2.f32 %v4512_v56 }
 0x27e   : > { %1466 = vst.msk [vmem:[#allocation2 + $0x159] sm:$0xff] %vm1382_vm2, %v6216_v32  ;;  %1658 = vst.msk [vmem:[#allocation3 + $0x268] sm:$0xff] %vm1382_vm2, %v1621_v43  ;;  %v1950_v7 = vmul.f32 %v8544_v61, %v6200_v47  ;;  %v6241_v5 = vld [vmem:[#allocation3 + $0x2c8] sm:$0xff]  ;;  %v6245_v53 = vmul.f32 %v1324_v14, %v8545_v48  ;;  %v6251_v62 = vld [vmem:[#allocation3 + $0x70] sm:$0xff]  ;;  %v6269_v16 = vpop.eup %4936  ;;  %v1267_v43 = vadd.f32 %v6259_v35, %v6253_v31 }
 0x27f   : > { %v1477_v49 = vld [vmem:[#allocation2 + $0x48] sm:$0xff]  ;;  %v8547_v25 = vld [vmem:[#allocation25_spill] sm:$0xff]  ;;  %8549 = vst [vmem:[#allocation28_spill] sm:$0xff] %v6259_v35  ;;  %v8550_v6 = vld [vmem:[#allocation27_spill] sm:$0xff]  ;;  %v6277_v48 = vpop.eup %4938  ;;  %v1280_v52 = vadd.f32 %v1279_v46, %v1278_v39  ;;  %v1749_v33 = vmul.f32 %v5851_v1, %v6251_v62 }
 0x280   : > { %v1549_v37 = vld [vmem:[#allocation2 + $0x49] sm:$0xff]  ;;  %v1982_v59 = vadd.f32 %v1950_v7, %v1882_v23  ;;  %v2051_v26 = vmul.f32 %v8547_v25, %v6208_v40  ;;  %1513 = vst.msk [vmem:[#allocation3 + $0x30] sm:$0xff] %vm1382_vm2, %v1477_v49  ;;  %1445 = vst.msk [vmem:[#allocation2 + $0x61] sm:$0xff] %vm1382_vm2, %v6245_v53  ;;  %v4510_v13 = vmul.f32 -1.442695, %v6245_v53  ;;  %v2253_v38 = vmul.f32 %v8550_v6, %v6241_v5  ;;  %v6275_v7 = vld [vmem:[#allocation3 + $0x190] sm:$0xff] }
 0x281   : > { %v8548_v36 = vld [vmem:[#allocation26_spill] sm:$0xff]  ;;  %1586 = vst.msk [vmem:[#allocation3 + $0x150] sm:$0xff] %vm1382_vm2, %v1549_v37  ;;  %8551 = vst [vmem:[#allocation24_spill] sm:$0xff] %v6269_v16  ;;  %v4941_v37 = vpop.eup %4940  ;;  %v1268_v30 = vrot.slane %v1267_v43, 4  ;;  %v8554_v32 = vld [vmem:[#allocation7_spill] sm:$0xff] }
 0x282   : > { %v2152_v12 = vmul.f32 %v8548_v36, %v6210_v60  ;;  %v2419_v34 = vld [vmem:[#allocation3 + $0x1b8] sm:$0xff]  ;;  %v2083_v11 = vadd.f32 %v2051_v26, %v1982_v59  ;;  %8553 = vst [vmem:[#allocation9_spill] sm:$0xff] %v6277_v48  ;;  %4960 = vpow2.f32 %v4510_v13  ;;  %v1260_v59 = vadd.f32 %v6277_v48, %v6269_v16  ;;  %v1473_v56 = vld [vmem:[#allocation2 + $0x18] sm:$0xff]  ;;  %v4943_v39 = vpop.eup %4942 }
 0x283   : > { %v8552_v14 = vld [vmem:[#allocation30_spill] sm:$0xff]  ;;  %v6280_v49 = vmul.f32 %v6122_v4, %v2419_v34  ;;  %4962 = vrcp.f32 %v1280_v52  ;;  %v1474_v34 = vld [vmem:[#allocation2 + $0x20] sm:$0xff]  ;;  %1509 = vst.msk [vmem:[#allocation3 + $0x10] sm:$0xff] %vm1382_vm2, %v1473_v56  ;;  %v3711_v20 = vadd.f32 1.0, %v4941_v37  ;;  %v1781_v48 = vadd.f32 %v6132_v21, %v1749_v33 }
 0x284   : > { %v1323_v23 = vmul.f32 %v6145_v29, %v8552_v14  ;;  %v1546_v26 = vld [vmem:[#allocation2 + $0x21] sm:$0xff]  ;;  %v2184_v14 = vadd.f32 %v2152_v12, %v2083_v11  ;;  %v1499_v46 = vld [vmem:[#allocation2 + $0x150] sm:$0xff]  ;;  %v1849_v12 = vmul.f32 %v5860_v54, %v6275_v7  ;;  %v4945_v11 = vpop.eup %4944  ;;  %v1269_v52 = vadd.f32 %v1268_v30, %v1267_v43  ;;  %1510 = vst.msk [vmem:[#allocation3 + $0x18] sm:$0xff] %vm1382_vm2, %v1474_v34  ;;  %v8557_v43 = vld [vmem:[#allocation20_spill] sm:$0xff] }
 0x285   : > { %v1619_v29 = vld [vmem:[#allocation2 + $0x22] sm:$0xff]  ;;  %v1500_v13 = vld [vmem:[#allocation2 + $0x158] sm:$0xff]  ;;  %1583 = vst.msk [vmem:[#allocation3 + $0x138] sm:$0xff] %vm1382_vm2, %v1546_v26  ;;  %1535 = vst.msk [vmem:[#allocation3 + $0xe0] sm:$0xff] %vm1382_vm2, %v1499_v46  ;;  %v1261_v26 = vrot.slane %v1260_v59, 4  ;;  %v6302_v33 = vpop.eup %4946  ;;  %4964 = vrcp.f32 %v3711_v20 }
 0x286   : > { %v6287_v51 = vmul.f32 %v8554_v32, %v1323_v23  ;;  %1656 = vst.msk [vmem:[#allocation3 + $0x258] sm:$0xff] %vm1382_vm2, %v1619_v29  ;;  %1536 = vst.msk [vmem:[#allocation3 + $0xe8] sm:$0xff] %vm1382_vm2, %v1500_v13  ;;  %v1346_v32 = vmul.f32 %v4943_v39, %v6083_v63  ;;  %v1347_v23 = vmul.f32 %v4943_v39, %v6091_v22  ;;  %v1545_v29 = vld [vmem:[#allocation2 + $0x19] sm:$0xff]  ;;  %v2520_v56 = vld [vmem:[#allocation3 + $0x2d8] sm:$0xff]  ;;  %v3712_v63 = vadd.f32 1.0, %v4945_v11  ;;  %v6307_v30 = vpop.eup %4948 }
 0x287   : > { %v1618_v37 = vld [vmem:[#allocation2 + $0x1a] sm:$0xff]  ;;  %8555 = vst [vmem:[#allocation23_spill] sm:$0xff] %v6302_v33  ;;  %1582 = vst.msk [vmem:[#allocation3 + $0x130] sm:$0xff] %vm1382_vm2, %v1545_v29  ;;  %v2285_v46 = vadd.f32 %v2253_v38, %v2184_v14  ;;  %v8559_v13 = vld [vmem:[#allocation19_spill] sm:$0xff]  ;;  %v1270_v16 = vrot.slane %v1269_v52, 2  ;;  %v1262_v35 = vadd.f32 %v1261_v26, %v1260_v59  ;;  %v4951_v29 = vpop.eup %4950  ;;  %v1253_v20 = vadd.f32 %v6307_v30, %v6302_v33 }
 0x288   : > { %1444 = vst.msk [vmem:[#allocation2 + $0x51] sm:$0xff] %vm1382_vm2, %v6287_v51  ;;  %1655 = vst.msk [vmem:[#allocation3 + $0x250] sm:$0xff] %vm1382_vm2, %v1618_v37  ;;  %v4509_v22 = vmul.f32 -1.442695, %v6287_v51  ;;  %v6310_v39 = vmul.f32 %v1346_v32, %v8557_v43  ;;  %v6313_v34 = vmul.f32 %v8559_v13, %v1347_v23  ;;  %v1479_v50 = vld [vmem:[#allocation2 + $0x60] sm:$0xff]  ;;  %4966 = vrcp.f32 %v3712_v63  ;;  %v1505_v63 = vld [vmem:[#allocation2 + $0x198] sm:$0xff] }
 0x289   : > { %8556 = vst [vmem:[#allocation25_spill] sm:$0xff] %v6307_v30  ;;  %v1551_v3 = vld [vmem:[#allocation2 + $0x61] sm:$0xff]  ;;  %1515 = vst.msk [vmem:[#allocation3 + $0x40] sm:$0xff] %vm1382_vm2, %v1479_v50  ;;  %v2386_v38 = vadd.f32 %v2354_v44, %v2285_v46  ;;  %v2556_v14 = vmul.f32 %v6249_v28, %v2520_v56  ;;  %v1572_v11 = vld [vmem:[#allocation2 + $0x159] sm:$0xff]  ;;  %v1348_v59 = vmul.f32 %v4951_v29, %v6116_v0  ;;  %v4953_v44 = vpop.eup %4952  ;;  %v1263_v56 = vrot.slane %v1262_v35, 2 }
 0x28a   : > { %8558 = vst [vmem:[#allocation26_spill] sm:$0xff] %v6310_v39  ;;  %8560 = vst [vmem:[#allocation27_spill] sm:$0xff] %v6313_v34  ;;  %v1645_v32 = vld [vmem:[#allocation2 + $0x15a] sm:$0xff]  ;;  %v1349_v23 = vmul.f32 %v4951_v29, %v6126_v8  ;;  %v1271_v26 = vadd.f32 %v1270_v16, %v1269_v52  ;;  %v1881_v37 = vadd.f32 %v1849_v12, %v1781_v48  ;;  %v1254_v46 = vrot.slane %v1253_v20, 4  ;;  %v1644_v0 = vld [vmem:[#allocation2 + $0x152] sm:$0xff]  ;;  %v4955_v8 = vpop.eup %4954 }
 0x28b   : > { %1588 = vst.msk [vmem:[#allocation3 + $0x160] sm:$0xff] %vm1382_vm2, %v1551_v3  ;;  %1467 = vst.msk [vmem:[#allocation2 + $0x169] sm:$0xff] %vm1382_vm2, %v6310_v39  ;;  %v1506_v50 = vld [vmem:[#allocation2 + $0x1a0] sm:$0xff]  ;;  %v1571_v3 = vld [vmem:[#allocation2 + $0x151] sm:$0xff]  ;;  %v2487_v43 = vadd.f32 %v6280_v49, %v2386_v38  ;;  %4968 = vpow2.f32 %v4509_v22  ;;  %v4957_v22 = vpop.eup %4956  ;;  %v6343_v38 = vadd.f32 %v1263_v56, %v1262_v35 }
 0x28c   : > { %1468 = vst.msk [vmem:[#allocation2 + $0x171] sm:$0xff] %vm1382_vm2, %v6313_v34  ;;  %1609 = vst.msk [vmem:[#allocation3 + $0x208] sm:$0xff] %vm1382_vm2, %v1572_v11  ;;  %v6329_v13 = vld [vmem:[#allocation3 + $0x2b0] sm:$0xff]  ;;  %v8561_v16 = vld [vmem:[#allocation22_spill] sm:$0xff]  ;;  %v1272_v29 = vrot.slane %v1271_v26, 1  ;;  %v3713_v11 = vadd.f32 1.0, %v4953_v44 }
 0x28d   : > { %1682 = vst.msk [vmem:[#allocation3 + $0x328] sm:$0xff] %vm1382_vm2, %v1645_v32  ;;  %1542 = vst.msk [vmem:[#allocation3 + $0x118] sm:$0xff] %vm1382_vm2, %v1506_v50  ;;  %v6335_v48 = vmul.f32 %v1348_v59, %v8561_v16  ;;  %v8563_v12 = vld [vmem:[#allocation21_spill] sm:$0xff]  ;;  %v6340_v49 = vld [vmem:[#allocation3 + $0x80] sm:$0xff]  ;;  %v1255_v32 = vadd.f32 %v1254_v46, %v1253_v20  ;;  %v3710_v50 = vadd.f32 1.0, %v4955_v8  ;;  %v3709_v44 = vadd.f32 1.0, %v4957_v22 }
 0x28e   : > { %1541 = vst.msk [vmem:[#allocation3 + $0x110] sm:$0xff] %vm1382_vm2, %v1505_v63  ;;  %1608 = vst.msk [vmem:[#allocation3 + $0x200] sm:$0xff] %vm1382_vm2, %v1571_v3  ;;  %v6338_v52 = vmul.f32 %v8563_v12, %v1349_v23  ;;  %v6345_v63 = vadd.f32 %v2556_v14, %v2487_v43  ;;  %v1273_v23 = vadd.f32 %v1272_v29, %v1271_v26  ;;  %4970 = vrcp.f32 %v3713_v11  ;;  %v4959_v14 = vpop.eup %4958  ;;  %v6358_v26 = vld [vmem:[#allocation3 + $0x1a0] sm:$0xff]  ;;  %v6360_v43 = vld [vmem:[#allocation3 + $0x68] sm:$0xff] }
 0x28f   : > { %8562 = vst [vmem:[#allocation30_spill] sm:$0xff] %v6335_v48  ;;  %1681 = vst.msk [vmem:[#allocation3 + $0x320] sm:$0xff] %vm1382_vm2, %v1644_v0  ;;  %v1478_v3 = vld [vmem:[#allocation2 + $0x50] sm:$0xff]  ;;  %v1949_v20 = vmul.f32 %v8544_v61, %v6329_v13  ;;  %v1256_v56 = vrot.slane %v1255_v32, 2  ;;  %4972 = vrcp.f32 %v3710_v50  ;;  %v1578_v0 = vld [vmem:[#allocation2 + $0x1a1] sm:$0xff]  ;;  %v4961_v8 = vpop.eup %4960  ;;  %v2050_v12 = vmul.f32 %v8547_v25, %v6340_v49 }
 0x290   : > { %8564 = vst [vmem:[#allocation7_spill] sm:$0xff] %v6338_v52  ;;  %v1550_v39 = vld [vmem:[#allocation2 + $0x51] sm:$0xff]  ;;  %1469 = vst.msk [vmem:[#allocation2 + $0x181] sm:$0xff] %vm1382_vm2, %v6335_v48  ;;  %v4485_v46 = vmul.f32 -1.442695, %v6345_v63  ;;  %4974 = vrcp.f32 %v1273_v23  ;;  %v2317_v11 = vld [vmem:[#allocation3 + $0x90] sm:$0xff] }
 0x291   : > { %v1622_v59 = vld [vmem:[#allocation2 + $0x4a] sm:$0xff]  ;;  %1470 = vst.msk [vmem:[#allocation2 + $0x189] sm:$0xff] %vm1382_vm2, %v6338_v52  ;;  %1514 = vst.msk [vmem:[#allocation3 + $0x38] sm:$0xff] %vm1382_vm2, %v1478_v3  ;;  %v1623_v35 = vld [vmem:[#allocation2 + $0x52] sm:$0xff]  ;;  %v1981_v16 = vadd.f32 %v1949_v20, %v1881_v37  ;;  %4976 = vrcp.f32 %v3709_v44  ;;  %v3715_v52 = vadd.f32 1.0, %v4961_v8  ;;  %v4963_v37 = vpop.eup %4962  ;;  %v2353_v30 = vmul.f32 %v6114_v58, %v2317_v11 }
 0x292   : > { %1587 = vst.msk [vmem:[#allocation3 + $0x158] sm:$0xff] %vm1382_vm2, %v1550_v39  ;;  %1659 = vst.msk [vmem:[#allocation3 + $0x270] sm:$0xff] %vm1382_vm2, %v1622_v59  ;;  %v3717_v39 = vadd.f32 1.0, %v4959_v14  ;;  %v6364_v29 = vld [vmem:[#allocation3 + $0x2c0] sm:$0xff]  ;;  %v1651_v22 = vld [vmem:[#allocation2 + $0x1a2] sm:$0xff]  ;;  %v1265_v59 = vrot.slane %v6343_v38, 1  ;;  %4978 = vpow2.f32 %v4485_v46  ;;  %v2151_v14 = vmul.f32 %v8548_v36, %v6358_v26 }
 0x293   : > { %1660 = vst.msk [vmem:[#allocation3 + $0x278] sm:$0xff] %vm1382_vm2, %v1623_v35  ;;  %1615 = vst.msk [vmem:[#allocation3 + $0x238] sm:$0xff] %vm1382_vm2, %v1578_v0  ;;  %v1501_v50 = vld [vmem:[#allocation2 + $0x168] sm:$0xff]  ;;  %v1502_v3 = vld [vmem:[#allocation2 + $0x170] sm:$0xff]  ;;  %v1257_v35 = vadd.f32 %v1256_v56, %v1255_v32  ;;  %v2082_v20 = vadd.f32 %v2050_v12, %v1981_v16  ;;  %v1748_v32 = vmul.f32 %v5851_v1, %v6360_v43  ;;  %4980 = vrcp.f32 %v3715_v52 }
 0x294   : > { %v6368_v48 = vld [vmem:[#allocation3 + $0x188] sm:$0xff]  ;;  %1688 = vst.msk [vmem:[#allocation3 + $0x358] sm:$0xff] %vm1382_vm2, %v1651_v22  ;;  %1537 = vst.msk [vmem:[#allocation3 + $0xf0] sm:$0xff] %vm1382_vm2, %v1501_v50  ;;  %v2418_v0 = vld [vmem:[#allocation3 + $0x1b0] sm:$0xff]  ;;  %v1342_v8 = vmul.f32 %v4963_v37, %v6166_v9  ;;  %v1343_v22 = vmul.f32 %v4963_v37, %v6177_v57  ;;  %4982 = vrcp.f32 %v3717_v39 }
 0x295   : > { %v1574_v23 = vld [vmem:[#allocation2 + $0x171] sm:$0xff]  ;;  %1538 = vst.msk [vmem:[#allocation3 + $0xf8] sm:$0xff] %vm1382_vm2, %v1502_v3  ;;  %v1573_v56 = vld [vmem:[#allocation2 + $0x169] sm:$0xff]  ;;  %v1258_v50 = vrot.slane %v1257_v35, 1  ;;  %v1577_v46 = vld [vmem:[#allocation2 + $0x199] sm:$0xff]  ;;  %v4965_v3 = vpop.eup %4964  ;;  %v2183_v34 = vadd.f32 %v2151_v14, %v2082_v20  ;;  %v6397_v20 = vadd.f32 %v1265_v59, %v6343_v38  ;;  %v2454_v11 = vmul.f32 %v6122_v4, %v2418_v0 }
 0x296   : > { %1611 = vst.msk [vmem:[#allocation3 + $0x218] sm:$0xff] %vm1382_vm2, %v1574_v23  ;;  %v1647_v44 = vld [vmem:[#allocation2 + $0x172] sm:$0xff]  ;;  %1610 = vst.msk [vmem:[#allocation3 + $0x210] sm:$0xff] %vm1382_vm2, %v1573_v56  ;;  %v1646_v16 = vld [vmem:[#allocation2 + $0x16a] sm:$0xff]  ;;  %v2252_v23 = vmul.f32 %v8550_v6, %v6364_v29  ;;  %v4967_v14 = vpop.eup %4966  ;;  %v6410_v38 = vmul.f32 %v4965_v3, %v6152_v2  ;;  %v2150_v3 = vmul.f32 %v8548_v36, %v6110_v18 }
 0x297   : > { %1684 = vst.msk [vmem:[#allocation3 + $0x338] sm:$0xff] %vm1382_vm2, %v1647_v44  ;;  %v1650_v12 = vld [vmem:[#allocation2 + $0x19a] sm:$0xff]  ;;  %1614 = vst.msk [vmem:[#allocation3 + $0x230] sm:$0xff] %vm1382_vm2, %v1577_v46  ;;  %v6400_v44 = vadd.f32 %v1258_v50, %v1257_v35  ;;  %v1780_v46 = vadd.f32 %v6132_v21, %v1748_v32  ;;  %v6413_v59 = vmul.f32 %v4967_v14, %v6157_v41  ;;  %v6418_v0 = vld [vmem:[#allocation3 + $0x60] sm:$0xff] }
 0x298   : > { %v2519_v9 = vld [vmem:[#allocation3 + $0x2d0] sm:$0xff]  ;;  %v6385_v33 = vld [vmem:[#allocation3 + $0x2a8] sm:$0xff]  ;;  %1683 = vst.msk [vmem:[#allocation3 + $0x330] sm:$0xff] %vm1382_vm2, %v1646_v16  ;;  %1687 = vst.msk [vmem:[#allocation3 + $0x350] sm:$0xff] %vm1382_vm2, %v1650_v12  ;;  %v2284_v56 = vadd.f32 %v2252_v23, %v2183_v34  ;;  %v1848_v16 = vmul.f32 %v5860_v54, %v6368_v48  ;;  %v4969_v50 = vpop.eup %4968  ;;  %v2049_v41 = vmul.f32 %v8547_v25, %v6108_v42 }
 0x299   : > { %v8565_v57 = vld [vmem:[#allocation17_spill] sm:$0xff]  ;;  %v8567_v37 = vld [vmem:[#allocation16_spill] sm:$0xff]  ;;  %8569 = vst [vmem:[#allocation22_spill] sm:$0xff] %v6397_v20  ;;  %8570 = vst [vmem:[#allocation21_spill] sm:$0xff] %v6400_v44  ;;  %v2555_v34 = vmul.f32 %v6249_v28, %v2519_v9  ;;  %v1948_v35 = vmul.f32 %v8544_v61, %v6385_v33  ;;  %v3714_v14 = vadd.f32 1.0, %v4969_v50 }
 0x29a   : > { %v6391_v52 = vmul.f32 %v1342_v8, %v8565_v57  ;;  %v6394_v39 = vmul.f32 %v8567_v37, %v1343_v22  ;;  %v1504_v12 = vld [vmem:[#allocation2 + $0x188] sm:$0xff]  ;;  %v1503_v22 = vld [vmem:[#allocation2 + $0x180] sm:$0xff]  ;;  %v2385_v23 = vadd.f32 %v2353_v30, %v2284_v56  ;;  %v1880_v2 = vadd.f32 %v1848_v16, %v1780_v46  ;;  %v6426_v9 = vld [vmem:[#allocation3 + $0x180] sm:$0xff] }
 0x29b   : > { %v1576_v8 = vld [vmem:[#allocation2 + $0x189] sm:$0xff]  ;;  %1540 = vst.msk [vmem:[#allocation3 + $0x108] sm:$0xff] %vm1382_vm2, %v1504_v12  ;;  %1539 = vst.msk [vmem:[#allocation3 + $0x100] sm:$0xff] %vm1382_vm2, %v1503_v22  ;;  %v1575_v57 = vld [vmem:[#allocation2 + $0x181] sm:$0xff]  ;;  %v2251_v12 = vmul.f32 %v8550_v6, %v6200_v47  ;;  %v2352_v30 = vmul.f32 %v6114_v58, %v6208_v40  ;;  %v6436_v56 = vmul.f32 %v6122_v4, %v6210_v60  ;;  %v4514_v50 = vmul.f32 -1.442695, %v5995_v19 }
 0x29c   : > { %8566 = vst [vmem:[#allocation20_spill] sm:$0xff] %v6391_v52  ;;  %8568 = vst [vmem:[#allocation19_spill] sm:$0xff] %v6394_v39  ;;  %v1649_v32 = vld [vmem:[#allocation2 + $0x18a] sm:$0xff]  ;;  %v1648_v37 = vld [vmem:[#allocation2 + $0x182] sm:$0xff]  ;;  %v2486_v16 = vadd.f32 %v2454_v11, %v2385_v23  ;;  %4984 = vrcp.f32 %v3714_v14  ;;  %v6447_v40 = vmul.f32 %v6249_v28, %v6241_v5  ;;  %v1747_v60 = vmul.f32 %v5851_v1, %v6418_v0 }
 0x29d   : > { %1463 = vst.msk [vmem:[#allocation2 + $0x139] sm:$0xff] %vm1382_vm2, %v6391_v52  ;;  %1464 = vst.msk [vmem:[#allocation2 + $0x141] sm:$0xff] %vm1382_vm2, %v6394_v39  ;;  %v6438_v46 = vld [vmem:[#allocation3 + $0x2a0] sm:$0xff]  ;;  %v4971_v52 = vpop.eup %4970  ;;  %v8572_v23 = vld [vmem:[#allocation8_spill] sm:$0xff]  ;;  %4986 = vpow2.f32 %v4514_v50 }
 0x29e   : > { %1613 = vst.msk [vmem:[#allocation3 + $0x228] sm:$0xff] %vm1382_vm2, %v1576_v8  ;;  %1686 = vst.msk [vmem:[#allocation3 + $0x348] sm:$0xff] %vm1382_vm2, %v1649_v32  ;;  %v1980_v8 = vadd.f32 %v1948_v35, %v1880_v2  ;;  %v8571_v32 = vld [vmem:[#allocation29_spill] sm:$0xff]  ;;  %v6453_v11 = vadd.f32 %v2555_v34, %v2486_v16  ;;  %v1947_v2 = vmul.f32 %v8544_v61, %v6438_v46  ;;  %v6486_v44 = vld [vmem:[#allocation3 + $0x178] sm:$0xff] }
 0x29f   : > { %1612 = vst.msk [vmem:[#allocation3 + $0x220] sm:$0xff] %vm1382_vm2, %v1575_v57  ;;  %1685 = vst.msk [vmem:[#allocation3 + $0x340] sm:$0xff] %vm1382_vm2, %v1648_v37  ;;  %v1325_v22 = vmul.f32 %v6196_v17, %v8571_v32  ;;  %v1847_v57 = vmul.f32 %v5860_v54, %v6426_v9  ;;  %v4973_v37 = vpop.eup %4972  ;;  %v6464_v32 = vmul.f32 %v4971_v52, %v6184_v45 }
 0x2a0   : > { %v2081_v35 = vadd.f32 %v2049_v41, %v1980_v8  ;;  %v6460_v14 = vpop.eup %4974  ;;  %v3806_v5 = vmul.f32 %v4973_v37, %v6203_v15  ;;  %v1779_v39 = vadd.f32 %v6132_v21, %v1747_v60  ;;  %v4484_v8 = vmul.f32 -1.442695, %v6453_v11  ;;  %v8573_v60 = vld [vmem:[#allocation15_spill] sm:$0xff] }
 0x2a1   : > { %v6456_v17 = vmul.f32 %v8572_v23, %v1325_v22  ;;  %v4977_v20 = vpop.eup %4976  ;;  %v1340_v41 = vmul.f32 %v6460_v14, %v6253_v31  ;;  %v2048_v31 = vmul.f32 %v8547_v25, %v6251_v62 }
 0x2a2   : > { %v2182_v22 = vadd.f32 %v2150_v3, %v2081_v35  ;;  %v4979_v37 = vpop.eup %4978  ;;  %3871 = vrot.lane.b32.xlu0 %v3806_v5, %s5341_s21  ;;  %v3805_v45 = vmul.f32 %v4977_v20, %v6206_v27  ;;  %v1879_v52 = vadd.f32 %v1847_v57, %v1779_v39  ;;  %v2149_v3 = vmul.f32 %v8548_v36, %v6275_v7  ;;  %v6488_v5 = vld [vmem:[#allocation3 + $0x298] sm:$0xff] }
 0x2a3   : > { %1446 = vst.msk [vmem:[#allocation2 + $0x69] sm:$0xff] %vm1382_vm2, %v6456_v17  ;;  %v4511_v15 = vmul.f32 -1.442695, %v6456_v17  ;;  %v4981_v50 = vpop.eup %4980  ;;  %v6482_v35 = vmul.f32 %v1340_v41, %v8573_v60  ;;  %v2716_v23 = vadd.f32 1.0, %v4979_v37  ;;  %4988 = vpow2.f32 %v4484_v8 }
 0x2a4   : > { %v1497_v34 = vld [vmem:[#allocation2 + $0x138] sm:$0xff]  ;;  %v1498_v16 = vld [vmem:[#allocation2 + $0x140] sm:$0xff]  ;;  %v4983_v27 = vpop.eup %4982  ;;  %3869 = vrot.lane.b32.xlu1 %v3805_v45, %s5341_s21  ;;  %v3811_v39 = vmul.f32 %v4981_v50, %v6245_v53  ;;  %v1979_v20 = vadd.f32 %v1947_v2, %v1879_v52  ;;  %v2250_v57 = vmul.f32 %v8550_v6, %v6329_v13  ;;  %v2351_v45 = vmul.f32 %v6114_v58, %v6340_v49 }
 0x2a5   : > { %1533 = vst.msk [vmem:[#allocation3 + $0xd0] sm:$0xff] %vm1382_vm2, %v1497_v34  ;;  %1534 = vst.msk [vmem:[#allocation3 + $0xd8] sm:$0xff] %vm1382_vm2, %v1498_v16  ;;  %v2283_v34 = vadd.f32 %v2251_v12, %v2182_v22  ;;  %v6484_v16 = vld [vmem:[#allocation3 + $0x58] sm:$0xff]  ;;  %4990 = vpow2.f32 %v4511_v15  ;;  %v1569_v8 = vld [vmem:[#allocation2 + $0x139] sm:$0xff]  ;;  %v6497_v12 = vmul.f32 %v4983_v27, %v6103_v10  ;;  %v2452_v15 = vmul.f32 %v6122_v4, %v6358_v26 }
 0x2a6   : > { %8574 = vst [vmem:[#allocation17_spill] sm:$0xff] %v6482_v35  ;;  %v1570_v41 = vld [vmem:[#allocation2 + $0x141] sm:$0xff]  ;;  %1461 = vst.msk [vmem:[#allocation2 + $0x121] sm:$0xff] %vm1382_vm2, %v6482_v35  ;;  %4992 = vrcp.f32 %v2716_v23  ;;  %3873 = vrot.lane.b32.xlu0 %v6410_v38, %s5341_s21  ;;  %v2080_v2 = vadd.f32 %v2048_v31, %v1979_v20  ;;  %v6510_v10 = vmul.f32 %v6249_v28, %v6364_v29 }
 0x2a7   : > { %v1643_v37 = vld [vmem:[#allocation2 + $0x142] sm:$0xff]  ;;  %v2384_v22 = vadd.f32 %v2352_v30, %v2283_v34  ;;  %1607 = vst.msk [vmem:[#allocation3 + $0x1f8] sm:$0xff] %vm1382_vm2, %v1570_v41  ;;  %1606 = vst.msk [vmem:[#allocation3 + $0x1f0] sm:$0xff] %vm1382_vm2, %v1569_v8  ;;  %v1642_v53 = vld [vmem:[#allocation2 + $0x13a] sm:$0xff]  ;;  %v1746_v49 = vmul.f32 %v5851_v1, %v6484_v16  ;;  %v1846_v52 = vmul.f32 %v5860_v54, %v6486_v44 }
 0x2a8   : > { %1680 = vst.msk [vmem:[#allocation3 + $0x318] sm:$0xff] %vm1382_vm2, %v1643_v37  ;;  %1679 = vst.msk [vmem:[#allocation3 + $0x310] sm:$0xff] %vm1382_vm2, %v1642_v53  ;;  %v1946_v38 = vmul.f32 %v8544_v61, %v6488_v5  ;;  %v2047_v26 = vmul.f32 %v8547_v25, %v6360_v43  ;;  %v6522_v31 = vld [vmem:[#allocation3 + $0x50] sm:$0xff]  ;;  %3875 = vrot.lane.b32.xlu1 %v6413_v59, %s5341_s21  ;;  %v2148_v27 = vmul.f32 %v8548_v36, %v6368_v48  ;;  %v8575_v8 = vld [vmem:[#allocation31_spill] sm:$0xff] }
 0x2a9   : > { %v2485_v30 = vadd.f32 %v6436_v56, %v2384_v22  ;;  %v6524_v29 = vld [vmem:[#allocation3 + $0x170] sm:$0xff]  ;;  %v2181_v56 = vadd.f32 %v2149_v3, %v2080_v2  ;;  %v1778_v34 = vadd.f32 %v6132_v21, %v1746_v49  ;;  %v2249_v20 = vmul.f32 %v8550_v6, %v6385_v33 }
 0x2aa   : > { %v1480_v50 = vld [vmem:[#allocation2 + $0x68] sm:$0xff]  ;;  %v2350_v3 = vmul.f32 %v6114_v58, %v6108_v42  ;;  %v6543_v37 = vmul.f32 %v6122_v4, %v6110_v18  ;;  %v4513_v22 = vmul.f32 -1.442695, %v8575_v8  ;;  %3877 = vrot.lane.b32.xlu0 %v6464_v32, %s5341_s21  ;;  %v4516_v2 = vmul.f32 -1.442695, %v6013_v55  ;;  %v4985_v42 = vpop.eup %4984 }
 0x2ab   : > { %v1552_v60 = vld [vmem:[#allocation2 + $0x69] sm:$0xff]  ;;  %v6534_v41 = vadd.f32 %v6447_v40, %v2485_v30  ;;  %1516 = vst.msk [vmem:[#allocation3 + $0x48] sm:$0xff] %vm1382_vm2, %v1480_v50  ;;  %v2282_v40 = vadd.f32 %v2250_v57, %v2181_v56  ;;  %v1878_v53 = vadd.f32 %v1846_v52, %v1778_v34  ;;  %v1745_v49 = vmul.f32 %v5851_v1, %v6522_v31  ;;  %v6552_v30 = vld [vmem:[#allocation3 + $0x290] sm:$0xff]  ;;  %v4987_v34 = vpop.eup %4986 }
 0x2ac   : > { %v1624_v23 = vld [vmem:[#allocation2 + $0x62] sm:$0xff]  ;;  %1589 = vst.msk [vmem:[#allocation3 + $0x168] sm:$0xff] %vm1382_vm2, %v1552_v60  ;;  %v1625_v59 = vld [vmem:[#allocation2 + $0x6a] sm:$0xff]  ;;  %v6557_v50 = vmul.f32 %v6249_v28, %v6200_v47  ;;  %4994 = vpow2.f32 %v4513_v22  ;;  %v1845_v32 = vmul.f32 %v5860_v54, %v6524_v29  ;;  %3881 = vrot.lane.b32.xlu1 %v3811_v39, %s5341_s21  ;;  %v3810_v57 = vmul.f32 %v4985_v42, %v6287_v51 }
 0x2ad   : > { %1661 = vst.msk [vmem:[#allocation3 + $0x280] sm:$0xff] %vm1382_vm2, %v1624_v23  ;;  %1662 = vst.msk [vmem:[#allocation3 + $0x288] sm:$0xff] %vm1382_vm2, %v1625_v59  ;;  %v4483_v18 = vmul.f32 -1.442695, %v6534_v41  ;;  %v2383_v52 = vadd.f32 %v2351_v45, %v2282_v40  ;;  %v1978_v60 = vadd.f32 %v1946_v38, %v1878_v53  ;;  %4996 = vpow2.f32 %v4516_v2  ;;  %v1495_v23 = vld [vmem:[#allocation2 + $0x120] sm:$0xff] }
 0x2ae   : > { %v1567_v56 = vld [vmem:[#allocation2 + $0x121] sm:$0xff]  ;;  %v1777_v59 = vadd.f32 %v6132_v21, %v1745_v49  ;;  %v1945_v47 = vmul.f32 %v8544_v61, %v6552_v30  ;;  %v2046_v22 = vmul.f32 %v8547_v25, %v6418_v0  ;;  %1531 = vst.msk [vmem:[#allocation3 + $0xc0] sm:$0xff] %vm1382_vm2, %v1495_v23  ;;  %3879 = vrot.lane.b32.xlu0 %v3810_v57, %s5341_s21  ;;  %v3719_v51 = vadd.f32 1.0, %v4987_v34 }
 0x2af   : > { %4998 = vpow2.f32 %v4483_v18  ;;  %1604 = vst.msk [vmem:[#allocation3 + $0x1e0] sm:$0xff] %vm1382_vm2, %v1567_v56  ;;  %v2484_v39 = vadd.f32 %v2452_v15, %v2383_v52  ;;  %v2079_v45 = vadd.f32 %v2047_v26, %v1978_v60  ;;  %v2147_v38 = vmul.f32 %v8548_v36, %v6426_v9 }
 0x2b0   : > { %v1877_v40 = vadd.f32 %v1845_v32, %v1777_v59  ;;  %v2248_v53 = vmul.f32 %v8550_v6, %v6438_v46  ;;  %v2349_v2 = vmul.f32 %v6114_v58, %v6251_v62  ;;  %v6579_v49 = vmul.f32 %v6122_v4, %v6275_v7  ;;  %v4989_v42 = vpop.eup %4988  ;;  %3885 = vrot.lane.b32.xlu1 %v6497_v12, %s5341_s21 }
 0x2b1   : > { %5000 = vrcp.f32 %v3719_v51  ;;  %v6584_v15 = vadd.f32 %v6510_v10, %v2484_v39  ;;  %v2180_v26 = vadd.f32 %v2148_v27, %v2079_v45  ;;  %v6588_v18 = vmul.f32 %v6249_v28, %v6329_v13 }
 0x2b2   : > { %v6590_v32 = vld [vmem:[#allocation3 + $0x48] sm:$0xff]  ;;  %v4991_v57 = vpop.eup %4990  ;;  %v2715_v7 = vadd.f32 1.0, %v4989_v42  ;;  %v1977_v52 = vadd.f32 %v1945_v47, %v1877_v40  ;;  %v2045_v10 = vmul.f32 %v8547_v25, %v6484_v16  ;;  %v2146_v40 = vmul.f32 %v8548_v36, %v6486_v44  ;;  %v6609_v42 = vld [vmem:[#allocation3 + $0x40] sm:$0xff] }
 0x2b3   : > { %v6592_v62 = vld [vmem:[#allocation3 + $0x168] sm:$0xff]  ;;  %v1744_v60 = vmul.f32 %v5851_v1, %v6590_v32  ;;  %v4993_v27 = vpop.eup %4992  ;;  %v3716_v23 = vadd.f32 1.0, %v4991_v57  ;;  %v4482_v13 = vmul.f32 -1.442695, %v6584_v15  ;;  %v2281_v56 = vadd.f32 %v2249_v20, %v2180_v26 }
 0x2b4   : > { %v6596_v12 = vld [vmem:[#allocation3 + $0x288] sm:$0xff]  ;;  %v1844_v34 = vmul.f32 %v5860_v54, %v6592_v62  ;;  %v2812_v59 = vmul.f32 %v4993_v27, %v6345_v63  ;;  %5002 = vrcp.f32 %v2715_v7  ;;  %v2078_v47 = vadd.f32 %v2046_v22, %v1977_v52  ;;  %v6613_v22 = vld [vmem:[#allocation3 + $0x160] sm:$0xff] }
 0x2b5   : > { %v1776_v51 = vadd.f32 %v6132_v21, %v1744_v60  ;;  %5004 = vrcp.f32 %v3716_v23  ;;  %v2382_v39 = vadd.f32 %v2350_v3, %v2281_v56  ;;  %v1944_v45 = vmul.f32 %v8544_v61, %v6596_v12  ;;  %v8577_v27 = vld [vmem:[#allocation36_spill] sm:$0xff]  ;;  %v6626_v56 = vld [vmem:[#allocation3 + $0x280] sm:$0xff] }
 0x2b6   : > { %2894 = vmatpush1.msra.mxu0 %v2812_v59  ;;  %4785 = vmatpush1.msra.mxu1 %v2812_v59  ;;  %5006 = vpow2.f32 %v4482_v13  ;;  %v2179_v20 = vadd.f32 %v2147_v38, %v2078_v47  ;;  %v2247_v63 = vmul.f32 %v8550_v6, %v6488_v5  ;;  %v8576_v21 = vmov 0.0  }
 0x2b7   : > { %v1876_v26 = vadd.f32 %v1844_v34, %v1776_v51  ;;  %2895 = vmatprep.subr.mxu0 %v8576_v21  ;;  %4754 = vmatprep.subr.mxu1 %v8576_v21  ;;  %v2483_v3 = vadd.f32 %v6543_v37, %v2382_v39  ;;  %v2348_v57 = vmul.f32 %v6114_v58, %v6360_v43  ;;  %v4515_v38 = vmul.f32 -1.442695, %v5998_v24 }
 0x2b8   : > { %v2449_v7 = vmul.f32 %v6122_v4, %v6368_v48  ;;  %v2280_v52 = vadd.f32 %v2248_v53, %v2179_v20  ;;  %v4521_v23 = vmul.f32 -1.442695, %v8577_v27  ;;  %v1743_v13 = vmul.f32 %v5851_v1, %v6609_v42 }
 0x2b9   : > { %v1976_v60 = vadd.f32 %v1944_v45, %v1876_v26  ;;  %v4995_v34 = vpop.eup %4994  ;;  %v6629_v37 = vadd.f32 %v6557_v50, %v2483_v3  ;;  %v2550_v43 = vmul.f32 %v6249_v28, %v6385_v33  ;;  %5008 = vpow2.f32 %v4515_v38  ;;  %v6639_v50 = vld [vmem:[%s8433_s3] ss:$0 sm:$0xff] }
 0x2ba   : > { %v1843_v48 = vmul.f32 %v5860_v54, %v6613_v22  ;;  %v4997_v53 = vpop.eup %4996  ;;  %v3718_v59 = vadd.f32 1.0, %v4995_v34  ;;  %v2381_v47 = vadd.f32 %v2349_v2, %v2280_v52  ;;  %5010 = vpow2.f32 %v4521_v23  ;;  %v6649_v23 = vld [vmem:[#allocation3 + $0x38] sm:$0xff] }
 0x2bb   : > { %v2077_v51 = vadd.f32 %v2045_v10, %v1976_v60  ;;  %v4481_v45 = vmul.f32 -1.442695, %v6629_v37  ;;  %v3721_v20 = vadd.f32 1.0, %v4997_v53  ;;  %v1775_v33 = vadd.f32 %v6639_v50, %v1743_v13 }
 0x2bc   : > { %v4999_v39 = vpop.eup %4998  ;;  %v1943_v26 = vmul.f32 %v8544_v61, %v6626_v56  ;;  %5012 = vrcp.f32 %v3718_v59  ;;  %v2482_v2 = vadd.f32 %v6579_v49, %v2381_v47  ;;  %v2044_v52 = vmul.f32 %v8547_v25, %v6522_v31 }
 0x2bd   : > { %v2714_v3 = vadd.f32 1.0, %v4999_v39  ;;  %v2178_v10 = vadd.f32 %v2146_v40, %v2077_v51  ;;  %5014 = vpow2.f32 %v4481_v45  ;;  %v1875_v38 = vadd.f32 %v1843_v48, %v1775_v33  ;;  %v6656_v40 = vld [vmem:[#allocation3 + $0x158] sm:$0xff] }
 0x2be   : > { %v2145_v60 = vmul.f32 %v8548_v36, %v6524_v29  ;;  %v5001_v34 = vpop.eup %5000  ;;  %v6652_v13 = vadd.f32 %v6588_v18, %v2482_v2  ;;  %v2246_v49 = vmul.f32 %v8550_v6, %v6552_v30  ;;  %v6658_v48 = vld [vmem:[#allocation3 + $0x278] sm:$0xff]  ;;  %v2347_v51 = vmul.f32 %v6114_v58, %v6418_v0 }
 0x2bf   : > { %5016 = vrcp.f32 %v2714_v3  ;;  %v2279_v53 = vadd.f32 %v2247_v63, %v2178_v10  ;;  %v3815_v59 = vmul.f32 %v5001_v34, %v5995_v19  ;;  %v1975_v47 = vadd.f32 %v1943_v26, %v1875_v38 }
 0x2c0   : > { %5018 = vrcp.f32 %v3721_v20  ;;  %v4480_v39 = vmul.f32 -1.442695, %v6652_v13  ;;  %v2448_v18 = vmul.f32 %v6122_v4, %v6426_v9  ;;  %v1742_v63 = vmul.f32 %v5851_v1, %v6649_v23 }
 0x2c1   : > { %v2380_v45 = vadd.f32 %v2348_v57, %v2279_v53  ;;  %v5003_v33 = vpop.eup %5002  ;;  %3889 = vrot.lane.b32.xlu1 %v3815_v59, %s5341_s21  ;;  %v2076_v3 = vadd.f32 %v2044_v52, %v1975_v47  ;;  %v2549_v19 = vmul.f32 %v6249_v28, %v6438_v46  ;;  %v1842_v20 = vmul.f32 %v5860_v54, %v6656_v40  ;;  %v6686_v47 = vld [vmem:[#allocation3 + $0x30] sm:$0xff] }
 0x2c2   : > { %v1942_v0 = vmul.f32 %v8544_v61, %v6658_v48  ;;  %v5005_v57 = vpop.eup %5004  ;;  %v2811_v26 = vmul.f32 %v5003_v33, %v6453_v11  ;;  %5020 = vpow2.f32 %v4480_v39  ;;  %v1774_v2 = vadd.f32 %v6639_v50, %v1742_v63 }
 0x2c3   : > { %v2481_v9 = vadd.f32 %v2449_v7, %v2380_v45  ;;  %v5007_v10 = vpop.eup %5006  ;;  %v3812_v38 = vmul.f32 %v5005_v57, %v6456_v17  ;;  %v2177_v52 = vadd.f32 %v2145_v60, %v2076_v3  ;;  %v2043_v46 = vmul.f32 %v8547_v25, %v6590_v32  ;;  %v8578_v45 = vld [vmem:[#allocation32_spill] sm:$0xff] }
 0x2c4   : > { %v2144_v34 = vmul.f32 %v8548_v36, %v6592_v62  ;;  %2896 = vmatpush1.msra.mxu0 %v2811_v26  ;;  %4786 = vmatpush1.msra.mxu1 %v2811_v26  ;;  %v2713_v53 = vadd.f32 1.0, %v5007_v10  ;;  %v1874_v11 = vadd.f32 %v1842_v20, %v1774_v2  ;;  %v2245_v7 = vmul.f32 %v8550_v6, %v6596_v12  ;;  %v8579_v20 = vld [vmem:[#allocation28_spill] sm:$0xff]  ;;  %v6699_v26 = vld [vmem:[#allocation3 + $0x150] sm:$0xff] }
 0x2c5   : > { %v6682_v59 = vadd.f32 %v2550_v43, %v2481_v9  ;;  %2897 = vmatprep.subr.mxu0 %v8576_v21  ;;  %4755 = vmatprep.subr.mxu1 %v8576_v21  ;;  %v2278_v17 = vadd.f32 %v2246_v49, %v2177_v52  ;;  %v2346_v60 = vmul.f32 %v6114_v58, %v6484_v16  ;;  %v4517_v43 = vmul.f32 -1.442695, %v8578_v45 }
 0x2c6   : > { %v2447_v39 = vmul.f32 %v6122_v4, %v6486_v44  ;;  %v5009_v63 = vpop.eup %5008  ;;  %3883 = vrot.lane.b32.xlu0 %v3812_v38, %s5341_s21  ;;  %5022 = vrcp.f32 %v2713_v53  ;;  %v1974_v3 = vadd.f32 %v1942_v0, %v1874_v11  ;;  %v1341_v57 = vmul.f32 %v6460_v14, %v8579_v20  ;;  %v8580_v38 = vld [vmem:[#allocation14_spill] sm:$0xff]  ;;  %v6706_v53 = vld [vmem:[#allocation3 + $0x270] sm:$0xff] }
 0x2c7   : > { %v4479_v33 = vmul.f32 -1.442695, %v6682_v59  ;;  %v5011_v49 = vpop.eup %5010  ;;  %v3720_v9 = vadd.f32 1.0, %v5009_v63  ;;  %v2379_v16 = vadd.f32 %v2347_v51, %v2278_v17  ;;  %5024 = vpow2.f32 %v4517_v43 }
 0x2c8   : > { %v1741_v44 = vmul.f32 %v5851_v1, %v6686_v47  ;;  %v3726_v2 = vadd.f32 1.0, %v5011_v49  ;;  %v2075_v10 = vadd.f32 %v2043_v46, %v1974_v3  ;;  %v6704_v52 = vmul.f32 %v8580_v38, %v1341_v57  ;;  %v6731_v38 = vld [vmem:[#allocation3 + $0x148] sm:$0xff] }
 0x2c9   : > { %5026 = vpow2.f32 %v4479_v33  ;;  %v5013_v0 = vpop.eup %5012  ;;  %v2480_v14 = vadd.f32 %v2448_v18, %v2379_v16  ;;  %v1841_v51 = vmul.f32 %v5860_v54, %v6699_v26  ;;  %v1941_v57 = vmul.f32 %v8544_v61, %v6706_v53 }
 0x2ca   : > { %5028 = vrcp.f32 %v3720_v9  ;;  %v1773_v11 = vadd.f32 %v6639_v50, %v1741_v44  ;;  %v5015_v17 = vpop.eup %5014  ;;  %v3814_v43 = vmul.f32 %v5013_v0, %v8575_v8  ;;  %v2176_v63 = vadd.f32 %v2144_v34, %v2075_v10  ;;  %1462 = vst.msk [vmem:[#allocation2 + $0x129] sm:$0xff] %vm1382_vm2, %v6704_v52 }
 0x2cb   : > { %5030 = vrcp.f32 %v3726_v2  ;;  %v4527_v46 = vmul.f32 -1.442695, %v6704_v52  ;;  %v2712_v3 = vadd.f32 1.0, %v5015_v17  ;;  %v6715_v20 = vadd.f32 %v2549_v19, %v2480_v14  ;;  %v6726_v2 = vld [vmem:[#allocation3 + $0x28] sm:$0xff] }
 0x2cc   : > { %v5017_v33 = vpop.eup %5016  ;;  %v1873_v18 = vadd.f32 %v1841_v51, %v1773_v11  ;;  %3887 = vrot.lane.b32.xlu0 %v3814_v43, %s5341_s21  ;;  %v2277_v8 = vadd.f32 %v2245_v7, %v2176_v63  ;;  %v2548_v34 = vmul.f32 %v6249_v28, %v6488_v5  ;;  %v2042_v19 = vmul.f32 %v8547_v25, %v6609_v42  ;;  %v6737_v11 = vld [vmem:[#allocation3 + $0x268] sm:$0xff]  ;;  %v8581_v51 = vld [vmem:[#allocation33_spill] sm:$0xff] }
 0x2cd   : > { %v5019_v49 = vpop.eup %5018  ;;  %v2810_v9 = vmul.f32 %v5017_v33, %v6534_v41  ;;  %5032 = vpow2.f32 %v4527_v46  ;;  %v4478_v16 = vmul.f32 -1.442695, %v6715_v20  ;;  %v2143_v7 = vmul.f32 %v8548_v36, %v6613_v22 }
 0x2ce   : > { %5034 = vrcp.f32 %v2712_v3  ;;  %v1973_v44 = vadd.f32 %v1941_v57, %v1873_v18  ;;  %v3817_v41 = vmul.f32 %v5019_v49, %v6013_v55  ;;  %v2378_v10 = vadd.f32 %v2346_v60, %v2277_v8 }
 0x2cf   : > { %2898 = vmatpush1.msra.mxu0 %v2810_v9  ;;  %4787 = vmatpush1.msra.mxu1 %v2810_v9  ;;  %v5021_v5 = vpop.eup %5020  ;;  %5036 = vpow2.f32 %v4478_v16  ;;  %v2244_v14 = vmul.f32 %v8550_v6, %v6626_v56  ;;  %v4518_v55 = vmul.f32 -1.442695, %v8581_v51  ;;  %v2345_v43 = vmul.f32 %v6114_v58, %v6522_v31  ;;  %v6759_v16 = vld [vmem:[#allocation3 + $0x20] sm:$0xff] }
 0x2d0   : > { %2899 = vmatprep.subr.mxu0 %v8576_v21  ;;  %4756 = vmatprep.subr.mxu1 %v8576_v21  ;;  %v2074_v0 = vadd.f32 %v2042_v19, %v1973_v44  ;;  %v2711_v60 = vadd.f32 1.0, %v5021_v5  ;;  %v2479_v17 = vadd.f32 %v2447_v39, %v2378_v10  ;;  %v1740_v63 = vmul.f32 %v5851_v1, %v6726_v2  ;;  %v6768_v10 = vld [vmem:[#allocation3 + $0x140] sm:$0xff] }
 0x2d1   : > { %3893 = vrot.lane.b32.xlu1 %v3817_v41, %s5341_s21  ;;  %v1496_v46 = vld [vmem:[#allocation2 + $0x128] sm:$0xff]  ;;  %v2446_v57 = vmul.f32 %v6122_v4, %v6524_v29  ;;  %v2547_v49 = vmul.f32 %v6249_v28, %v6552_v30  ;;  %v1840_v9 = vmul.f32 %v5860_v54, %v6731_v38  ;;  %v1940_v29 = vmul.f32 %v8544_v61, %v6737_v11 }
 0x2d2   : > { %v1568_v33 = vld [vmem:[#allocation2 + $0x129] sm:$0xff]  ;;  %v2175_v18 = vadd.f32 %v2143_v7, %v2074_v0  ;;  %5038 = vrcp.f32 %v2711_v60  ;;  %v6751_v39 = vadd.f32 %v2548_v34, %v2479_v17  ;;  %1532 = vst.msk [vmem:[#allocation3 + $0xc8] sm:$0xff] %vm1382_vm2, %v1496_v46  ;;  %v1772_v8 = vadd.f32 %v6639_v50, %v1740_v63 }
 0x2d3   : > { %v1640_v3 = vld [vmem:[#allocation2 + $0x122] sm:$0xff]  ;;  %1605 = vst.msk [vmem:[#allocation3 + $0x1e8] sm:$0xff] %vm1382_vm2, %v1568_v33  ;;  %v1641_v31 = vld [vmem:[#allocation2 + $0x12a] sm:$0xff]  ;;  %v5023_v30 = vpop.eup %5022  ;;  %v2041_v34 = vmul.f32 %v8547_v25, %v6649_v23  ;;  %v2142_v19 = vmul.f32 %v8548_v36, %v6656_v40  ;;  %v2243_v41 = vmul.f32 %v8550_v6, %v6658_v48  ;;  %5040 = vpow2.f32 %v4518_v55 }
 0x2d4   : > { %1677 = vst.msk [vmem:[#allocation3 + $0x300] sm:$0xff] %vm1382_vm2, %v1640_v3  ;;  %1678 = vst.msk [vmem:[#allocation3 + $0x308] sm:$0xff] %vm1382_vm2, %v1641_v31  ;;  %v2276_v44 = vadd.f32 %v2244_v14, %v2175_v18  ;;  %v5025_v7 = vpop.eup %5024  ;;  %v2809_v5 = vmul.f32 %v5023_v30, %v6584_v15  ;;  %v4477_v0 = vmul.f32 -1.442695, %v6751_v39  ;;  %v1872_v60 = vadd.f32 %v1840_v9, %v1772_v8  ;;  %v6778_v9 = vld [vmem:[#allocation3 + $0x260] sm:$0xff] }
 0x2d5   : > { %v2344_v14 = vmul.f32 %v6114_v58, %v6590_v32  ;;  %v3722_v63 = vadd.f32 1.0, %v5025_v7  ;;  %v1739_v33 = vmul.f32 %v5851_v1, %v6759_v16  ;;  %v1839_v15 = vmul.f32 %v5860_v54, %v6768_v10 }
 0x2d6   : > { %v5027_v17 = vpop.eup %5026  ;;  %v2377_v46 = vadd.f32 %v2345_v43, %v2276_v44  ;;  %2900 = vmatpush1.msra.mxu0 %v2809_v5  ;;  %4788 = vmatpush1.msra.mxu1 %v2809_v5  ;;  %5042 = vpow2.f32 %v4477_v0  ;;  %v1972_v31 = vadd.f32 %v1940_v29, %v1872_v60  ;;  %v2445_v44 = vmul.f32 %v6122_v4, %v6592_v62 }
 0x2d7   : > { %v5029_v3 = vpop.eup %5028  ;;  %v2710_v18 = vadd.f32 1.0, %v5027_v17  ;;  %2901 = vmatprep.subr.mxu0 %v8576_v21  ;;  %4757 = vmatprep.subr.mxu1 %v8576_v21  ;;  %5044 = vrcp.f32 %v3722_v63  ;;  %v1771_v43 = vadd.f32 %v6639_v50, %v1739_v33  ;;  %v2546_v0 = vmul.f32 %v6249_v28, %v6596_v12 }
 0x2d8   : > { %v5031_v8 = vpop.eup %5030  ;;  %v3816_v32 = vmul.f32 %v5029_v3, %v5998_v24  ;;  %v2478_v55 = vadd.f32 %v2446_v57, %v2377_v46  ;;  %v2073_v29 = vadd.f32 %v2041_v34, %v1972_v31  ;;  %v1939_v57 = vmul.f32 %v8544_v61, %v6778_v9  ;;  %v8582_v31 = vld [vmem:[#allocation34_spill] sm:$0xff] }
 0x2d9   : > { %5046 = vrcp.f32 %v2710_v18  ;;  %v3822_v30 = vmul.f32 %v5031_v8, %v8577_v27  ;;  %v1871_v24 = vadd.f32 %v1839_v15, %v1771_v43  ;;  %v2040_v62 = vmul.f32 %v8547_v25, %v6686_v47  ;;  %v6808_v8 = vld [vmem:[#allocation3 + $0x138] sm:$0xff] }
 0x2da   : > { %v5033_v7 = vpop.eup %5032  ;;  %3891 = vrot.lane.b32.xlu0 %v3816_v32, %s5341_s21  ;;  %v6788_v5 = vadd.f32 %v2547_v49, %v2478_v55  ;;  %v2174_v34 = vadd.f32 %v2142_v19, %v2073_v29  ;;  %v2141_v17 = vmul.f32 %v8548_v36, %v6699_v26  ;;  %v6799_v49 = vld [vmem:[#allocation3 + $0x18] sm:$0xff]  ;;  %v2242_v33 = vmul.f32 %v8550_v6, %v6706_v53 }
 0x2db   : > { %v5035_v60 = vpop.eup %5034  ;;  %3903 = vrot.lane.b32.xlu1 %v3822_v30, %s5341_s21  ;;  %v3732_v27 = vadd.f32 1.0, %v5033_v7  ;;  %v1971_v46 = vadd.f32 %v1939_v57, %v1871_v24  ;;  %v2343_v19 = vmul.f32 %v6114_v58, %v6609_v42  ;;  %v4519_v15 = vmul.f32 -1.442695, %v8582_v31  ;;  %v6812_v43 = vld [vmem:[#allocation3 + $0x258] sm:$0xff] }
 0x2dc   : > { %v2808_v63 = vmul.f32 %v5035_v60, %v6629_v37  ;;  %v4476_v12 = vmul.f32 -1.442695, %v6788_v5  ;;  %v5037_v3 = vpop.eup %5036  ;;  %v2275_v18 = vadd.f32 %v2243_v41, %v2174_v34  ;;  %v1738_v55 = vmul.f32 %v5851_v1, %v6799_v49  ;;  %v6823_v60 = vld [vmem:[#allocation3 + $0x10] sm:$0xff] }
 0x2dd   : > { %5048 = vrcp.f32 %v3732_v27  ;;  %v2709_v32 = vadd.f32 1.0, %v5037_v3  ;;  %v2072_v37 = vadd.f32 %v2040_v62, %v1971_v46  ;;  %v2444_v42 = vmul.f32 %v6122_v4, %v6613_v22 }
 0x2de   : > { %2902 = vmatpush1.msra.mxu0 %v2808_v63  ;;  %4789 = vmatpush1.msra.mxu1 %v2808_v63  ;;  %5050 = vpow2.f32 %v4476_v12  ;;  %v2376_v41 = vadd.f32 %v2344_v14, %v2275_v18  ;;  %v2545_v30 = vmul.f32 %v6249_v28, %v6626_v56  ;;  %v1770_v24 = vadd.f32 %v6639_v50, %v1738_v55  ;;  %v6834_v12 = vld [vmem:[#allocation3 + $0x130] sm:$0xff]  ;;  %v8583_v55 = vld [vmem:[#allocation35_spill] sm:$0xff] }
 0x2df   : > { %2903 = vmatprep.subr.mxu0 %v8576_v21  ;;  %4758 = vmatprep.subr.mxu1 %v8576_v21  ;;  %5052 = vpow2.f32 %v4519_v15  ;;  %v5039_v29 = vpop.eup %5038  ;;  %v2173_v7 = vadd.f32 %v2141_v17, %v2072_v37  ;;  %v1838_v57 = vmul.f32 %v5860_v54, %v6808_v8  ;;  %v1938_v22 = vmul.f32 %v8544_v61, %v6812_v43  ;;  %v6844_v37 = vld [vmem:[#allocation3 + $0x250] sm:$0xff] }
 0x2e0   : > { %5054 = vrcp.f32 %v2709_v32  ;;  %v2807_v27 = vmul.f32 %v5039_v29, %v6652_v13  ;;  %v2477_v14 = vadd.f32 %v2445_v44, %v2376_v41  ;;  %v2039_v56 = vmul.f32 %v8547_v25, %v6726_v2  ;;  %v5041_v46 = vpop.eup %5040 }
 0x2e1   : > { %v2274_v34 = vadd.f32 %v2242_v33, %v2173_v7  ;;  %v1870_v62 = vadd.f32 %v1838_v57, %v1770_v24  ;;  %v2140_v17 = vmul.f32 %v8548_v36, %v6731_v38  ;;  %v2241_v63 = vmul.f32 %v8550_v6, %v6737_v11 }
 0x2e2   : > { %2904 = vmatpush1.msra.mxu0 %v2807_v27  ;;  %4790 = vmatpush1.msra.mxu1 %v2807_v27  ;;  %v6836_v13 = vadd.f32 %v2546_v0, %v2477_v14  ;;  %v2342_v44 = vmul.f32 %v6114_v58, %v6649_v23  ;;  %v1737_v33 = vmul.f32 %v5851_v1, %v6823_v60  ;;  %v3723_v18 = vadd.f32 1.0, %v5041_v46 }
 0x2e3   : > { %v5043_v3 = vpop.eup %5042  ;;  %2905 = vmatprep.subr.mxu0 %v8576_v21  ;;  %4759 = vmatprep.subr.mxu1 %v8576_v21  ;;  %v2375_v15 = vadd.f32 %v2343_v19, %v2274_v34  ;;  %v1970_v32 = vadd.f32 %v1938_v22, %v1870_v62  ;;  %v4520_v41 = vmul.f32 -1.442695, %v8583_v55  ;;  %v1837_v24 = vmul.f32 %v5860_v54, %v6834_v12 }
 0x2e4   : > { %v5045_v0 = vpop.eup %5044  ;;  %v2708_v29 = vadd.f32 1.0, %v5043_v3  ;;  %v4475_v7 = vmul.f32 -1.442695, %v6836_v13  ;;  %v1769_v23 = vadd.f32 %v6639_v50, %v1737_v33  ;;  %5056 = vrcp.f32 %v3723_v18  ;;  %v1800_v18 = vld [vmem:[#allocation3 + $0x128] sm:$0xff] }
 0x2e5   : > { %v3818_v27 = vmul.f32 %v5045_v0, %v8578_v45  ;;  %v2476_v14 = vadd.f32 %v2444_v42, %v2375_v15  ;;  %v2071_v19 = vadd.f32 %v2039_v56, %v1970_v32  ;;  %v1937_v62 = vmul.f32 %v8544_v61, %v6844_v37  ;;  %v1700_v45 = vld [vmem:[#allocation3 + $0x8] sm:$0xff] }
 0x2e6   : > { %v5047_v57 = vpop.eup %5046  ;;  %5058 = vrcp.f32 %v2708_v29  ;;  %v1869_v34 = vadd.f32 %v1837_v24, %v1769_v23  ;;  %v2443_v3 = vmul.f32 %v6122_v4, %v6656_v40  ;;  %v2038_v56 = vmul.f32 %v8547_v25, %v6759_v16 }
 0x2e7   : > { %v2806_v22 = vmul.f32 %v5047_v57, %v6682_v59  ;;  %3895 = vrot.lane.b32.xlu0 %v3818_v27, %s5341_s21  ;;  %5060 = vpow2.f32 %v4475_v7  ;;  %v6856_v46 = vadd.f32 %v2545_v30, %v2476_v14  ;;  %v2172_v33 = vadd.f32 %v2140_v17, %v2071_v19 }
 0x2e8   : > { %v2544_v59 = vmul.f32 %v6249_v28, %v6658_v48  ;;  %v1969_v42 = vadd.f32 %v1937_v62, %v1869_v34  ;;  %5062 = vpow2.f32 %v4520_v41  ;;  %v2139_v17 = vmul.f32 %v8548_v36, %v6768_v10  ;;  %v1900_v48 = vld [vmem:[#allocation3 + $0x248] sm:$0xff] }
 0x2e9   : > { %2906 = vmatpush1.msra.mxu0 %v2806_v22  ;;  %4791 = vmatpush1.msra.mxu1 %v2806_v22  ;;  %v4474_v30 = vmul.f32 -1.442695, %v6856_v46  ;;  %v2273_v40 = vadd.f32 %v2241_v63, %v2172_v33  ;;  %v2240_v32 = vmul.f32 %v8550_v6, %v6778_v9  ;;  %v1736_v41 = vmul.f32 %v5851_v1, %v1700_v45 }
 0x2ea   : > { %v5049_v15 = vpop.eup %5048  ;;  %2907 = vmatprep.subr.mxu0 %v8576_v21  ;;  %4760 = vmatprep.subr.mxu1 %v8576_v21  ;;  %v2070_v7 = vadd.f32 %v2038_v56, %v1969_v42  ;;  %v1836_v23 = vmul.f32 %v5860_v54, %v1800_v18  ;;  %v2341_v63 = vmul.f32 %v6114_v58, %v6686_v47  ;;  %v1699_v42 = vld [vmem:[#allocation3] sm:$0xff] }
 0x2eb   : > { %v5051_v0 = vpop.eup %5050  ;;  %v3828_v29 = vmul.f32 %v5049_v15, %v6704_v52  ;;  %5064 = vpow2.f32 %v4474_v30  ;;  %v2374_v27 = vadd.f32 %v2342_v44, %v2273_v40  ;;  %v1768_v34 = vadd.f32 %v6639_v50, %v1736_v41  ;;  %v1799_v56 = vld [vmem:[#allocation3 + $0x120] sm:$0xff]  ;;  %v8584_v30 = vld [vmem:[#allocation21_spill] sm:$0xff] }
 0x2ec   : > { %v5053_v24 = vpop.eup %5052  ;;  %v2707_v57 = vadd.f32 1.0, %v5051_v0  ;;  %v2171_v22 = vadd.f32 %v2139_v17, %v2070_v7  ;;  %v1936_v52 = vmul.f32 %v8544_v61, %v1900_v48  ;;  %v2442_v45 = vmul.f32 %v6122_v4, %v6699_v26  ;;  %v1899_v17 = vld [vmem:[#allocation3 + $0x240] sm:$0xff] }
 0x2ed   : > { %v5055_v14 = vpop.eup %5054  ;;  %3915 = vrot.lane.b32.xlu1 %v3828_v29, %s5341_s21  ;;  %v3724_v19 = vadd.f32 1.0, %v5053_v24  ;;  %v2475_v33 = vadd.f32 %v2443_v3, %v2374_v27  ;;  %v1868_v18 = vadd.f32 %v1836_v23, %v1768_v34  ;;  %v2037_v47 = vmul.f32 %v8547_v25, %v6799_v49 }
 0x2ee   : > { %v2805_v62 = vmul.f32 %v5055_v14, %v6715_v20  ;;  %5066 = vrcp.f32 %v2707_v57  ;;  %v2272_v44 = vadd.f32 %v2240_v32, %v2171_v22  ;;  %v2543_v20 = vmul.f32 %v6249_v28, %v6706_v53  ;;  %v6907_v57 = vld [vmem:[#allocation3 + $0xf8] sm:$0xff] }
 0x2ef   : > { %5068 = vrcp.f32 %v3724_v19  ;;  %v6884_v15 = vadd.f32 %v2544_v59, %v2475_v33  ;;  %v2138_v3 = vmul.f32 %v8548_v36, %v6808_v8  ;;  %v1968_v49 = vadd.f32 %v1936_v52, %v1868_v18  ;;  %v6930_v18 = vld [vmem:[#allocation3 + $0x338] sm:$0xff] }
 0x2f0   : > { %2908 = vmatpush1.msra.mxu0 %v2805_v62  ;;  %4792 = vmatpush1.msra.mxu1 %v2805_v62  ;;  %5070 = vrcp.f32 %v8584_v30  ;;  %v2373_v26 = vadd.f32 %v2341_v63, %v2272_v44  ;;  %v2239_v40 = vmul.f32 %v8550_v6, %v6812_v43  ;;  %v2340_v53 = vmul.f32 %v6114_v58, %v6726_v2  ;;  %v6919_v62 = vld [vmem:[#allocation3 + $0x218] sm:$0xff]  ;;  %v6937_v30 = vld [vmem:[#allocation3 + $0x228] sm:$0xff] }
 0x2f1   : > { %2909 = vmatprep.subr.mxu0 %v8576_v21  ;;  %4761 = vmatprep.subr.mxu1 %v8576_v21  ;;  %v4473_v59 = vmul.f32 -1.442695, %v6884_v15  ;;  %v1735_v32 = vmul.f32 %v5851_v1, %v1699_v42  ;;  %v1835_v8 = vmul.f32 %v5860_v54, %v1799_v56  ;;  %v5057_v48 = vpop.eup %5056  ;;  %v2069_v29 = vadd.f32 %v2037_v47, %v1968_v49  ;;  %v6932_v47 = vld [vmem:[#allocation3 + $0x108] sm:$0xff] }
 0x2f2   : > { %v2474_v0 = vadd.f32 %v2442_v45, %v2373_v26  ;;  %v2441_v7 = vmul.f32 %v6122_v4, %v6731_v38  ;;  %v2542_v41 = vmul.f32 %v6249_v28, %v6737_v11  ;;  %v3819_v23 = vmul.f32 %v5057_v48, %v8581_v51  ;;  %v6941_v49 = vld [vmem:[#allocation3 + $0x348] sm:$0xff] }
 0x2f3   : > { %v5059_v43 = vpop.eup %5058  ;;  %5072 = vpow2.f32 %v4473_v59  ;;  %v1767_v24 = vadd.f32 %v6639_v50, %v1735_v32  ;;  %v1935_v2 = vmul.f32 %v8544_v61, %v1899_v17  ;;  %v2170_v19 = vadd.f32 %v2138_v3, %v2069_v29 }
 0x2f4   : > { %v5061_v27 = vpop.eup %5060  ;;  %v2804_v63 = vmul.f32 %v5059_v43, %v6751_v39  ;;  %v6910_v14 = vadd.f32 %v2543_v20, %v2474_v0  ;;  %v2036_v38 = vmul.f32 %v8547_v25, %v6823_v60  ;;  %3897 = vrot.lane.b32.xlu0 %v3819_v23, %s5341_s21  ;;  %v2137_v34 = vmul.f32 %v8548_v36, %v6834_v12  ;;  %v2334_v43 = vld [vmem:[#allocation3 + $0x118] sm:$0xff] }
 0x2f5   : > { %v5063_v11 = vpop.eup %5062  ;;  %v2706_v22 = vadd.f32 1.0, %v5061_v27  ;;  %v1867_v51 = vadd.f32 %v1835_v8, %v1767_v24  ;;  %v2238_v52 = vmul.f32 %v8550_v6, %v6844_v37  ;;  %v2271_v45 = vadd.f32 %v2239_v40, %v2170_v19  ;;  %v6947_v8 = vld [vmem:[#allocation3 + $0xf0] sm:$0xff]  ;;  %v2435_v23 = vld [vmem:[#allocation3 + $0x238] sm:$0xff] }
 0x2f6   : > { %2910 = vmatpush1.msra.mxu0 %v2804_v63  ;;  %4793 = vmatpush1.msra.mxu1 %v2804_v63  ;;  %v4472_v39 = vmul.f32 -1.442695, %v6910_v14  ;;  %v3725_v33 = vadd.f32 1.0, %v5063_v11  ;;  %v1766_v60 = vmul.f32 %v5851_v1, %v6907_v57  ;;  %v2339_v37 = vmul.f32 %v6114_v58, %v6759_v16  ;;  %v6959_v19 = vld [vmem:[#allocation3 + $0x210] sm:$0xff]  ;;  %v8585_v11 = vld [vmem:[#allocation23_spill] sm:$0xff] }
 0x2f7   : > { %2911 = vmatprep.subr.mxu0 %v8576_v21  ;;  %4762 = vmatprep.subr.mxu1 %v8576_v21  ;;  %5074 = vrcp.f32 %v2706_v22  ;;  %v1967_v12 = vadd.f32 %v1935_v2, %v1867_v51  ;;  %v2440_v44 = vmul.f32 %v6122_v4, %v6768_v10  ;;  %v2372_v56 = vadd.f32 %v2340_v53, %v2271_v45 }
 0x2f8   : > { %v5065_v42 = vpop.eup %5064  ;;  %5076 = vpow2.f32 %v4472_v39  ;;  %v1798_v20 = vadd.f32 %v6639_v50, %v1766_v60  ;;  %v1866_v3 = vmul.f32 %v5860_v54, %v6919_v62  ;;  %v2541_v10 = vmul.f32 %v6249_v28, %v6778_v9  ;;  %v8587_v60 = vld [vmem:[#allocation11_spill] sm:$0xff] }
 0x2f9   : > { %v2705_v26 = vadd.f32 1.0, %v5065_v42  ;;  %5078 = vrcp.f32 %v3725_v33  ;;  %v2068_v16 = vadd.f32 %v2036_v38, %v1967_v12  ;;  %v2473_v17 = vadd.f32 %v2441_v7, %v2372_v56  ;;  %v2536_v38 = vld [vmem:[#allocation3 + $0x358] sm:$0xff] }
 0x2fa   : > { %v1898_v59 = vadd.f32 %v1866_v3, %v1798_v20  ;;  %v1966_v53 = vmul.f32 %v8544_v61, %v6930_v18  ;;  %v2067_v32 = vmul.f32 %v8547_v25, %v6932_v47  ;;  %v2168_v9 = vmul.f32 %v8548_v36, %v6937_v30  ;;  %v6980_v20 = vld [vmem:[#allocation3 + $0x100] sm:$0xff] }
 0x2fb   : > { %v5067_v40 = vpop.eup %5066  ;;  %5080 = vrcp.f32 %v2705_v26  ;;  %v2169_v29 = vadd.f32 %v2137_v34, %v2068_v16  ;;  %v6955_v2 = vadd.f32 %v2542_v41, %v2473_v17  ;;  %v2269_v63 = vmul.f32 %v8550_v6, %v6941_v49  ;;  %v6965_v34 = vld [vmem:[#allocation3 + $0x330] sm:$0xff]  ;;  %v6982_v3 = vld [vmem:[#allocation3 + $0x220] sm:$0xff] }
 0x2fc   : > { %v5069_v48 = vpop.eup %5068  ;;  %v2803_v0 = vmul.f32 %v5067_v40, %v6788_v5  ;;  %v1998_v27 = vadd.f32 %v1966_v53, %v1898_v59  ;;  %v1765_v51 = vmul.f32 %v5851_v1, %v6947_v8  ;;  %v2471_v33 = vmul.f32 %v6122_v4, %v2435_v23  ;;  %v6984_v26 = vld [vmem:[#allocation3 + $0x340] sm:$0xff]  ;;  %v6989_v59 = vld [vmem:[#allocation3 + $0xe8] sm:$0xff] }
 0x2fd   : > { %v6952_v7 = vpop.eup %5070  ;;  %v3820_v24 = vmul.f32 %v5069_v48, %v8582_v31  ;;  %v2270_v5 = vadd.f32 %v2238_v52, %v2169_v29  ;;  %v8586_v31 = vld [vmem:[#allocation22_spill] sm:$0xff]  ;;  %v4471_v41 = vmul.f32 -1.442695, %v6955_v2  ;;  %v2370_v52 = vmul.f32 %v6114_v58, %v2334_v43  ;;  %v2333_v29 = vld [vmem:[#allocation3 + $0x110] sm:$0xff]  ;;  %v6994_v43 = vld [vmem:[#allocation3 + $0x208] sm:$0xff] }
 0x2fe   : > { %2912 = vmatpush1.msra.mxu0 %v2803_v0  ;;  %4794 = vmatpush1.msra.mxu1 %v2803_v0  ;;  %v1336_v22 = vmul.f32 %v6952_v7, %v8585_v11  ;;  %5082 = vrcp.f32 %v8586_v31  ;;  %v2099_v39 = vadd.f32 %v2067_v32, %v1998_v27  ;;  %v1797_v42 = vadd.f32 %v6639_v50, %v1765_v51 }
 0x2ff   : > { %2913 = vmatprep.subr.mxu0 %v8576_v21  ;;  %4763 = vmatprep.subr.mxu1 %v8576_v21  ;;  %v2371_v45 = vadd.f32 %v2339_v37, %v2270_v5  ;;  %v1865_v56 = vmul.f32 %v5860_v54, %v6959_v19  ;;  %5084 = vpow2.f32 %v4471_v41  ;;  %v2572_v17 = vmul.f32 %v6249_v28, %v2536_v38  ;;  %v2434_v38 = vld [vmem:[#allocation3 + $0x230] sm:$0xff] }
 0x300   : > { %3899 = vrot.lane.b32.xlu0 %v3820_v24, %s5341_s21  ;;  %v6975_v12 = vmul.f32 %v1336_v22, %v8587_v60  ;;  %v5073_v16 = vpop.eup %5072  ;;  %v2200_v40 = vadd.f32 %v2168_v9, %v2099_v39  ;;  %v1965_v37 = vmul.f32 %v8544_v61, %v6965_v34  ;;  %v2066_v9 = vmul.f32 %v8547_v25, %v6980_v20  ;;  %v7006_v22 = vld [vmem:[#allocation3 + $0x328] sm:$0xff] }
 0x301   : > { %v2704_v53 = vadd.f32 1.0, %v5073_v16  ;;  %v2472_v32 = vadd.f32 %v2440_v44, %v2371_v45  ;;  %v1897_v0 = vadd.f32 %v1865_v56, %v1797_v42  ;;  %v2167_v24 = vmul.f32 %v8548_v36, %v6982_v3  ;;  %v2535_v42 = vld [vmem:[#allocation3 + $0x350] sm:$0xff] }
 0x302   : > { %v4522_v48 = vmul.f32 -1.442695, %v6975_v12  ;;  %1457 = vst.msk [vmem:[#allocation2 + $0xf1] sm:$0xff] %vm1382_vm2, %v6975_v12  ;;  %v2301_v23 = vadd.f32 %v2269_v63, %v2200_v40  ;;  %v2268_v27 = vmul.f32 %v8550_v6, %v6984_v26  ;;  %v1764_v11 = vmul.f32 %v5851_v1, %v6989_v59 }
 0x303   : > { %5086 = vrcp.f32 %v2704_v53  ;;  %v7002_v44 = vadd.f32 %v2541_v10, %v2472_v32  ;;  %v1997_v5 = vadd.f32 %v1965_v37, %v1897_v0  ;;  %v2369_v31 = vmul.f32 %v6114_v58, %v2333_v29  ;;  %v7018_v0 = vld [vmem:[#allocation3 + $0xe0] sm:$0xff] }
 0x304   : > { %v5075_v63 = vpop.eup %5074  ;;  %v2402_v51 = vadd.f32 %v2370_v52, %v2301_v23  ;;  %5088 = vpow2.f32 %v4522_v48  ;;  %v1864_v41 = vmul.f32 %v5860_v54, %v6994_v43  ;;  %v1796_v56 = vadd.f32 %v6639_v50, %v1764_v11 }
 0x305   : > { %v5077_v39 = vpop.eup %5076  ;;  %v2802_v45 = vmul.f32 %v5075_v63, %v6836_v13  ;;  %v4470_v10 = vmul.f32 -1.442695, %v7002_v44  ;;  %v2098_v60 = vadd.f32 %v2066_v9, %v1997_v5  ;;  %v2470_v52 = vmul.f32 %v6122_v4, %v2434_v38  ;;  %v7033_v63 = vld [vmem:[#allocation3 + $0x200] sm:$0xff] }
 0x306   : > { %v5079_v16 = vpop.eup %5078  ;;  %v2703_v40 = vadd.f32 1.0, %v5077_v39  ;;  %v2503_v37 = vadd.f32 %v2471_v33, %v2402_v51  ;;  %v1964_v53 = vmul.f32 %v8544_v61, %v7006_v22  ;;  %v1896_v48 = vadd.f32 %v1864_v41, %v1796_v56  ;;  %v8588_v39 = vld [vmem:[#allocation25_spill] sm:$0xff]  ;;  %v7046_v56 = vld [vmem:[#allocation3 + $0x320] sm:$0xff] }
 0x307   : > { %2914 = vmatpush1.msra.mxu0 %v2802_v45  ;;  %4795 = vmatpush1.msra.mxu1 %v2802_v45  ;;  %v3821_v32 = vmul.f32 %v5079_v16, %v8583_v55  ;;  %5090 = vpow2.f32 %v4470_v10  ;;  %v2199_v13 = vadd.f32 %v2167_v24, %v2098_v60  ;;  %v2571_v5 = vmul.f32 %v6249_v28, %v2535_v42 }
 0x308   : > { %v5081_v29 = vpop.eup %5080  ;;  %2915 = vmatprep.subr.mxu0 %v8576_v21  ;;  %4764 = vmatprep.subr.mxu1 %v8576_v21  ;;  %5092 = vrcp.f32 %v2703_v40  ;;  %v7022_v33 = vadd.f32 %v2572_v17, %v2503_v37  ;;  %v2065_v55 = vmul.f32 %v8547_v25, %v6907_v57  ;;  %v1996_v11 = vadd.f32 %v1964_v53, %v1896_v48  ;;  %v2830_v40 = vld [vmem:[%s8434_s4 + $0x8] sm:$0xff] }
 0x309   : > { %v1491_v23 = vld [vmem:[#allocation2 + $0xf0] sm:$0xff]  ;;  %v2801_v24 = vmul.f32 %v5081_v29, %v6856_v46  ;;  %3901 = vrot.lane.b32.xlu0 %v3821_v32, %s5341_s21  ;;  %v2300_v38 = vadd.f32 %v2268_v27, %v2199_v13  ;;  %v2166_v17 = vmul.f32 %v8548_v36, %v6919_v62  ;;  %v2267_v46 = vmul.f32 %v8550_v6, %v6930_v18 }
 0x30a   : > { %v1563_v9 = vld [vmem:[#allocation2 + $0xf1] sm:$0xff]  ;;  %1527 = vst.msk [vmem:[#allocation3 + $0xa0] sm:$0xff] %vm1382_vm2, %v1491_v23  ;;  %v4501_v41 = vmul.f32 -1.442695, %v7022_v33  ;;  %v1337_v45 = vmul.f32 %v6952_v7, %v8588_v39  ;;  %v1763_v10 = vmul.f32 %v5851_v1, %v7018_v0  ;;  %v2097_v60 = vadd.f32 %v2065_v55, %v1996_v11  ;;  %2957 = vmatprep.mubr.f32.mxu0 %v2830_v40  ;;  %v7090_v40 = vld [vmem:[#allocation3 + $0x318] sm:$0xff] }
 0x30b   : > { %1600 = vst.msk [vmem:[#allocation3 + $0x1c0] sm:$0xff] %vm1382_vm2, %v1563_v9  ;;  %v7035_v51 = vpop.eup %5082  ;;  %2916 = vmatpush1.msra.mxu0 %v2801_v24  ;;  %4796 = vmatpush1.msra.mxu1 %v2801_v24  ;;  %v2401_v27 = vadd.f32 %v2369_v31, %v2300_v38  ;;  %v2368_v42 = vmul.f32 %v6114_v58, %v6932_v47  ;;  %v7049_v16 = vmul.f32 -1.442695, %v6482_v35  ;;  %v2844_v7 = vld [vmem:[%s8434_s4 + $0x78] sm:$0xff]  ;;  %v8589_v31 = vld [vmem:[#allocation10_spill] sm:$0xff] }
 0x30c   : > { %2917 = vmatprep.subr.mxu0 %v8576_v21  ;;  %4765 = vmatprep.subr.mxu1 %v8576_v21  ;;  %5094 = vpow2.f32 %v4501_v41  ;;  %v7060_v47 = vmul.f32 %v8589_v31, %v1337_v45  ;;  %v1795_v37 = vadd.f32 %v6639_v50, %v1763_v10  ;;  %v1863_v53 = vmul.f32 %v5860_v54, %v7033_v63  ;;  %v5085_v32 = vpop.eup %5084  ;;  %v7069_v9 = vld [vmem:[#allocation3 + $0xd8] sm:$0xff] }
 0x30d   : > { %v2502_v13 = vadd.f32 %v2470_v52, %v2401_v27  ;;  %v2198_v48 = vadd.f32 %v2166_v17, %v2097_v60  ;;  %v2469_v29 = vmul.f32 %v6122_v4, %v6937_v30  ;;  %v2570_v23 = vmul.f32 %v6249_v28, %v6941_v49  ;;  %2992 = vmatprep.mubr.f32.mxu1 %v2844_v7  ;;  %v7082_v17 = vld [vmem:[#allocation3 + $0x1f8] sm:$0xff] }
 0x30e   : > { %v2702_v55 = vadd.f32 1.0, %v5085_v32  ;;  %1458 = vst.msk [vmem:[#allocation2 + $0xf9] sm:$0xff] %vm1382_vm2, %v7060_v47  ;;  %v4523_v50 = vmul.f32 -1.442695, %v7060_v47  ;;  %v1895_v24 = vadd.f32 %v1863_v53, %v1795_v37  ;;  %v1963_v52 = vmul.f32 %v8544_v61, %v7046_v56  ;;  %v7095_v37 = vld [vmem:[%s8433_s3] ss:$0 sm:$0xff] }
 0x30f   : > { %v7076_v38 = vadd.f32 %v2571_v5, %v2502_v13  ;;  %v2299_v30 = vadd.f32 %v2267_v46, %v2198_v48  ;;  %v2064_v49 = vmul.f32 %v8547_v25, %v6947_v8  ;;  %v2165_v11 = vmul.f32 %v8548_v36, %v6959_v19 }
 0x310   : > { %v5087_v41 = vpop.eup %5086  ;;  %5096 = vrcp.f32 %v2702_v55  ;;  %v1995_v39 = vadd.f32 %v1963_v52, %v1895_v24  ;;  %v2266_v45 = vmul.f32 %v8550_v6, %v6965_v34  ;;  %v1762_v10 = vmul.f32 %v5851_v1, %v7069_v9  ;;  %v7108_v52 = vld [vmem:[#allocation3 + $0xd0] sm:$0xff] }
 0x311   : > { %v5089_v5 = vpop.eup %5088  ;;  %v2800_v46 = vmul.f32 %v5087_v41, %v6884_v15  ;;  %v4500_v27 = vmul.f32 -1.442695, %v7076_v38  ;;  %v2400_v60 = vadd.f32 %v2368_v42, %v2299_v30  ;;  %5098 = vpow2.f32 %v4523_v50 }
 0x312   : > { %v3727_v7 = vadd.f32 1.0, %v5089_v5  ;;  %v2096_v31 = vadd.f32 %v2064_v49, %v1995_v39  ;;  %v1794_v53 = vadd.f32 %v7095_v37, %v1762_v10  ;;  %v1862_v32 = vmul.f32 %v5860_v54, %v7082_v17 }
 0x313   : > { %2918 = vmatpush1.msra.mxu0 %v2800_v46  ;;  %4797 = vmatpush1.msra.mxu1 %v2800_v46  ;;  %5100 = vpow2.f32 %v4500_v27  ;;  %v2501_v15 = vadd.f32 %v2469_v29, %v2400_v60  ;;  %v2367_v42 = vmul.f32 %v6114_v58, %v6980_v20  ;;  %v2468_v13 = vmul.f32 %v6122_v4, %v6982_v3  ;;  %v7122_v60 = vld [vmem:[#allocation3 + $0x1f0] sm:$0xff] }
 0x314   : > { %v5091_v48 = vpop.eup %5090  ;;  %2919 = vmatprep.subr.mxu0 %v8576_v21  ;;  %4766 = vmatprep.subr.mxu1 %v8576_v21  ;;  %5102 = vrcp.f32 %v3727_v7  ;;  %v2197_v55 = vadd.f32 %v2165_v11, %v2096_v31  ;;  %v1894_v50 = vadd.f32 %v1862_v32, %v1794_v53  ;;  %v1962_v24 = vmul.f32 %v8544_v61, %v7090_v40  ;;  %v8590_v7 = vld [vmem:[#allocation24_spill] sm:$0xff] }
 0x315   : > { %v5093_v29 = vpop.eup %5092  ;;  %v2701_v30 = vadd.f32 1.0, %v5091_v48  ;;  %v7110_v49 = vadd.f32 %v2570_v23, %v2501_v15  ;;  %v1564_v20 = vld [vmem:[#allocation2 + $0xf9] sm:$0xff]  ;;  %v2569_v39 = vmul.f32 %v6249_v28, %v6984_v26  ;;  %v2063_v10 = vmul.f32 %v8547_v25, %v6989_v59 }
 0x316   : > { %v1637_v41 = vld [vmem:[#allocation2 + $0xfa] sm:$0xff]  ;;  %v2799_v11 = vmul.f32 %v5093_v29, %v6910_v14  ;;  %1601 = vst.msk [vmem:[#allocation3 + $0x1c8] sm:$0xff] %vm1382_vm2, %v1564_v20  ;;  %v1636_v5 = vld [vmem:[#allocation2 + $0xf2] sm:$0xff]  ;;  %v2298_v23 = vadd.f32 %v2266_v45, %v2197_v55  ;;  %v1994_v46 = vadd.f32 %v1962_v24, %v1894_v50  ;;  %v2164_v27 = vmul.f32 %v8548_v36, %v6994_v43 }
 0x317   : > { %v1492_v3 = vld [vmem:[#allocation2 + $0xf8] sm:$0xff]  ;;  %1674 = vst.msk [vmem:[#allocation3 + $0x2e8] sm:$0xff] %vm1382_vm2, %v1637_v41  ;;  %5104 = vrcp.f32 %v2701_v30  ;;  %v4499_v26 = vmul.f32 -1.442695, %v7110_v49  ;;  %1673 = vst.msk [vmem:[#allocation3 + $0x2e0] sm:$0xff] %vm1382_vm2, %v1636_v5  ;;  %v2265_v14 = vmul.f32 %v8550_v6, %v7006_v22  ;;  %v1338_v31 = vmul.f32 %v7035_v51, %v8590_v7  ;;  %v7132_v15 = vld [vmem:[#allocation3 + $0x310] sm:$0xff] }
 0x318   : > { %1528 = vst.msk [vmem:[#allocation3 + $0xa8] sm:$0xff] %vm1382_vm2, %v1492_v3  ;;  %2920 = vmatpush1.msra.mxu0 %v2799_v11  ;;  %4798 = vmatpush1.msra.mxu1 %v2799_v11  ;;  %v2399_v45 = vadd.f32 %v2367_v42, %v2298_v23  ;;  %v2095_v53 = vadd.f32 %v2063_v10, %v1994_v46  ;;  %5106 = vpow2.f32 %v7049_v16  ;;  %v8591_v50 = vld [vmem:[#allocation13_spill] sm:$0xff]  ;;  %v7156_v23 = vld [vmem:[#allocation3 + $0xc8] sm:$0xff] }
 0x319   : > { %v1761_v32 = vmul.f32 %v5851_v1, %v7108_v52  ;;  %v5095_v48 = vpop.eup %5094  ;;  %2921 = vmatprep.subr.mxu0 %v8576_v21  ;;  %4767 = vmatprep.subr.mxu1 %v8576_v21  ;;  %5108 = vpow2.f32 %v4499_v26  ;;  %v2366_v55 = vmul.f32 %v6114_v58, %v6907_v57  ;;  %v7140_v24 = vmul.f32 %v1338_v31, %v8591_v50 }
 0x31a   : > { %v1861_v42 = vmul.f32 %v5860_v54, %v7122_v60  ;;  %v2732_v29 = vadd.f32 1.0, %v5095_v48  ;;  %v2500_v30 = vadd.f32 %v2468_v13, %v2399_v45  ;;  %v2196_v20 = vadd.f32 %v2164_v27, %v2095_v53  ;;  %v7166_v45 = vld [vmem:[#allocation3 + $0x1e8] sm:$0xff] }
 0x31b   : > { %v1793_v16 = vadd.f32 %v7095_v37, %v1761_v32  ;;  %v2467_v41 = vmul.f32 %v6122_v4, %v6919_v62  ;;  %v2568_v3 = vmul.f32 %v6249_v28, %v6930_v18  ;;  %1459 = vst.msk [vmem:[#allocation2 + $0x109] sm:$0xff] %vm1382_vm2, %v7140_v24  ;;  %v4524_v57 = vmul.f32 -1.442695, %v7140_v24 }
 0x31c   : > { %v1961_v10 = vmul.f32 %v8544_v61, %v7132_v15  ;;  %5110 = vrcp.f32 %v2732_v29  ;;  %v7154_v11 = vadd.f32 %v2569_v39, %v2500_v30  ;;  %v2297_v13 = vadd.f32 %v2265_v14, %v2196_v20 }
 0x31d   : > { %v1893_v5 = vadd.f32 %v1861_v42, %v1793_v16  ;;  %v5097_v46 = vpop.eup %5096  ;;  %5112 = vpow2.f32 %v4524_v57  ;;  %v2062_v62 = vmul.f32 %v8547_v25, %v7018_v0  ;;  %v2163_v18 = vmul.f32 %v8548_v36, %v7033_v63  ;;  %v7174_v42 = vld [vmem:[#allocation3 + $0x308] sm:$0xff] }
 0x31e   : > { %v2264_v27 = vmul.f32 %v8550_v6, %v7046_v56  ;;  %v5099_v26 = vpop.eup %5098  ;;  %v2798_v7 = vmul.f32 %v5097_v46, %v6955_v2  ;;  %v4498_v39 = vmul.f32 -1.442695, %v7154_v11  ;;  %v2398_v14 = vadd.f32 %v2366_v55, %v2297_v13  ;;  %v7188_v46 = vld [vmem:[#allocation3 + $0xc0] sm:$0xff] }
 0x31f   : > { %v1993_v31 = vadd.f32 %v1961_v10, %v1893_v5  ;;  %v3728_v53 = vadd.f32 1.0, %v5099_v26  ;;  %v2365_v32 = vmul.f32 %v6114_v58, %v6947_v8  ;;  %v2466_v48 = vmul.f32 %v6122_v4, %v6959_v19 }
 0x320   : > { %v1760_v50 = vmul.f32 %v5851_v1, %v7156_v23  ;;  %v5101_v29 = vpop.eup %5100  ;;  %2922 = vmatpush1.msra.mxu0 %v2798_v7  ;;  %4799 = vmatpush1.msra.mxu1 %v2798_v7  ;;  %5114 = vpow2.f32 %v4498_v39  ;;  %v2499_v2 = vadd.f32 %v2467_v41, %v2398_v14  ;;  %v2567_v30 = vmul.f32 %v6249_v28, %v6965_v34  ;;  %v8592_v14 = vld [vmem:[#allocation9_spill] sm:$0xff] }
 0x321   : > { %v2094_v55 = vadd.f32 %v2062_v62, %v1993_v31  ;;  %v5103_v20 = vpop.eup %5102  ;;  %2923 = vmatprep.subr.mxu0 %v8576_v21  ;;  %4768 = vmatprep.subr.mxu1 %v8576_v21  ;;  %v2731_v8 = vadd.f32 1.0, %v5101_v29  ;;  %5116 = vrcp.f32 %v3728_v53  ;;  %v1860_v16 = vmul.f32 %v5860_v54, %v7166_v45  ;;  %v7202_v53 = vld [vmem:[#allocation3 + $0x1e0] sm:$0xff] }
 0x322   : > { %v1792_v19 = vadd.f32 %v7095_v37, %v1760_v50  ;;  %v3823_v57 = vmul.f32 %v5103_v20, %v6975_v12  ;;  %v7184_v10 = vadd.f32 %v2568_v3, %v2499_v2  ;;  %v1493_v41 = vld [vmem:[#allocation2 + $0x108] sm:$0xff]  ;;  %v1960_v34 = vmul.f32 %v8544_v61, %v7174_v42 }
 0x323   : > { %v1565_v13 = vld [vmem:[#allocation2 + $0x109] sm:$0xff]  ;;  %v2195_v5 = vadd.f32 %v2163_v18, %v2094_v55  ;;  %5118 = vrcp.f32 %v2731_v8  ;;  %1529 = vst.msk [vmem:[#allocation3 + $0xb0] sm:$0xff] %vm1382_vm2, %v1493_v41  ;;  %v2061_v26 = vmul.f32 %v8547_v25, %v7069_v9  ;;  %v2162_v12 = vmul.f32 %v8548_v36, %v7082_v17 }
 0x324   : > { %1602 = vst.msk [vmem:[#allocation3 + $0x1d0] sm:$0xff] %vm1382_vm2, %v1565_v13  ;;  %v1892_v62 = vadd.f32 %v1860_v16, %v1792_v19  ;;  %v5105_v3 = vpop.eup %5104  ;;  %3905 = vrot.lane.b32.xlu0 %v3823_v57, %s5341_s21  ;;  %v4497_v18 = vmul.f32 -1.442695, %v7184_v10  ;;  %v2263_v39 = vmul.f32 %v8550_v6, %v7090_v40  ;;  %v1339_v31 = vmul.f32 %v7035_v51, %v8592_v14  ;;  %v8593_v16 = vld [vmem:[#allocation12_spill] sm:$0xff] }
 0x325   : > { %v2296_v7 = vadd.f32 %v2264_v27, %v2195_v5  ;;  %v7204_v50 = vpop.eup %5106  ;;  %v2797_v29 = vmul.f32 %v5105_v3, %v7002_v44  ;;  %v2364_v55 = vmul.f32 %v6114_v58, %v6989_v59  ;;  %v1759_v20 = vmul.f32 %v5851_v1, %v7188_v46  ;;  %v7211_v27 = vld [vmem:[#allocation3 + $0x300] sm:$0xff] }
 0x326   : > { %v1992_v2 = vadd.f32 %v1960_v34, %v1892_v62  ;;  %v5109_v8 = vpop.eup %5108  ;;  %5120 = vpow2.f32 %v4497_v18  ;;  %v2465_v51 = vmul.f32 %v6122_v4, %v6994_v43  ;;  %v7216_v57 = vmul.f32 %v8593_v16, %v1339_v31 }
 0x327   : > { %v2397_v19 = vadd.f32 %v2365_v32, %v2296_v7  ;;  %2924 = vmatpush1.msra.mxu0 %v2797_v29  ;;  %4800 = vmatpush1.msra.mxu1 %v2797_v29  ;;  %v2730_v44 = vadd.f32 1.0, %v5109_v8  ;;  %v1791_v59 = vadd.f32 %v7095_v37, %v1759_v20  ;;  %v1859_v13 = vmul.f32 %v5860_v54, %v7202_v53 }
 0x328   : > { %v2093_v41 = vadd.f32 %v2061_v26, %v1992_v2  ;;  %2925 = vmatprep.subr.mxu0 %v8576_v21  ;;  %4769 = vmatprep.subr.mxu1 %v8576_v21  ;;  %v2566_v43 = vmul.f32 %v6249_v28, %v7006_v22  ;;  %1460 = vst.msk [vmem:[#allocation2 + $0x111] sm:$0xff] %vm1382_vm2, %v7216_v57  ;;  %v4525_v5 = vmul.f32 -1.442695, %v7216_v57 }
 0x329   : > { %v2498_v32 = vadd.f32 %v2466_v48, %v2397_v19  ;;  %v1959_v34 = vmul.f32 %v8544_v61, %v7211_v27  ;;  %v5111_v62 = vpop.eup %5110  ;;  %5122 = vrcp.f32 %v2730_v44  ;;  %v1891_v3 = vadd.f32 %v1859_v13, %v1791_v59 }
 0x32a   : > { %v2194_v26 = vadd.f32 %v2162_v12, %v2093_v41  ;;  %v2060_v18 = vmul.f32 %v8547_v25, %v7108_v52  ;;  %v5113_v7 = vpop.eup %5112  ;;  %v2828_v48 = vmul.f32 %v5111_v62, %v7022_v33  ;;  %5124 = vpow2.f32 %v4525_v5 }
 0x32b   : > { %v7233_v14 = vadd.f32 %v2567_v30, %v2498_v32  ;;  %v2161_v22 = vmul.f32 %v8548_v36, %v7122_v60  ;;  %v3729_v31 = vadd.f32 1.0, %v5113_v7  ;;  %v1991_v2 = vadd.f32 %v1959_v34, %v1891_v3  ;;  %v7264_v13 = vld [vmem:[#allocation3 + $0x1d0] sm:$0xff] }
 0x32c   : > { %v2295_v29 = vadd.f32 %v2263_v39, %v2194_v26  ;;  %v2262_v20 = vmul.f32 %v8550_v6, %v7132_v15  ;;  %2926 = vmatpush2.msra.mxu0 %v2828_v48  ;;  %4801 = vmatpush2.msra.mxu1 %v2828_v48  ;;  %v2363_v8 = vmul.f32 %v6114_v58, %v7018_v0  ;;  %v7254_v0 = vld [vmem:[#allocation3 + $0xb0] sm:$0xff]  ;;  %v3731_v3 = vadd.f32 1.0, %v7204_v50 }
 0x32d   : > { %8594 = vst [vmem:[#allocation16_spill] sm:$0xff] %v7233_v14  ;;  %v4496_v12 = vmul.f32 -1.442695, %v7233_v14  ;;  %v2464_v33 = vmul.f32 %v6122_v4, %v7033_v63  ;;  %v7246_v30 = vmul.f32 %v6249_v28, %v7046_v56  ;;  %v5115_v19 = vpop.eup %5114  ;;  %2927 = vmatprep.subr.mxu0 %v8576_v21  ;;  %4770 = vmatprep.subr.mxu1 %v8576_v21  ;;  %5126 = vrcp.f32 %v3729_v31 }
 0x32e   : > { %v2396_v39 = vadd.f32 %v2364_v55, %v2295_v29  ;;  %v2092_v16 = vadd.f32 %v2060_v18, %v1991_v2  ;;  %v7252_v44 = vmul.f32 %v8547_v25, %v7156_v23  ;;  %v5117_v41 = vpop.eup %5116  ;;  %v2729_v63 = vadd.f32 1.0, %v5115_v19  ;;  %v7290_v29 = vld [vmem:[#allocation3 + $0xa8] sm:$0xff] }
 0x32f   : > { %5128 = vpow2.f32 %v4496_v12  ;;  %v7258_v56 = vmul.f32 %v8548_v36, %v7166_v45  ;;  %v7262_v59 = vmul.f32 %v8550_v6, %v7174_v42  ;;  %v3824_v55 = vmul.f32 %v5117_v41, %v7060_v47  ;;  %v1494_v5 = vld [vmem:[#allocation2 + $0x110] sm:$0xff] }
 0x330   : > { %v2497_v32 = vadd.f32 %v2465_v51, %v2396_v39  ;;  %v1566_v34 = vld [vmem:[#allocation2 + $0x111] sm:$0xff]  ;;  %v2193_v26 = vadd.f32 %v2161_v22, %v2092_v16  ;;  %v5119_v18 = vpop.eup %5118  ;;  %5130 = vrcp.f32 %v2729_v63  ;;  %1530 = vst.msk [vmem:[#allocation3 + $0xb8] sm:$0xff] %vm1382_vm2, %v1494_v5  ;;  %v7273_v48 = vmul.f32 %v6114_v58, %v7069_v9 }
 0x331   : > { %v1638_v62 = vld [vmem:[#allocation2 + $0x10a] sm:$0xff]  ;;  %1603 = vst.msk [vmem:[#allocation3 + $0x1d8] sm:$0xff] %vm1382_vm2, %v1566_v34  ;;  %v1639_v7 = vld [vmem:[#allocation2 + $0x112] sm:$0xff]  ;;  %v7277_v47 = vmul.f32 %v6122_v4, %v7082_v17  ;;  %v1757_v50 = vmul.f32 %v5851_v1, %v7254_v0  ;;  %v2827_v51 = vmul.f32 %v5119_v18, %v7076_v38  ;;  %3907 = vrot.lane.b32.xlu0 %v3824_v55, %s5341_s21  ;;  %5132 = vrcp.f32 %v3731_v3 }
 0x332   : > { %1675 = vst.msk [vmem:[#allocation3 + $0x2f0] sm:$0xff] %vm1382_vm2, %v1638_v62  ;;  %v7283_v22 = vadd.f32 %v2566_v43, %v2497_v32  ;;  %1676 = vst.msk [vmem:[#allocation3 + $0x2f8] sm:$0xff] %vm1382_vm2, %v1639_v7  ;;  %v2294_v31 = vadd.f32 %v2262_v20, %v2193_v26  ;;  %v7288_v9 = vmul.f32 %v6249_v28, %v7090_v40  ;;  %v7306_v39 = vld [vmem:[#allocation3 + $0x1c8] sm:$0xff]  ;;  %v7326_v62 = vld [vmem:[#allocation3 + $0xa0] sm:$0xff] }
 0x333   : > { %v1789_v17 = vadd.f32 %v7095_v37, %v1757_v50  ;;  %v1857_v2 = vmul.f32 %v5860_v54, %v7264_v13  ;;  %v2058_v38 = vmul.f32 %v8547_v25, %v7188_v46  ;;  %v5121_v43 = vpop.eup %5120  ;;  %2928 = vmatpush2.msra.mxu0 %v2827_v51  ;;  %4802 = vmatpush2.msra.mxu1 %v2827_v51  ;;  %v7308_v16 = vld [vmem:[#allocation3 + $0x2e8] sm:$0xff] }
 0x334   : > { %8595 = vst [vmem:[#allocation29_spill] sm:$0xff] %v7283_v22  ;;  %v4495_v20 = vmul.f32 -1.442695, %v7283_v22  ;;  %v2395_v12 = vadd.f32 %v2363_v8, %v2294_v31  ;;  %v7300_v40 = vmul.f32 %v8548_v36, %v7202_v53  ;;  %v7304_v19 = vmul.f32 %v8550_v6, %v7211_v27  ;;  %2929 = vmatprep.subr.mxu0 %v8576_v21 }
 0x335   : > { %4771 = vmatprep.subr.mxu1 %v8576_v21  ;;  %v2728_v41 = vadd.f32 1.0, %v5121_v43  ;;  %v7314_v8 = vmul.f32 %v6114_v58, %v7108_v52  ;;  %v7318_v63 = vmul.f32 %v6122_v4, %v7122_v60  ;;  %v1756_v55 = vmul.f32 %v5851_v1, %v7290_v29  ;;  %8596 = vst [vmem:[#allocation8_spill] sm:$0xff] %v7326_v62 }
 0x336   : > { %5134 = vpow2.f32 %v4495_v20  ;;  %v2496_v32 = vadd.f32 %v2464_v33, %v2395_v12  ;;  %v1889_v5 = vadd.f32 %v1857_v2, %v1789_v17  ;;  %v7324_v34 = vmul.f32 %v6249_v28, %v7132_v15  ;;  %v5123_v26 = vpop.eup %5122 }
 0x337   : > { %5136 = vrcp.f32 %v2728_v41  ;;  %v1788_v52 = vadd.f32 %v7095_v37, %v1756_v55  ;;  %v1856_v60 = vmul.f32 %v5860_v54, %v7306_v39  ;;  %v1956_v3 = vmul.f32 %v8544_v61, %v7308_v16  ;;  %v5125_v18 = vpop.eup %5124  ;;  %v7337_v15 = vld [vmem:[#allocation3 + $0xb8] sm:$0xff] }
 0x338   : > { %v2826_v33 = vmul.f32 %v5123_v26, %v7110_v49  ;;  %v7335_v7 = vadd.f32 %v7246_v30, %v2496_v32  ;;  %v7339_v50 = vld [vmem:[#allocation3 + $0x1d8] sm:$0xff]  ;;  %v7345_v31 = vmul.f32 %v6114_v58, %v7156_v23  ;;  %v7349_v17 = vmul.f32 %v6122_v4, %v7166_v45 }
 0x339   : > { %v7341_v51 = vld [vmem:[#allocation3 + $0x2f0] sm:$0xff]  ;;  %v3730_v2 = vadd.f32 1.0, %v5125_v18  ;;  %v1758_v49 = vmul.f32 %v5851_v1, %v7337_v15  ;;  %v7353_v30 = vld [vmem:[#allocation3 + $0x2f8] sm:$0xff]  ;;  %v1755_v20 = vmul.f32 %v5851_v1, %v7326_v62  ;;  %v1858_v45 = vmul.f32 %v5860_v54, %v7339_v50 }
 0x33a   : > { %8597 = vst [vmem:[#allocation15_spill] sm:$0xff] %v7335_v7  ;;  %v1957_v43 = vmul.f32 %v8544_v61, %v7341_v51  ;;  %2930 = vmatpush2.msra.mxu0 %v2826_v33  ;;  %4803 = vmatpush2.msra.mxu1 %v2826_v33  ;;  %v4494_v23 = vmul.f32 -1.442695, %v7335_v7  ;;  %v1888_v12 = vadd.f32 %v1856_v60, %v1788_v52  ;;  %v5127_v55 = vpop.eup %5126  ;;  %v7371_v33 = vld [vmem:[#allocation3 + $0x1c0] sm:$0xff] }
 0x33b   : > { %v7364_v41 = vmul.f32 %v6249_v28, %v7174_v42  ;;  %2931 = vmatprep.subr.mxu0 %v8576_v21  ;;  %4772 = vmatprep.subr.mxu1 %v8576_v21  ;;  %5138 = vrcp.f32 %v3730_v2  ;;  %v1790_v32 = vadd.f32 %v7095_v37, %v1758_v49  ;;  %v1958_v26 = vmul.f32 %v8544_v61, %v7353_v30  ;;  %v7377_v49 = vld [vmem:[#allocation3 + $0x2e0] sm:$0xff] }
 0x33c   : > { %v1989_v18 = vadd.f32 %v1957_v43, %v1889_v5  ;;  %v5129_v7 = vpop.eup %5128  ;;  %v3825_v52 = vmul.f32 %v5127_v55, %v7140_v24  ;;  %5140 = vpow2.f32 %v4494_v23  ;;  %v1988_v42 = vadd.f32 %v1956_v3, %v1888_v12 }
 0x33d   : > { %v2057_v60 = vmul.f32 %v8547_v25, %v7337_v15  ;;  %v2727_v22 = vadd.f32 1.0, %v5129_v7  ;;  %v1890_v62 = vadd.f32 %v1858_v45, %v1790_v32  ;;  %v1787_v2 = vadd.f32 %v7095_v37, %v1755_v20  ;;  %v5131_v14 = vpop.eup %5130 }
 0x33e   : > { %v2090_v35 = vadd.f32 %v2058_v38, %v1989_v18  ;;  %3909 = vrot.lane.b32.xlu0 %v3825_v52, %s5341_s21  ;;  %v2158_v43 = vmul.f32 %v8548_v36, %v7339_v50  ;;  %v2259_v24 = vmul.f32 %v8550_v6, %v7353_v30  ;;  %v1855_v3 = vmul.f32 %v5860_v54, %v7371_v33  ;;  %v7388_v23 = vpop.eup %5132  ;;  %v7394_v18 = vld [vmem:[#allocation3 + $0x98] sm:$0xff] }
 0x33f   : > { %v2089_v5 = vadd.f32 %v2057_v60, %v1988_v42  ;;  %v2825_v7 = vmul.f32 %v5131_v14, %v7154_v11  ;;  %5142 = vrcp.f32 %v2727_v22  ;;  %v1990_v38 = vadd.f32 %v1958_v26, %v1890_v62  ;;  %v7400_v22 = vld [vmem:[#allocation3 + $0x1b8] sm:$0xff] }
 0x340   : > { %v2191_v20 = vadd.f32 %v7300_v40, %v2090_v35  ;;  %v1887_v12 = vadd.f32 %v1855_v3, %v1787_v2  ;;  %v1955_v55 = vmul.f32 %v8544_v61, %v7377_v49  ;;  %v2056_v32 = vmul.f32 %v8547_v25, %v7254_v0  ;;  %v7412_v2 = vld [vmem:[#allocation3 + $0x2d8] sm:$0xff] }
 0x341   : > { %v2190_v45 = vadd.f32 %v2158_v43, %v2089_v5  ;;  %2932 = vmatpush2.msra.mxu0 %v2825_v7  ;;  %4804 = vmatpush2.msra.mxu1 %v2825_v7  ;;  %v2091_v11 = vadd.f32 %v7252_v44, %v1990_v38  ;;  %v2157_v35 = vmul.f32 %v8548_v36, %v7264_v13 }
 0x342   : > { %v2292_v14 = vadd.f32 %v7304_v19, %v2191_v20  ;;  %2933 = vmatprep.subr.mxu0 %v8576_v21  ;;  %4773 = vmatprep.subr.mxu1 %v8576_v21  ;;  %v1987_v62 = vadd.f32 %v1955_v55, %v1887_v12  ;;  %v2258_v26 = vmul.f32 %v8550_v6, %v7341_v51 }
 0x343   : > { %v2291_v40 = vadd.f32 %v2259_v24, %v2190_v45  ;;  %v5135_v52 = vpop.eup %5134  ;;  %v2192_v42 = vadd.f32 %v7258_v56, %v2091_v11  ;;  %v2359_v19 = vmul.f32 %v6114_v58, %v7188_v46  ;;  %v1754_v60 = vmul.f32 %v5851_v1, %v7394_v18 }
 0x344   : > { %v2393_v44 = vadd.f32 %v7314_v8, %v2292_v14  ;;  %v5137_v5 = vpop.eup %5136  ;;  %v2726_v43 = vadd.f32 1.0, %v5135_v52  ;;  %v2088_v3 = vadd.f32 %v2056_v32, %v1987_v62  ;;  %v1854_v7 = vmul.f32 %v5860_v54, %v7400_v22 }
 0x345   : > { %v2392_v24 = vadd.f32 %v7345_v31, %v2291_v40  ;;  %v2824_v56 = vmul.f32 %v5137_v5, %v7184_v10  ;;  %v2293_v8 = vadd.f32 %v7262_v59, %v2192_v42  ;;  %v1786_v46 = vadd.f32 %v7095_v37, %v1754_v60  ;;  %v8598_v5 = vld [vmem:[#allocation16_spill] sm:$0xff] }
 0x346   : > { %v2494_v38 = vadd.f32 %v7318_v63, %v2393_v44  ;;  %5144 = vrcp.f32 %v2726_v43  ;;  %v2189_v45 = vadd.f32 %v2157_v35, %v2088_v3  ;;  %v1954_v12 = vmul.f32 %v8544_v61, %v7412_v2  ;;  %v7455_v3 = vld [vmem:[#allocation3 + $0x1b0] sm:$0xff] }
 0x347   : > { %v2493_v20 = vadd.f32 %v7349_v17, %v2392_v24  ;;  %2934 = vmatpush2.msra.mxu0 %v2824_v56  ;;  %4805 = vmatpush2.msra.mxu1 %v2824_v56  ;;  %v2394_v31 = vadd.f32 %v7273_v48, %v2293_v8  ;;  %v1886_v10 = vadd.f32 %v1854_v7, %v1786_v46  ;;  %v7461_v8 = vld [vmem:[#allocation3 + $0x2d0] sm:$0xff] }
 0x348   : > { %v7426_v55 = vadd.f32 %v7324_v34, %v2494_v38  ;;  %v5139_v59 = vpop.eup %5138  ;;  %2935 = vmatprep.subr.mxu0 %v8576_v21  ;;  %4774 = vmatprep.subr.mxu1 %v8576_v21  ;;  %v2290_v17 = vadd.f32 %v2258_v26, %v2189_v45  ;;  %v2055_v32 = vmul.f32 %v8547_v25, %v7290_v29  ;;  %v1716_v45 = vld [vmem:[#allocation3 + $0x88] sm:$0xff] }
 0x349   : > { %v7431_v63 = vadd.f32 %v7364_v41, %v2493_v20  ;;  %v5141_v11 = vpop.eup %5140  ;;  %v3826_v14 = vmul.f32 %v5139_v59, %v7216_v57  ;;  %v2495_v48 = vadd.f32 %v7277_v47, %v2394_v31  ;;  %v1986_v35 = vadd.f32 %v1954_v12, %v1886_v10  ;;  %v7447_v47 = vld [vmem:[#allocation3 + $0x90] sm:$0xff] }
 0x34a   : > { %v4492_v34 = vmul.f32 -1.442695, %v7426_v55  ;;  %v2725_v40 = vadd.f32 1.0, %v5141_v11  ;;  %v2391_v52 = vadd.f32 %v2359_v19, %v2290_v17  ;;  %v2460_v41 = vmul.f32 %v6122_v4, %v7202_v53  ;;  %v1816_v17 = vld [vmem:[#allocation3 + $0x1a8] sm:$0xff] }
 0x34b   : > { %v4491_v62 = vmul.f32 -1.442695, %v7431_v63  ;;  %3911 = vrot.lane.b32.xlu0 %v3826_v14, %s5341_s21  ;;  %v7443_v26 = vadd.f32 %v7288_v9, %v2495_v48  ;;  %v2087_v42 = vadd.f32 %v2055_v32, %v1986_v35  ;;  %v2156_v57 = vmul.f32 %v8548_v36, %v7306_v39  ;;  %v8600_v11 = vld [vmem:[#allocation8_spill] sm:$0xff] }
 0x34c   : > { %5146 = vpow2.f32 %v4492_v34  ;;  %v5143_v44 = vpop.eup %5142  ;;  %v2492_v60 = vadd.f32 %v2460_v41, %v2391_v52  ;;  %v2561_v19 = vmul.f32 %v6249_v28, %v7211_v27  ;;  %v2257_v53 = vmul.f32 %v8550_v6, %v7308_v16  ;;  %v8599_v27 = vld [vmem:[#allocation17_spill] sm:$0xff]  ;;  %v1916_v34 = vld [vmem:[#allocation3 + $0x2c8] sm:$0xff]  ;;  %v1715_v52 = vld [vmem:[#allocation3 + $0x80] sm:$0xff] }
 0x34d   : > { %5148 = vrcp.f32 %v2725_v40  ;;  %v2823_v43 = vmul.f32 %v5143_v44, %v8598_v5  ;;  %v4493_v9 = vmul.f32 -1.442695, %v7443_v26  ;;  %v2188_v24 = vadd.f32 %v2156_v57, %v2087_v42  ;;  %v8601_v41 = vld [vmem:[#allocation29_spill] sm:$0xff] }
 0x34e   : > { %5150 = vpow2.f32 %v4491_v62  ;;  %v7457_v7 = vadd.f32 %v2561_v19, %v2492_v60  ;;  %v1753_v56 = vmul.f32 %v5851_v1, %v7447_v47  ;;  %v3827_v38 = vmul.f32 %v7388_v23, %v8599_v27 }
 0x34f   : > { %2936 = vmatpush2.msra.mxu0 %v2823_v43  ;;  %4806 = vmatpush2.msra.mxu1 %v2823_v43  ;;  %5152 = vpow2.f32 %v4493_v9  ;;  %v2289_v46 = vadd.f32 %v2257_v53, %v2188_v24  ;;  %v2358_v20 = vmul.f32 %v6114_v58, %v7337_v15  ;;  %v1853_v10 = vmul.f32 %v5860_v54, %v7455_v3  ;;  %v1815_v43 = vld [vmem:[#allocation3 + $0x1a0] sm:$0xff] }
 0x350   : > { %2937 = vmatprep.subr.mxu0 %v8576_v21  ;;  %4775 = vmatprep.subr.mxu1 %v8576_v21  ;;  %v4490_v12 = vmul.f32 -1.442695, %v7457_v7  ;;  %v1785_v31 = vadd.f32 %v7095_v37, %v1753_v56  ;;  %v2459_v23 = vmul.f32 %v6122_v4, %v7339_v50  ;;  %v1953_v15 = vmul.f32 %v8544_v61, %v7461_v8  ;;  %v1915_v56 = vld [vmem:[#allocation3 + $0x2c0] sm:$0xff] }
 0x351   : > { %3913 = vrot.lane.b32.xlu0 %v3827_v38, %s5341_s21  ;;  %v2390_v59 = vadd.f32 %v2358_v20, %v2289_v46  ;;  %v2054_v14 = vmul.f32 %v8547_v25, %v8600_v11  ;;  %v1752_v48 = vmul.f32 %v5851_v1, %v1716_v45  ;;  %v2560_v62 = vmul.f32 %v6249_v28, %v7353_v30 }
 0x352   : > { %5154 = vpow2.f32 %v4490_v12  ;;  %v1885_v32 = vadd.f32 %v1853_v10, %v1785_v31  ;;  %v1852_v44 = vmul.f32 %v5860_v54, %v1816_v17  ;;  %v2155_v19 = vmul.f32 %v8548_v36, %v7371_v33 }
 0x353   : > { %v5145_v35 = vpop.eup %5144  ;;  %v2491_v40 = vadd.f32 %v2459_v23, %v2390_v59  ;;  %v1784_v57 = vadd.f32 %v7095_v37, %v1752_v48  ;;  %v1952_v53 = vmul.f32 %v8544_v61, %v1916_v34  ;;  %v2053_v5 = vmul.f32 %v8547_v25, %v7394_v18 }
 0x354   : > { %v2822_v50 = vmul.f32 %v5145_v35, %v8601_v41  ;;  %v1985_v42 = vadd.f32 %v1953_v15, %v1885_v32  ;;  %v1751_v24 = vmul.f32 %v5851_v1, %v1715_v52  ;;  %v2256_v38 = vmul.f32 %v8550_v6, %v7377_v49 }
 0x355   : > { %v7486_v60 = vadd.f32 %v2560_v62, %v2491_v40  ;;  %v1884_v9 = vadd.f32 %v1852_v44, %v1784_v57  ;;  %v2357_v18 = vmul.f32 %v6114_v58, %v7254_v0  ;;  %v2154_v46 = vmul.f32 %v8548_v36, %v7400_v22  ;;  %v8602_v0 = vld [vmem:[#allocation15_spill] sm:$0xff] }
 0x356   : > { %2938 = vmatpush2.msra.mxu0 %v2822_v50  ;;  %4807 = vmatpush2.msra.mxu1 %v2822_v50  ;;  %v2086_v30 = vadd.f32 %v2054_v14, %v1985_v42  ;;  %v1783_v1 = vadd.f32 %v7095_v37, %v1751_v24  ;;  %v1851_v31 = vmul.f32 %v5860_v54, %v1815_v43 }
 0x357   : > { %2939 = vmatprep.subr.mxu0 %v8576_v21  ;;  %4776 = vmatprep.subr.mxu1 %v8576_v21  ;;  %v4489_v27 = vmul.f32 -1.442695, %v7486_v60  ;;  %v1984_v12 = vadd.f32 %v1952_v53, %v1884_v9  ;;  %v1951_v23 = vmul.f32 %v8544_v61, %v1915_v56  ;;  %v2052_v15 = vmul.f32 %v8547_v25, %v7447_v47 }
 0x358   : > { %v2187_v45 = vadd.f32 %v2155_v19, %v2086_v30  ;;  %v1883_v48 = vadd.f32 %v1851_v31, %v1783_v1  ;;  %v2458_v37 = vmul.f32 %v6122_v4, %v7264_v13  ;;  %v2255_v54 = vmul.f32 %v8550_v6, %v7412_v2 }
 0x359   : > { %v5147_v20 = vpop.eup %5146  ;;  %5156 = vpow2.f32 %v4489_v27  ;;  %v2085_v22 = vadd.f32 %v2053_v5, %v1984_v12  ;;  %v2356_v35 = vmul.f32 %v6114_v58, %v7290_v29  ;;  %v2559_v13 = vmul.f32 %v6249_v28, %v7341_v51 }
 0x35a   : > { %v5149_v10 = vpop.eup %5148  ;;  %v2723_v59 = vadd.f32 1.0, %v5147_v20  ;;  %v2288_v14 = vadd.f32 %v2256_v38, %v2187_v45  ;;  %v1983_v40 = vadd.f32 %v1951_v23, %v1883_v48  ;;  %v2153_v2 = vmul.f32 %v8548_v36, %v7455_v3  ;;  %v2845_v48 = vld [vmem:[%s8434_s4 + $0x80] sm:$0xff] }
 0x35b   : > { %v5151_v17 = vpop.eup %5150  ;;  %v2821_v32 = vmul.f32 %v5149_v10, %v8602_v0  ;;  %v2186_v47 = vadd.f32 %v2154_v46, %v2085_v22  ;;  %v2457_v42 = vmul.f32 %v6122_v4, %v7306_v39  ;;  %v2254_v57 = vmul.f32 %v8550_v6, %v7461_v8  ;;  %v2829_v0 = vld [vmem:[%s8434_s4] sm:$0xff]  ;;  %v2846_v22 = vld [vmem:[%s8434_s4 + $0x88] sm:$0xff] }
 0x35c   : > { %v2722_v34 = vadd.f32 1.0, %v5151_v17  ;;  %v5153_v61 = vpop.eup %5152  ;;  %v2389_v25 = vadd.f32 %v2357_v18, %v2288_v14  ;;  %5158 = vrcp.f32 %v2723_v59  ;;  %v2084_v41 = vadd.f32 %v2052_v15, %v1983_v40  ;;  %v2832_v14 = vld [vmem:[%s8434_s4 + $0x18] sm:$0xff]  ;;  %v2849_v40 = vld [vmem:[%s8434_s4 + $0xa0] sm:$0xff] }
 0x35d   : > { %2940 = vmatpush2.msra.mxu0 %v2821_v32  ;;  %4808 = vmatpush2.msra.mxu1 %v2821_v32  ;;  %v2724_v62 = vadd.f32 1.0, %v5153_v61  ;;  %v2287_v52 = vadd.f32 %v2255_v54, %v2186_v47  ;;  %v2355_v44 = vmul.f32 %v6114_v58, %v8600_v11  ;;  %v2558_v43 = vmul.f32 %v6249_v28, %v7308_v16  ;;  %v2843_v32 = vld [vmem:[%s8434_s4 + $0x70] sm:$0xff]  ;;  %v2833_v54 = vld [vmem:[%s8434_s4 + $0x20] sm:$0xff]  ;;  %v2836_v61 = vld [vmem:[%s8434_s4 + $0x38] sm:$0xff] }
 0x35e   : > { %2941 = vmatprep.subr.mxu0 %v8576_v21  ;;  %4777 = vmatprep.subr.mxu1 %v8576_v21  ;;  %5160 = vrcp.f32 %v2722_v34  ;;  %v2490_v29 = vadd.f32 %v2458_v37, %v2389_v25  ;;  %v2185_v5 = vadd.f32 %v2153_v2, %v2084_v41  ;;  %v2456_v6 = vmul.f32 %v6122_v4, %v7371_v33  ;;  %v2834_v34 = vld [vmem:[%s8434_s4 + $0x28] sm:$0xff]  ;;  %v2848_v37 = vld [vmem:[%s8434_s4 + $0x98] sm:$0xff]  ;;  %v2835_v47 = vld [vmem:[%s8434_s4 + $0x30] sm:$0xff] }
 0x35f   : > { %v5155_v50 = vpop.eup %5154  ;;  %5162 = vrcp.f32 %v2724_v62  ;;  %v2388_v53 = vadd.f32 %v2356_v35, %v2287_v52  ;;  %v2557_v11 = vmul.f32 %v6249_v28, %v7377_v49  ;;  %v2847_v35 = vld [vmem:[%s8434_s4 + $0x90] sm:$0xff]  ;;  %v2850_v25 = vld [vmem:[%s8434_s4 + $0xa8] sm:$0xff]  ;;  %v2837_v2 = vld [vmem:[%s8434_s4 + $0x40] sm:$0xff] }
 0x360   : > { %v2721_v19 = vadd.f32 1.0, %v5155_v50  ;;  %v2591_v51 = vadd.f32 %v2559_v13, %v2490_v29  ;;  %v2286_v30 = vadd.f32 %v2254_v57, %v2185_v5  ;;  %v2838_v62 = vld [vmem:[%s8434_s4 + $0x48] sm:$0xff]  ;;  %v2852_v13 = vld [vmem:[%s8434_s4 + $0xb8] sm:$0xff]  ;;  %v2851_v29 = vld [vmem:[%s8434_s4 + $0xb0] sm:$0xff] }
 0x361   : > { %v2489_v3 = vadd.f32 %v2457_v42, %v2388_v53  ;;  %v2840_v52 = vld [vmem:[%s8434_s4 + $0x58] sm:$0xff]  ;;  %v2854_v41 = vld [vmem:[%s8434_s4 + $0xc8] sm:$0xff]  ;;  %v2839_v50 = vld [vmem:[%s8434_s4 + $0x50] sm:$0xff] }
 0x362   : > { %v4488_v36 = vmul.f32 -1.442695, %v2591_v51  ;;  %5164 = vrcp.f32 %v2721_v19  ;;  %v2387_v39 = vadd.f32 %v2355_v44, %v2286_v30  ;;  %v2853_v42 = vld [vmem:[%s8434_s4 + $0xc0] sm:$0xff]  ;;  %v2842_v57 = vld [vmem:[%s8434_s4 + $0x68] sm:$0xff]  ;;  %v2856_v44 = vld [vmem:[%s8434_s4 + $0xd8] sm:$0xff] }
 0x363   : > { %v2590_v9 = vadd.f32 %v2558_v43, %v2489_v3  ;;  %v2841_v19 = vld [vmem:[%s8434_s4 + $0x60] sm:$0xff]  ;;  %v2858_v53 = vld [vmem:[%s8434_s4 + $0xe8] sm:$0xff]  ;;  %v2859_v3 = vld [vmem:[%s8434_s4 + $0xf0] sm:$0xff] }
 0x364   : > { %5166 = vpow2.f32 %v4488_v36  ;;  %v2488_v58 = vadd.f32 %v2456_v6, %v2387_v39  ;;  %v2857_v5 = vld [vmem:[%s8434_s4 + $0xe0] sm:$0xff]  ;;  %v2860_v36 = vld [vmem:[%s8434_s4 + $0xf8] sm:$0xff]  ;;  %v2862_v43 = vld [vmem:[%s8434_s4 + $0x108] sm:$0xff] }
 0x365   : > { %v4487_v24 = vmul.f32 -1.442695, %v2590_v9  ;;  %v2861_v30 = vld [vmem:[%s8434_s4 + $0x100] sm:$0xff]  ;;  %v2863_v39 = vld [vmem:[%s8434_s4 + $0x110] sm:$0xff]  ;;  %v2866_v6 = vld [vmem:[%s8434_s4 + $0x128] sm:$0xff] }
 0x366   : > { %v5157_v8 = vpop.eup %5156  ;;  %v2589_v27 = vadd.f32 %v2557_v11, %v2488_v58  ;;  %v2867_v58 = vld [vmem:[%s8434_s4 + $0x130] sm:$0xff]  ;;  %v2870_v11 = vld [vmem:[%s8434_s4 + $0x148] sm:$0xff] }
 0x367   : > { %v2720_v56 = vadd.f32 1.0, %v5157_v8  ;;  %5168 = vpow2.f32 %v4487_v24  ;;  %v2865_v8 = vld [vmem:[%s8434_s4 + $0x120] sm:$0xff]  ;;  %v2868_v24 = vld [vmem:[%s8434_s4 + $0x138] sm:$0xff] }
 0x368   : > { %v4486_v16 = vmul.f32 -1.442695, %v2589_v27 }
 0x369   : > { %5170 = vrcp.f32 %v2720_v56  ;;  %v5159_v38 = vpop.eup %5158  ;;  %v2869_v56 = vld [vmem:[%s8434_s4 + $0x140] sm:$0xff] }
 0x36a   : > { %5172 = vpow2.f32 %v4486_v16  ;;  %v2819_v4 = vmul.f32 %v5159_v38, %v7426_v55  ;;  %v2871_v38 = vld [vmem:[%s8434_s4 + $0x150] sm:$0xff]  ;;  %v2874_v16 = vld [vmem:[%s8434_s4 + $0x168] sm:$0xff] }
 0x36b   : > { %v5161_v18 = vpop.eup %5160 }
 0x36c   : > { %v5163_v46 = vpop.eup %5162  ;;  %v2818_v33 = vmul.f32 %v5161_v18, %v7431_v63  ;;  %v2873_v18 = vld [vmem:[%s8434_s4 + $0x160] sm:$0xff] }
 0x36d   : > { %v2820_v20 = vmul.f32 %v5163_v46, %v7443_v26  ;;  %v2876_v46 = vld [vmem:[%s8434_s4 + $0x178] sm:$0xff] }
 0x36f   : > { %2942 = vmatpush2.msra.mxu0 %v2820_v20  ;;  %4809 = vmatpush2.msra.mxu1 %v2820_v20  ;;  %v5165_v45 = vpop.eup %5164  ;;  %v2875_v20 = vld [vmem:[%s8434_s4 + $0x170] sm:$0xff] }
 0x370   : > { %2943 = vmatprep.subr.mxu0 %v8576_v21  ;;  %4778 = vmatprep.subr.mxu1 %v8576_v21  ;;  %v2817_v26 = vmul.f32 %v5165_v45, %v7457_v7  ;;  %v2880_v45 = vld [vmem:[%s8434_s4 + $0x198] sm:$0xff] }
 0x371   : > { %v5167_v28 = vpop.eup %5166  ;;  %2944 = vmatpush2.msra.mxu0 %v2819_v4  ;;  %4810 = vmatpush2.msra.mxu1 %v2819_v4  ;;  %v2878_v4 = vld [vmem:[%s8434_s4 + $0x188] sm:$0xff] }
 0x372   : > { %2945 = vmatprep.subr.mxu0 %v8576_v21  ;;  %4779 = vmatprep.subr.mxu1 %v8576_v21  ;;  %v2719_v49 = vadd.f32 1.0, %v5167_v28  ;;  %v2879_v28 = vld [vmem:[%s8434_s4 + $0x190] sm:$0xff] }
 0x373   : > { %2946 = vmatpush2.msra.mxu0 %v2818_v33  ;;  %4811 = vmatpush2.msra.mxu1 %v2818_v33  ;;  %v2877_v33 = vld [vmem:[%s8434_s4 + $0x180] sm:$0xff] }
 0x374   : > { %2947 = vmatprep.subr.mxu0 %v8576_v21  ;;  %4780 = vmatprep.subr.mxu1 %v8576_v21  ;;  %5174 = vrcp.f32 %v2719_v49  ;;  %v5169_v55 = vpop.eup %5168  ;;  %v2882_v49 = vld [vmem:[%s8434_s4 + $0x1a8] sm:$0xff] }
 0x375   : > { %2948 = vmatpush2.msra.mxu0 %v2817_v26  ;;  %4812 = vmatpush2.msra.mxu1 %v2817_v26  ;;  %v2718_v12 = vadd.f32 1.0, %v5169_v55  ;;  %v2881_v26 = vld [vmem:[%s8434_s4 + $0x1a0] sm:$0xff]  ;;  %v2884_v55 = vld [vmem:[%s8434_s4 + $0x1b8] sm:$0xff] }
 0x376   : > { %v5171_v63 = vpop.eup %5170  ;;  %2949 = vmatprep.subr.mxu0 %v8576_v21  ;;  %4781 = vmatprep.subr.mxu1 %v8576_v21 }
 0x377   : > { %v2816_v1 = vmul.f32 %v5171_v63, %v7486_v60  ;;  %5176 = vrcp.f32 %v2718_v12  ;;  %v5173_v31 = vpop.eup %5172  ;;  %v2883_v63 = vld [vmem:[%s8434_s4 + $0x1b0] sm:$0xff]  ;;  %v2886_v12 = vld [vmem:[%s8434_s4 + $0x1c8] sm:$0xff] }
 0x378   : > { %v2717_v7 = vadd.f32 1.0, %v5173_v31  ;;  %v2888_v31 = vld [vmem:[%s8434_s4 + $0x1d8] sm:$0xff] }
 0x379   : > { %2950 = vmatpush2.msra.mxu0 %v2816_v1  ;;  %4813 = vmatpush2.msra.mxu1 %v2816_v1  ;;  %v2885_v1 = vld [vmem:[%s8434_s4 + $0x1c0] sm:$0xff] }
 0x37a   : > { %2951 = vmatprep.subr.mxu0 %v8576_v21  ;;  %4782 = vmatprep.subr.mxu1 %v8576_v21  ;;  %5178 = vrcp.f32 %v2717_v7  ;;  %v2887_v7 = vld [vmem:[%s8434_s4 + $0x1d0] sm:$0xff] }
 0x381   : > { %v5175_v10 = vpop.eup %5174 }
 0x382   : > { %v2815_v59 = vmul.f32 %v5175_v10, %v2591_v51  ;;  %v2855_v51 = vld [vmem:[%s8434_s4 + $0xd0] sm:$0xff]  ;;  %v2890_v10 = vld [vmem:[%s8434_s4 + $0x1e8] sm:$0xff] }
 0x384   : > { %2952 = vmatpush2.msra.mxu0 %v2815_v59  ;;  %4814 = vmatpush2.msra.mxu1 %v2815_v59  ;;  %v5177_v23 = vpop.eup %5176  ;;  %v2889_v59 = vld [vmem:[%s8434_s4 + $0x1e0] sm:$0xff] }
 0x385   : > { %2953 = vmatprep.subr.mxu0 %v8576_v21  ;;  %4783 = vmatprep.subr.mxu1 %v8576_v21  ;;  %v2814_v60 = vmul.f32 %v5177_v23, %v2590_v9  ;;  %v2864_v9 = vld [vmem:[%s8434_s4 + $0x118] sm:$0xff] }
 0x386   : > { %v2892_v23 = vld [vmem:[%s8434_s4 + $0x1f8] sm:$0xff] }
 0x387   : > { %2954 = vmatpush2.msra.mxu0 %v2814_v60  ;;  %4815 = vmatpush2.msra.mxu1 %v2814_v60  ;;  %v5179_v15 = vpop.eup %5178  ;;  %v2891_v60 = vld [vmem:[%s8434_s4 + $0x1f0] sm:$0xff] }
 0x388   : > { %2955 = vmatprep.subr.mxu0 %v8576_v21  ;;  %4784 = vmatprep.subr.mxu1 %v8576_v21  ;;  %v2813_v17 = vmul.f32 %v5179_v15, %v2589_v27  ;;  %v2831_v21 = vld [vmem:[%s8434_s4 + $0x10] sm:$0xff]  ;;  %v2872_v27 = vld [vmem:[%s8434_s4 + $0x158] sm:$0xff] }
 0x38a   : > { %2956 = vmatpush2.msra.mxu0 %v2813_v17  ;;  %4816 = vmatpush2.msra.mxu1 %v2813_v17 }
 0x38b   : > { %2958 = vmatmul.mubr.f32.vlgmr.msra.gmra.mxu0 %v2829_v0  ;;  %2993 = vmatmul.mubr.f32.vlgmr.msra.gmra.mxu1 %v2843_v32 }
 0x38c   : > { %2962 = vmatprep.mubr.f32.mxu0 %v2832_v14  ;;  %2997 = vmatprep.mubr.f32.mxu1 %v2846_v22 }
 0x38f   : > { %2963 = vmatmul.mubr.f32.gmra.mxu0 %v2831_v21  ;;  %2998 = vmatmul.mubr.f32.gmra.mxu1 %v2845_v48 }
 0x390   : > { %2967 = vmatprep.mubr.f32.mxu0 %v2834_v34  ;;  %3002 = vmatprep.mubr.f32.mxu1 %v2848_v37 }
 0x393   : > { %2968 = vmatmul.mubr.f32.gmra.mxu0 %v2833_v54  ;;  %3003 = vmatmul.mubr.f32.gmra.mxu1 %v2847_v35 }
 0x394   : > { %2972 = vmatprep.mubr.f32.mxu0 %v2836_v61  ;;  %3007 = vmatprep.mubr.f32.mxu1 %v2850_v25 }
 0x397   : > { %2973 = vmatmul.mubr.f32.gmra.mxu0 %v2835_v47  ;;  %3008 = vmatmul.mubr.f32.gmra.mxu1 %v2849_v40 }
 0x398   : > { %2977 = vmatprep.mubr.f32.mxu0 %v2838_v62  ;;  %3012 = vmatprep.mubr.f32.mxu1 %v2852_v13 }
 0x39b   : > { %2978 = vmatmul.mubr.f32.gmra.mxu0 %v2837_v2  ;;  %3013 = vmatmul.mubr.f32.gmra.mxu1 %v2851_v29 }
 0x39c   : > { %2982 = vmatprep.mubr.f32.mxu0 %v2840_v52  ;;  %3017 = vmatprep.mubr.f32.mxu1 %v2854_v41 }
 0x39f   : > { %2983 = vmatmul.mubr.f32.gmra.mxu0 %v2839_v50  ;;  %3018 = vmatmul.mubr.f32.gmra.mxu1 %v2853_v42 }
 0x3a0   : > { %2987 = vmatprep.mubr.f32.mxu0 %v2842_v57  ;;  %3022 = vmatprep.mubr.f32.mxu1 %v2856_v44 }
 0x3a3   : > { %2988 = vmatmul.mubr.f32.gmra.mxu0 %v2841_v19  ;;  %3023 = vmatmul.mubr.f32.gmra.mxu1 %v2855_v51 }
 0x3a4   : > { %3027 = vmatprep.mubr.f32.mxu1 %v2858_v53 }
 0x3a7   : > { %3028 = vmatmul.mubr.f32.gmra.mxu1 %v2857_v5 }
 0x3a8   : > { %3032 = vmatprep.mubr.f32.mxu1 %v2860_v36 }
 0x3ab   : > { %3033 = vmatmul.mubr.f32.gmra.mxu1 %v2859_v3 }
 0x3ac   : > { %3037 = vmatprep.mubr.f32.mxu1 %v2862_v43 }
 0x3af   : > { %3038 = vmatmul.mubr.f32.gmra.mxu1 %v2861_v30 }
 0x3b0   : > { %3042 = vmatprep.mubr.f32.mxu1 %v2864_v9 }
 0x3b3   : > { %3043 = vmatmul.mubr.f32.gmra.mxu1 %v2863_v39 }
 0x3b4   : > { %3047 = vmatprep.mubr.f32.mxu1 %v2866_v6 }
 0x3b7   : > { %3048 = vmatmul.mubr.f32.gmra.mxu1 %v2865_v8 }
 0x3b8   : > { %3052 = vmatprep.mubr.f32.mxu1 %v2868_v24 }
 0x3bb   : > { %3053 = vmatmul.mubr.f32.gmra.mxu1 %v2867_v58 }
 0x3bc   : > { %3057 = vmatprep.mubr.f32.mxu1 %v2870_v11 }
 0x3bf   : > { %3058 = vmatmul.mubr.f32.gmra.mxu1 %v2869_v56 }
 0x3c0   : > { %3062 = vmatprep.mubr.f32.mxu1 %v2872_v27 }
 0x3c3   : > { %3063 = vmatmul.mubr.f32.gmra.mxu1 %v2871_v38 }
 0x3c4   : > { %3067 = vmatprep.mubr.f32.mxu1 %v2874_v16 }
 0x3c7   : > { %3068 = vmatmul.mubr.f32.gmra.mxu1 %v2873_v18 }
 0x3c8   : > { %3072 = vmatprep.mubr.f32.mxu1 %v2876_v46 }
 0x3cb   : > { %3073 = vmatmul.mubr.f32.gmra.mxu1 %v2875_v20 }
 0x3cc   : > { %3077 = vmatprep.mubr.f32.mxu1 %v2878_v4 }
 0x3cf   : > { %3078 = vmatmul.mubr.f32.gmra.mxu1 %v2877_v33 }
 0x3d0   : > { %3082 = vmatprep.mubr.f32.mxu1 %v2880_v45 }
 0x3d3   : > { %3083 = vmatmul.mubr.f32.gmra.mxu1 %v2879_v28 }
 0x3d4   : > { %3087 = vmatprep.mubr.f32.mxu1 %v2882_v49 }
 0x3d7   : > { %3088 = vmatmul.mubr.f32.gmra.mxu1 %v2881_v26 }
 0x3d8   : > { %3092 = vmatprep.mubr.f32.mxu1 %v2884_v55 }
 0x3db   : > { %3093 = vmatmul.mubr.f32.gmra.mxu1 %v2883_v63  ;;  %v7812_v63 = vpop.permute.xlu0 %3871 }
 0x3dc   : > { %3097 = vmatprep.mubr.f32.mxu1 %v2886_v12 }
 0x3df   : > { %3098 = vmatmul.mubr.f32.gmra.mxu1 %v2885_v1 }
 0x3e0   : > { %3102 = vmatprep.mubr.f32.mxu1 %v2888_v31 }
 0x3e3   : > { %3103 = vmatmul.mubr.f32.gmra.mxu1 %v2887_v7 }
 0x3e4   : > { %3107 = vmatprep.mubr.f32.mxu1 %v2890_v10 }
 0x3e7   : > { %3108 = vmatmul.mubr.f32.gmra.mxu1 %v2889_v59  ;;  %v7820_v59 = vpop.permute.xlu0 %3873 }
 0x3e8   : > { %3112 = vmatprep.mubr.f32.mxu1 %v2892_v23 }
 0x3eb   : > { %3113 = vmatmul.mubr.f32.gmra.mxu1 %v2891_v60 }
 0x44b   : > { %v7738_v15 = vpop.f32.mrf.mxu0  ;;  %v7740_v17 = vpop.f32.mrf.mxu1 }
 0x44c   : > { %v3139_v0 = vsel %vm1382_vm2, %v7740_v17, 0.0  ;;  %v3118_v32 = vsel %vm1382_vm2, %v7738_v15, 0.0 }
 0x44d   : > { %3140 = vadd.xlane.f32.xlu1 %v3139_v0  ;;  %v2996_v14 = vpop.f32.mrf.mxu1  ;;  %3119 = vadd.xlane.f32.xlu0 %v3118_v32  ;;  %v2961_v22 = vpop.f32.mrf.mxu0 }
 0x44e   : > { %v7828_v14 = vpop.permute.xlu0 %3877 }
 0x44f   : > { %v7746_v21 = vpop.f32.mrf.mxu0  ;;  %v7748_v48 = vpop.f32.mrf.mxu1 }
 0x450   : > { %v3142_v34 = vsel %vm1382_vm2, %v7748_v48, 0.0  ;;  %v3121_v37 = vsel %vm1382_vm2, %v7746_v21, 0.0 }
 0x451   : > { %v3001_v54 = vpop.f32.mrf.mxu1  ;;  %3143 = vadd.xlane.f32.xlu0 %v3142_v34  ;;  %3122 = vadd.xlane.f32.xlu1 %v3121_v37  ;;  %v2966_v35 = vpop.f32.mrf.mxu0 }
 0x453   : > { %v7754_v61 = vpop.f32.mrf.mxu0  ;;  %v7756_v25 = vpop.f32.mrf.mxu1 }
 0x454   : > { %v3145_v47 = vsel %vm1382_vm2, %v7756_v25, 0.0  ;;  %v3124_v40 = vsel %vm1382_vm2, %v7754_v61, 0.0 }
 0x455   : > { %v3006_v62 = vpop.f32.mrf.mxu1  ;;  %3146 = vadd.xlane.f32.xlu1 %v3145_v47  ;;  %3125 = vadd.xlane.f32.xlu0 %v3124_v40  ;;  %v2971_v13 = vpop.f32.mrf.mxu0 }
 0x456   : > { %v7836_v47 = vpop.permute.xlu0 %3879 }
 0x457   : > { %v7762_v2 = vpop.f32.mrf.mxu0  ;;  %v7764_v29 = vpop.f32.mrf.mxu1 }
 0x458   : > { %v3148_v52 = vsel %vm1382_vm2, %v7764_v29, 0.0  ;;  %v3127_v41 = vsel %vm1382_vm2, %v7762_v2, 0.0 }
 0x459   : > { %v3011_v50 = vpop.f32.mrf.mxu1  ;;  %3149 = vadd.xlane.f32.xlu0 %v3148_v52  ;;  %3128 = vadd.xlane.f32.xlu1 %v3127_v41  ;;  %v2976_v42 = vpop.f32.mrf.mxu0 }
 0x45a   : > { %v7844_v41 = vpop.permute.xlu0 %3883 }
 0x45b   : > { %v7770_v57 = vpop.f32.mrf.mxu0  ;;  %v7772_v44 = vpop.f32.mrf.mxu1 }
 0x45c   : > { %v3151_v19 = vsel %vm1382_vm2, %v7772_v44, 0.0  ;;  %v3130_v51 = vsel %vm1382_vm2, %v7770_v57, 0.0 }
 0x45d   : > { %v3016_v53 = vpop.f32.mrf.mxu1  ;;  %3152 = vadd.xlane.f32.xlu1 %v3151_v19  ;;  %3131 = vadd.xlane.f32.xlu0 %v3130_v51  ;;  %v2981_v5 = vpop.f32.mrf.mxu0 }
 0x45e   : > { %v7852_v5 = vpop.permute.xlu0 %3887 }
 0x45f   : > { %v7778_v36 = vpop.f32.mrf.mxu0  ;;  %v7780_v3 = vpop.f32.mrf.mxu1 }
 0x460   : > { %v3154_v43 = vsel %vm1382_vm2, %v7780_v3, 0.0  ;;  %v3133_v30 = vsel %vm1382_vm2, %v7778_v36, 0.0 }
 0x461   : > { %v3021_v9 = vpop.f32.mrf.mxu1  ;;  %3155 = vadd.xlane.f32.xlu0 %v3154_v43  ;;  %3134 = vadd.xlane.f32.xlu1 %v3133_v30  ;;  %v2986_v39 = vpop.f32.mrf.mxu0 }
 0x463   : > { %v7786_v6 = vpop.f32.mrf.mxu0  ;;  %v7788_v8 = vpop.f32.mrf.mxu1 }
 0x464   : > { %v3157_v24 = vsel %vm1382_vm2, %v7788_v8, 0.0  ;;  %v3136_v58 = vsel %vm1382_vm2, %v7786_v6, 0.0 }
 0x465   : > { %v3026_v11 = vpop.f32.mrf.mxu1  ;;  %3158 = vadd.xlane.f32.xlu1 %v3157_v24  ;;  %3137 = vadd.xlane.f32.xlu0 %v3136_v58  ;;  %v2991_v56 = vpop.f32.mrf.mxu0 }
 0x466   : > { %v7860_v24 = vpop.permute.xlu0 %3891 }
 0x467   : > { %v7794_v27 = vpop.f32.mrf.mxu1 }
 0x468   : > { %v3160_v38 = vsel %vm1382_vm2, %v7794_v27, 0.0 }
 0x469   : > { %v3031_v16 = vpop.f32.mrf.mxu1  ;;  %3161 = vadd.xlane.f32.xlu0 %v3160_v38 }
 0x46b   : > { %v7798_v18 = vpop.f32.mrf.mxu1 }
 0x46c   : > { %v3163_v46 = vsel %vm1382_vm2, %v7798_v18, 0.0 }
 0x46d   : > { %v3036_v20 = vpop.f32.mrf.mxu1  ;;  %3164 = vadd.xlane.f32.xlu1 %v3163_v46  ;;  %v7868_v46 = vpop.permute.xlu0 %3895 }
 0x46f   : > { %v7802_v4 = vpop.f32.mrf.mxu1 }
 0x470   : > { %v3166_v33 = vsel %vm1382_vm2, %v7802_v4, 0.0 }
 0x471   : > { %v3041_v45 = vpop.f32.mrf.mxu1  ;;  %3167 = vadd.xlane.f32.xlu0 %v3166_v33 }
 0x473   : > { %v7806_v28 = vpop.f32.mrf.mxu1 }
 0x474   : > { %v3169_v49 = vsel %vm1382_vm2, %v7806_v28, 0.0 }
 0x475   : > { %v3046_v26 = vpop.f32.mrf.mxu1  ;;  %3170 = vadd.xlane.f32.xlu1 %v3169_v49 }
 0x476   : > { %v7876_v26 = vpop.permute.xlu1 %3869 }
 0x477   : > { %v7810_v55 = vpop.f32.mrf.mxu1 }
 0x478   : > { %v3172_v12 = vsel %vm1382_vm2, %v7810_v55, 0.0 }
 0x479   : > { %v3051_v1 = vpop.f32.mrf.mxu1  ;;  %3173 = vadd.xlane.f32.xlu0 %v3172_v12  ;;  %v7878_v12 = vpop.permute.xlu0 %3897 }
 0x47a   : > { %8603 = vst [vmem:[#allocation31_spill] sm:$0xff] %v7878_v12 }
 0x47b   : > { %v7816_v31 = vpop.f32.mrf.mxu1 }
 0x47c   : > { %v3175_v7 = vsel %vm1382_vm2, %v7816_v31, 0.0 }
 0x47d   : > { %v3056_v10 = vpop.f32.mrf.mxu1  ;;  %3176 = vadd.xlane.f32.xlu1 %v3175_v7 }
 0x47f   : > { %v7822_v23 = vpop.f32.mrf.mxu1 }
 0x480   : > { %v3178_v60 = vsel %vm1382_vm2, %v7822_v23, 0.0 }
 0x481   : > { %v3061_v0 = vpop.f32.mrf.mxu1  ;;  %3179 = vadd.xlane.f32.xlu0 %v3178_v60 }
 0x483   : > { %v7826_v32 = vpop.f32.mrf.mxu1 }
 0x484   : > { %v3181_v22 = vsel %vm1382_vm2, %v7826_v32, 0.0 }
 0x485   : > { %v3066_v34 = vpop.f32.mrf.mxu1  ;;  %3182 = vadd.xlane.f32.xlu1 %v3181_v22  ;;  %v7886_v22 = vpop.permute.xlu1 %3875 }
 0x486   : > { %v7888_v34 = vpop.permute.xlu0 %3899 }
 0x487   : > { %v7832_v37 = vpop.f32.mrf.mxu1  ;;  %8604 = vst [vmem:[#allocation36_spill] sm:$0xff] %v7888_v34 }
 0x488   : > { %v3184_v54 = vsel %vm1382_vm2, %v7832_v37, 0.0 }
 0x489   : > { %v3071_v35 = vpop.f32.mrf.mxu1  ;;  %3185 = vadd.xlane.f32.xlu0 %v3184_v54  ;;  %v7890_v54 = vpop.permute.xlu1 %3881 }
 0x48a   : > { %v7892_v35 = vpop.permute.xlu0 %3901 }
 0x48b   : > { %v7838_v40 = vpop.f32.mrf.mxu1  ;;  %8605 = vst [vmem:[#allocation32_spill] sm:$0xff] %v7892_v35 }
 0x48c   : > { %v3187_v62 = vsel %vm1382_vm2, %v7838_v40, 0.0 }
 0x48d   : > { %v3076_v13 = vpop.f32.mrf.mxu1  ;;  %3188 = vadd.xlane.f32.xlu1 %v3187_v62  ;;  %v7894_v62 = vpop.permute.xlu1 %3885 }
 0x48e   : > { %v7896_v13 = vpop.permute.xlu0 %3905 }
 0x48f   : > { %v7842_v52 = vpop.f32.mrf.mxu1  ;;  %8606 = vst [vmem:[#allocation28_spill] sm:$0xff] %v7896_v13 }
 0x490   : > { %v3190_v50 = vsel %vm1382_vm2, %v7842_v52, 0.0 }
 0x491   : > { %v3081_v42 = vpop.f32.mrf.mxu1  ;;  %3191 = vadd.xlane.f32.xlu0 %v3190_v50  ;;  %v7898_v50 = vpop.permute.xlu1 %3889 }
 0x492   : > { %v7900_v42 = vpop.permute.xlu0 %3907 }
 0x493   : > { %v7848_v19 = vpop.f32.mrf.mxu1  ;;  %8607 = vst [vmem:[#allocation14_spill] sm:$0xff] %v7900_v42 }
 0x494   : > { %v3193_v51 = vsel %vm1382_vm2, %v7848_v19, 0.0 }
 0x495   : > { %v3086_v53 = vpop.f32.mrf.mxu1  ;;  %3194 = vadd.xlane.f32.xlu1 %v3193_v51  ;;  %v7902_v51 = vpop.permute.xlu1 %3893 }
 0x496   : > { %v7904_v53 = vpop.permute.xlu0 %3909 }
 0x497   : > { %v7854_v43 = vpop.f32.mrf.mxu1  ;;  %8608 = vst [vmem:[#allocation33_spill] sm:$0xff] %v7904_v53 }
 0x498   : > { %v3196_v30 = vsel %vm1382_vm2, %v7854_v43, 0.0 }
 0x499   : > { %v3091_v9 = vpop.f32.mrf.mxu1  ;;  %3197 = vadd.xlane.f32.xlu0 %v3196_v30  ;;  %v7906_v30 = vpop.permute.xlu1 %3903 }
 0x49a   : > { %8609 = vst [vmem:[#allocation34_spill] sm:$0xff] %v7906_v30  ;;  %v7908_v9 = vpop.permute.xlu0 %3911 }
 0x49b   : > { %v7858_v39 = vpop.f32.mrf.mxu1  ;;  %8610 = vst [vmem:[#allocation35_spill] sm:$0xff] %v7908_v9 }
 0x49c   : > { %v3199_v58 = vsel %vm1382_vm2, %v7858_v39, 0.0 }
 0x49d   : > { %v3096_v11 = vpop.f32.mrf.mxu1  ;;  %3200 = vadd.xlane.f32.xlu1 %v3199_v58  ;;  %v7910_v58 = vpop.permute.xlu1 %3915 }
 0x49e   : > { %8611 = vst [vmem:[#allocation21_spill] sm:$0xff] %v7910_v58  ;;  %v7912_v11 = vpop.permute.xlu0 %3913 }
 0x49f   : > { %v7864_v56 = vpop.f32.mrf.mxu1  ;;  %8612 = vst [vmem:[#allocation23_spill] sm:$0xff] %v7912_v11 }
 0x4a0   : > { %v3202_v38 = vsel %vm1382_vm2, %v7864_v56, 0.0 }
 0x4a1   : > { %v3101_v16 = vpop.f32.mrf.mxu1  ;;  %3203 = vadd.xlane.f32.xlu0 %v3202_v38 }
 0x4a3   : > { %v7870_v20 = vpop.f32.mrf.mxu1 }
 0x4a4   : > { %v3205_v33 = vsel %vm1382_vm2, %v7870_v20, 0.0 }
 0x4a5   : > { %v3106_v45 = vpop.f32.mrf.mxu1  ;;  %3206 = vadd.xlane.f32.xlu1 %v3205_v33 }
 0x4a7   : > { %v7874_v49 = vpop.f32.mrf.mxu1 }
 0x4a8   : > { %v3208_v1 = vsel %vm1382_vm2, %v7874_v49, 0.0 }
 0x4a9   : > { %v3111_v7 = vpop.f32.mrf.mxu1  ;;  %3209 = vadd.xlane.f32.xlu0 %v3208_v1  ;;  %v8613_v1 = vld [vmem:[#allocation19_spill] sm:$0xff] }
 0x4aa   : > { %v4529_v7 = vmul.f32 -1.442695, %v8613_v1 }
 0x4ab   : > { %v7882_v10 = vpop.f32.mrf.mxu1 }
 0x4ac   : > { %v3211_v60 = vsel %vm1382_vm2, %v7882_v10, 0.0  ;;  %5180 = vpow2.f32 %v4529_v7 }
 0x4ad   : > { %3212 = vadd.xlane.f32.xlu1 %v3211_v60  ;;  %v3116_v0 = vpop.f32.mrf.mxu1 }
 0x4d6   : > { %v3141_v38 = vpop.xlane.xlu1 %3140  ;;  %v3120_v16 = vpop.xlane.xlu0 %3119 }
 0x4d7   : > { %v3222_v33 = vmul.f32 0.03125, %v3141_v38  ;;  %v3215_v45 = vmul.f32 0.03125, %v3120_v16 }
 0x4d9   : > { %v7916_v60 = vsub.f32 %v7740_v17, %v3222_v33  ;;  %v7919_v0 = vsub.f32 %v7738_v15, %v3215_v45 }
 0x4da   : > { %v3123_v53 = vpop.xlane.xlu1 %3122  ;;  %v3144_v42 = vpop.xlane.xlu0 %3143 }
 0x4db   : > { %v3216_v13 = vmul.f32 0.03125, %v3123_v53  ;;  %v3223_v9 = vmul.f32 0.03125, %v3144_v42  ;;  %v3286_v58 = vmul.f32 %v7916_v60, %v7916_v60  ;;  %v3279_v11 = vmul.f32 %v7919_v0, %v7919_v0 }
 0x4dd   : > { %v7926_v38 = vsub.f32 %v7746_v21, %v3216_v13  ;;  %v7929_v17 = vsub.f32 %v7748_v48, %v3223_v9  ;;  %v3332_v15 = vsel %vm1382_vm2, %v3286_v58, 0.0  ;;  %v3311_v16 = vsel %vm1382_vm2, %v3279_v11, 0.0  ;;  %v8614_v11 = vld [vmem:[#allocation20_spill] sm:$0xff] }
 0x4de   : > { %v3147_v33 = vpop.xlane.xlu1 %3146  ;;  %3333 = vadd.xlane.f32.xlu1 %v3332_v15  ;;  %3312 = vadd.xlane.f32.xlu0 %v3311_v16  ;;  %v3126_v42 = vpop.xlane.xlu0 %3125  ;;  %v4528_v7 = vmul.f32 -1.442695, %v8614_v11 }
 0x4df   : > { %v3224_v53 = vmul.f32 0.03125, %v3147_v33  ;;  %v3217_v45 = vmul.f32 0.03125, %v3126_v42  ;;  %v3280_v35 = vmul.f32 %v7926_v38, %v7926_v38  ;;  %v3287_v21 = vmul.f32 %v7929_v17, %v7929_v17 }
 0x4e0   : > { %5182 = vpow2.f32 %v4528_v7 }
 0x4e1   : > { %v7938_v13 = vsub.f32 %v7756_v25, %v3224_v53  ;;  %v7941_v48 = vsub.f32 %v7754_v61, %v3217_v45  ;;  %v3314_v9 = vsel %vm1382_vm2, %v3280_v35, 0.0  ;;  %v3335_v58 = vsel %vm1382_vm2, %v3287_v21, 0.0 }
 0x4e2   : > { %v3129_v15 = vpop.xlane.xlu1 %3128  ;;  %3315 = vadd.xlane.f32.xlu1 %v3314_v9  ;;  %3336 = vadd.xlane.f32.xlu0 %v3335_v58  ;;  %v3150_v16 = vpop.xlane.xlu0 %3149 }
 0x4e3   : > { %v3218_v33 = vmul.f32 0.03125, %v3129_v15  ;;  %v3225_v42 = vmul.f32 0.03125, %v3150_v16  ;;  %v3288_v30 = vmul.f32 %v7938_v13, %v7938_v13  ;;  %v3281_v25 = vmul.f32 %v7941_v48, %v7941_v48 }
 0x4e5   : > { %v7951_v61 = vsub.f32 %v7762_v2, %v3218_v33  ;;  %v7954_v35 = vsub.f32 %v7764_v29, %v3225_v42  ;;  %v3338_v53 = vsel %vm1382_vm2, %v3288_v30, 0.0  ;;  %v3317_v45 = vsel %vm1382_vm2, %v3281_v25, 0.0  ;;  %v5181_v33 = vpop.eup %5180 }
 0x4e6   : > { %v3153_v21 = vpop.xlane.xlu1 %3152  ;;  %3339 = vadd.xlane.f32.xlu1 %v3338_v53  ;;  %3318 = vadd.xlane.f32.xlu0 %v3317_v45  ;;  %v3132_v9 = vpop.xlane.xlu0 %3131 }
 0x4e7   : > { %v3226_v58 = vmul.f32 0.03125, %v3153_v21  ;;  %v3219_v15 = vmul.f32 0.03125, %v3132_v9  ;;  %v3282_v16 = vmul.f32 %v7951_v61, %v7951_v61  ;;  %v3289_v2 = vmul.f32 %v7954_v35, %v7954_v35 }
 0x4e9   : > { %v7963_v29 = vsub.f32 %v7772_v44, %v3226_v58  ;;  %v7966_v30 = vsub.f32 %v7770_v57, %v3219_v15  ;;  %v3320_v42 = vsel %vm1382_vm2, %v3282_v16, 0.0  ;;  %v3341_v25 = vsel %vm1382_vm2, %v3289_v2, 0.0 }
 0x4ea   : > { %3321 = vadd.xlane.f32.xlu1 %v3320_v42  ;;  %v3135_v7 = vpop.xlane.xlu1 %3134  ;;  %3342 = vadd.xlane.f32.xlu0 %v3341_v25  ;;  %v3156_v53 = vpop.xlane.xlu0 %3155  ;;  %v3734_v58 = vadd.f32 1.0, %v5181_v33 }
 0x4eb   : > { %v3220_v45 = vmul.f32 0.03125, %v3135_v7  ;;  %v3227_v21 = vmul.f32 0.03125, %v3156_v53  ;;  %v3290_v9 = vmul.f32 %v7963_v29, %v7963_v29  ;;  %v3283_v44 = vmul.f32 %v7966_v30, %v7966_v30 }
 0x4ec   : > { %5184 = vrcp.f32 %v3734_v58  ;;  %v3999_v58 = vld [vmem:[%s8437_s7 + $0x10] sm:$0xff] }
 0x4ed   : > { %v7975_v57 = vsub.f32 %v7778_v36, %v3220_v45  ;;  %v7978_v15 = vsub.f32 %v7780_v3, %v3227_v21  ;;  %v3344_v16 = vsel %vm1382_vm2, %v3290_v9, 0.0  ;;  %v3323_v2 = vsel %vm1382_vm2, %v3283_v44, 0.0  ;;  %v5183_v45 = vpop.eup %5182 }
 0x4ee   : > { %3345 = vadd.xlane.f32.xlu1 %v3344_v16  ;;  %3324 = vadd.xlane.f32.xlu0 %v3323_v2  ;;  %v3138_v42 = vpop.xlane.xlu0 %3137  ;;  %v3733_v44 = vadd.f32 1.0, %v5183_v45  ;;  %v4000_v2 = vld [vmem:[%s8437_s7 + $0x18] sm:$0xff] }
 0x4ef   : > { %v3221_v25 = vmul.f32 0.03125, %v3138_v42  ;;  %v3284_v7 = vmul.f32 %v7975_v57, %v7975_v57  ;;  %v3291_v33 = vmul.f32 %v7978_v15, %v7978_v15  ;;  %4697 = vmatprep.subr.mxu0 %v4000_v2  ;;  %v3998_v42 = vld [vmem:[%s8437_s7 + $0x8] sm:$0xff] }
 0x4f0   : > { %5186 = vrcp.f32 %v3733_v44  ;;  %4698 = vmatpush3.msra.mxu0 %v4000_v2 }
 0x4f1   : > { %v7987_v36 = vsub.f32 %v7786_v6, %v3221_v25  ;;  %v3326_v3 = vsel %vm1382_vm2, %v3284_v7, 0.0  ;;  %v3347_v53 = vsel %vm1382_vm2, %v3291_v33, 0.0  ;;  %4699 = vmatprep.subr.mxu0 %v3999_v58  ;;  %v3159_v33 = vpop.xlane.xlu1 %3158 }
 0x4f2   : > { %3327 = vadd.xlane.f32.xlu1 %v3326_v3  ;;  %3348 = vadd.xlane.f32.xlu0 %v3347_v53  ;;  %v3162_v3 = vpop.xlane.xlu0 %3161  ;;  %v3228_v45 = vmul.f32 0.03125, %v3159_v33 }
 0x4f3   : > { %v3285_v21 = vmul.f32 %v7987_v36, %v7987_v36  ;;  %4700 = vmatpush3.msra.mxu0 %v3999_v58  ;;  %v3229_v44 = vmul.f32 0.03125, %v3162_v3 }
 0x4f4   : > { %4701 = vmatprep.subr.mxu0 %v3998_v42 }
 0x4f5   : > { %v3329_v9 = vsel %vm1382_vm2, %v3285_v21, 0.0  ;;  %4702 = vmatpush3.msra.mxu0 %v3998_v42  ;;  %v8014_v42 = vsub.f32 %v7794_v27, %v3229_v44  ;;  %v8616_v44 = vld [vmem:[#allocation18_spill] sm:$0xff] }
 0x4f6   : > { %3330 = vadd.xlane.f32.xlu0 %v3329_v9  ;;  %v3165_v53 = vpop.xlane.xlu1 %3164 }
 0x4f9   : > { %v5185_v16 = vpop.eup %5184 }
 0x4fa   : > { %v3830_v6 = vmul.f32 %v5185_v16, %v8613_v1  ;;  %v3997_v1 = vld [vmem:[%s8437_s7] sm:$0xff]  ;;  %v3168_v21 = vpop.xlane.xlu0 %3167  ;;  %v8011_v16 = vsub.f32 %v7788_v8, %v3228_v45 }
 0x4fb   : > { %4703 = vmatprep.subr.mxu0 %v3997_v1 }
 0x4fc   : > { %4704 = vmatpush3.msra.mxu0 %v3997_v1 }
 0x4fd   : > { %v5187_v25 = vpop.eup %5186 }
 0x4fe   : > { %v3829_v7 = vmul.f32 %v5187_v25, %v8614_v11  ;;  %v3171_v9 = vpop.xlane.xlu1 %3170  ;;  %v3231_v11 = vmul.f32 0.03125, %v3168_v21 }
 0x4ff   : > { %v3232_v25 = vmul.f32 0.03125, %v3171_v9 }
 0x500   : > { %v8022_v3 = vsub.f32 %v7802_v4, %v3231_v11 }
 0x501   : > { %v8027_v27 = vsub.f32 %v7806_v28, %v3232_v25 }
 0x502   : > { %v3174_v2 = vpop.xlane.xlu0 %3173  ;;  %8615 = vst [vmem:[#allocation22_spill] sm:$0xff] %v8022_v3  ;;  %v3295_v28 = vmul.f32 %v8022_v3, %v8022_v3 }
 0x503   : > { %3919 = vrot.lane.b32.xlu1 %v3830_v6, %s5341_s21  ;;  %v3230_v6 = vmul.f32 0.03125, %v3165_v53  ;;  %v3233_v8 = vmul.f32 0.03125, %v3174_v2  ;;  %v3293_v53 = vmul.f32 %v8014_v42, %v8014_v42 }
 0x504   : > { %v3359_v3 = vsel %vm1382_vm2, %v3295_v28, 0.0 }
 0x505   : > { %v8017_v1 = vsub.f32 %v7798_v18, %v3230_v6  ;;  %v4531_v6 = vmul.f32 -1.442695, %v8616_v44  ;;  %v8034_v4 = vsub.f32 %v7810_v55, %v3233_v8  ;;  %v3353_v11 = vsel %vm1382_vm2, %v3293_v53, 0.0  ;;  %v8617_v55 = vld [vmem:[#allocation27_spill] sm:$0xff] }
 0x506   : > { %v3177_v58 = vpop.xlane.xlu1 %3176 }
 0x507   : > { %v3294_v21 = vmul.f32 %v8017_v1, %v8017_v1  ;;  %v3234_v2 = vmul.f32 0.03125, %v3177_v58  ;;  %5188 = vpow2.f32 %v4531_v6  ;;  %v4533_v58 = vmul.f32 -1.442695, %v8617_v55 }
 0x509   : > { %v8047_v8 = vsub.f32 %v7816_v31, %v3234_v2  ;;  %5190 = vpow2.f32 %v4533_v58 }
 0x50a   : > { %v3180_v33 = vpop.xlane.xlu0 %3179 }
 0x50b   : > { %v3235_v45 = vmul.f32 0.03125, %v3180_v33  ;;  %v3356_v33 = vsel %vm1382_vm2, %v3294_v21, 0.0 }
 0x50c   : > { %3917 = vrot.lane.b32.xlu0 %v3829_v7, %s5341_s21  ;;  %v3292_v7 = vmul.f32 %v8011_v16, %v8011_v16 }
 0x50d   : > { %v8040_v25 = vsub.f32 %v7822_v23, %v3235_v45  ;;  %v3297_v23 = vmul.f32 %v8034_v4, %v8034_v4 }
 0x50e   : > { %v3183_v34 = vpop.xlane.xlu1 %3182  ;;  %v3350_v18 = vsel %vm1382_vm2, %v3292_v7, 0.0 }
 0x50f   : > { %v3236_v53 = vmul.f32 0.03125, %v3183_v34  ;;  %v3299_v6 = vmul.f32 %v8040_v25, %v8040_v25  ;;  %v3365_v2 = vsel %vm1382_vm2, %v3297_v23, 0.0 }
 0x511   : > { %v8059_v31 = vsub.f32 %v7826_v32, %v3236_v53 }
 0x512   : > { %v3186_v45 = vpop.xlane.xlu0 %3185 }
 0x513   : > { %v3237_v34 = vmul.f32 0.03125, %v3186_v45  ;;  %v3300_v45 = vmul.f32 %v8059_v31, %v8059_v31 }
 0x515   : > { %v8071_v32 = vsub.f32 %v7832_v37, %v3237_v34  ;;  %v5189_v37 = vpop.eup %5188 }
 0x516   : > { %v3189_v9 = vpop.xlane.xlu1 %3188 }
 0x517   : > { %v3238_v7 = vmul.f32 0.03125, %v3189_v9  ;;  %8618 = vst [vmem:[#allocation11_spill] sm:$0xff] %v8071_v32 }
 0x519   : > { %v8053_v21 = vsub.f32 %v7838_v40, %v3238_v7  ;;  %v3298_v40 = vmul.f32 %v8047_v8, %v8047_v8 }
 0x51a   : > { %v3192_v28 = vpop.xlane.xlu0 %3191 }
 0x51b   : > { %v3239_v53 = vmul.f32 0.03125, %v3192_v28  ;;  %v3368_v23 = vsel %vm1382_vm2, %v3298_v40, 0.0  ;;  %v3301_v40 = vmul.f32 %v8071_v32, %v8071_v32 }
 0x51d   : > { %v8083_v34 = vsub.f32 %v7842_v52, %v3239_v53  ;;  %v5191_v52 = vpop.eup %5190  ;;  %v3377_v53 = vsel %vm1382_vm2, %v3301_v40, 0.0 }
 0x51e   : > { %v3195_v12 = vpop.xlane.xlu1 %3194 }
 0x51f   : > { %v3240_v9 = vmul.f32 0.03125, %v3195_v12 }
 0x521   : > { %v8065_v12 = vsub.f32 %v7848_v19, %v3240_v9 }
 0x527   : > { %3351 = vadd.xlane.f32.xlu1 %v3350_v18  ;;  %v3296_v18 = vmul.f32 %v8027_v27, %v8027_v27 }
 0x52b   : > { %3357 = vadd.xlane.f32.xlu1 %v3356_v33  ;;  %3354 = vadd.xlane.f32.xlu0 %v3353_v11  ;;  %v3362_v33 = vsel %vm1382_vm2, %v3296_v18, 0.0  ;;  %v3201_v11 = vpop.xlane.xlu1 %3200  ;;  %v3371_v18 = vsel %vm1382_vm2, %v3299_v6, 0.0  ;;  %v3304_v6 = vmul.f32 %v8065_v12, %v8065_v12 }
 0x52c   : > { %v3242_v7 = vmul.f32 0.03125, %v3201_v11  ;;  %v3198_v11 = vpop.xlane.xlu0 %3197 }
 0x52e   : > { %v8077_v19 = vsub.f32 %v7858_v39, %v3242_v7  ;;  %v3241_v39 = vmul.f32 0.03125, %v3198_v11  ;;  %v3386_v7 = vsel %vm1382_vm2, %v3304_v6, 0.0 }
 0x52f   : > { %3363 = vadd.xlane.f32.xlu1 %v3362_v33  ;;  %3360 = vadd.xlane.f32.xlu0 %v3359_v3  ;;  %v3302_v3 = vmul.f32 %v8053_v21, %v8053_v21  ;;  %v3207_v58 = vpop.xlane.xlu1 %3206 }
 0x530   : > { %8619 = vst [vmem:[#allocation25_spill] sm:$0xff] %v8077_v19  ;;  %v3244_v9 = vmul.f32 0.03125, %v3207_v58 }
 0x531   : > { %v3380_v33 = vsel %vm1382_vm2, %v3302_v3, 0.0  ;;  %v8621_v3 = vld [vmem:[#allocation37_spill] sm:$0xff] }
 0x532   : > { %v8089_v28 = vsub.f32 %v7870_v20, %v3244_v9  ;;  %v4530_v58 = vmul.f32 -1.442695, %v8621_v3  ;;  %v8099_v20 = vsub.f32 %v7854_v43, %v3241_v39 }
 0x533   : > { %3366 = vadd.xlane.f32.xlu0 %v3365_v2  ;;  %3372 = vadd.xlane.f32.xlu1 %v3371_v18  ;;  %v3374_v2 = vsel %vm1382_vm2, %v3300_v45, 0.0  ;;  %v3306_v18 = vmul.f32 %v8077_v19, %v8077_v19  ;;  %v3303_v45 = vmul.f32 %v8083_v34, %v8083_v34  ;;  %v8622_v19 = vld [vmem:[#allocation26_spill] sm:$0xff] }
 0x534   : > { %8620 = vst [vmem:[#allocation10_spill] sm:$0xff] %v8089_v28  ;;  %v3308_v11 = vmul.f32 %v8089_v28, %v8089_v28  ;;  %v4532_v32 = vmul.f32 -1.442695, %v8622_v19  ;;  %5192 = vpow2.f32 %v4530_v58 }
 0x535   : > { %v3392_v6 = vsel %vm1382_vm2, %v3306_v18, 0.0  ;;  %v3383_v40 = vsel %vm1382_vm2, %v3303_v45, 0.0  ;;  %v3305_v18 = vmul.f32 %v8099_v20, %v8099_v20 }
 0x536   : > { %v3398_v39 = vsel %vm1382_vm2, %v3308_v11, 0.0 }
 0x537   : > { %3369 = vadd.xlane.f32.xlu0 %v3368_v23  ;;  %3381 = vadd.xlane.f32.xlu1 %v3380_v33  ;;  %v3204_v23 = vpop.xlane.xlu0 %3203  ;;  %v3736_v33 = vadd.f32 1.0, %v5189_v37 }
 0x538   : > { %v3243_v9 = vmul.f32 0.03125, %v3204_v23  ;;  %v8623_v23 = vld [vmem:[#allocation30_spill] sm:$0xff] }
 0x539   : > { %5194 = vrcp.f32 %v3736_v33  ;;  %v4534_v28 = vmul.f32 -1.442695, %v8623_v23 }
 0x53a   : > { %v8107_v37 = vsub.f32 %v7864_v56, %v3243_v9  ;;  %5196 = vpow2.f32 %v4532_v32 }
 0x53b   : > { %3375 = vadd.xlane.f32.xlu0 %v3374_v2  ;;  %3387 = vadd.xlane.f32.xlu1 %v3386_v7  ;;  %v3210_v2 = vpop.xlane.xlu0 %3209  ;;  %v3738_v7 = vadd.f32 1.0, %v5191_v52 }
 0x53c   : > { %v3245_v43 = vmul.f32 0.03125, %v3210_v2  ;;  %v3307_v56 = vmul.f32 %v8107_v37, %v8107_v37 }
 0x53d   : > { %5198 = vrcp.f32 %v3738_v7 }
 0x53e   : > { %v8114_v58 = vsub.f32 %v7874_v49, %v3245_v43  ;;  %5200 = vpow2.f32 %v4534_v28  ;;  %v3395_v52 = vsel %vm1382_vm2, %v3307_v56, 0.0  ;;  %v3213_v56 = vpop.xlane.xlu1 %3212 }
 0x53f   : > { %3393 = vadd.xlane.f32.xlu1 %v3392_v6  ;;  %3378 = vadd.xlane.f32.xlu0 %v3377_v53  ;;  %v3389_v53 = vsel %vm1382_vm2, %v3305_v18, 0.0  ;;  %v8624_v18 = vld [vmem:[#allocation7_spill] sm:$0xff] }
 0x540   : > { %v3309_v45 = vmul.f32 %v8114_v58, %v8114_v58 }
 0x541   : > { %v5193_v33 = vpop.eup %5192 }
 0x542   : > { %v3401_v32 = vsel %vm1382_vm2, %v3309_v45, 0.0  ;;  %v3735_v49 = vadd.f32 1.0, %v5193_v33 }
 0x543   : > { %3399 = vadd.xlane.f32.xlu1 %v3398_v39  ;;  %3384 = vadd.xlane.f32.xlu0 %v3383_v40 }
 0x544   : > { %5202 = vrcp.f32 %v3735_v49 }
 0x546   : > { %v5195_v9 = vpop.eup %5194 }
 0x547   : > { %3390 = vadd.xlane.f32.xlu0 %v3389_v53  ;;  %v5197_v6 = vpop.eup %5196  ;;  %v3832_v11 = vmul.f32 %v5195_v9, %v8616_v44  ;;  %v4535_v53 = vmul.f32 -1.442695, %v8624_v18 }
 0x548   : > { %v3737_v40 = vadd.f32 1.0, %v5197_v6 }
 0x54a   : > { %v5199_v2 = vpop.eup %5198  ;;  %5204 = vrcp.f32 %v3737_v40 }
 0x54b   : > { %3396 = vadd.xlane.f32.xlu0 %v3395_v52  ;;  %v5201_v7 = vpop.eup %5200  ;;  %v3834_v28 = vmul.f32 %v5199_v2, %v8617_v55 }
 0x54c   : > { %v3739_v43 = vadd.f32 1.0, %v5201_v7  ;;  %v3246_v7 = vmul.f32 0.03125, %v3213_v56 }
 0x54e   : > { %5206 = vrcp.f32 %v3739_v43 }
 0x54f   : > { %3402 = vadd.xlane.f32.xlu0 %v3401_v32  ;;  %5208 = vpow2.f32 %v4535_v53 }
 0x551   : > { %v5203_v39 = vpop.eup %5202 }
 0x552   : > { %v3831_v52 = vmul.f32 %v5203_v39, %v8621_v3 }
 0x554   : > { %3923 = vrot.lane.b32.xlu1 %v3832_v11, %s5341_s21 }
 0x557   : > { %v5205_v44 = vpop.eup %5204 }
 0x558   : > { %3927 = vrot.lane.b32.xlu1 %v3834_v28, %s5341_s21  ;;  %v3833_v9 = vmul.f32 %v5205_v44, %v8622_v19 }
 0x55b   : > { %v5207_v55 = vpop.eup %5206 }
 0x55c   : > { %v3835_v2 = vmul.f32 %v5207_v55, %v8623_v23  ;;  %v5209_v53 = vpop.eup %5208 }
 0x565   : > { %3921 = vrot.lane.b32.xlu0 %v3831_v52, %s5341_s21  ;;  %v8135_v52 = vsub.f32 %v7882_v10, %v3246_v7 }
 0x567   : > { %v3334_v45 = vpop.xlane.xlu1 %3333  ;;  %v3313_v33 = vpop.xlane.xlu0 %3312 }
 0x568   : > { %v3407_v32 = vmul.f32 0.03125, %v3313_v33  ;;  %v3414_v44 = vmul.f32 0.03125, %v3334_v45  ;;  %v8142_v45 = vld [vmem:[%s8435_s5] ss:$0 sm:$0xff] }
 0x569   : > { %3925 = vrot.lane.b32.xlu0 %v3833_v9, %s5341_s21 }
 0x56a   : > { %v3439_v49 = vadd.f32 1e-05, %v3407_v32 }
 0x56b   : > { %v3316_v6 = vpop.xlane.xlu1 %3315  ;;  %v3337_v11 = vpop.xlane.xlu0 %3336 }
 0x56c   : > { %v3408_v40 = vmul.f32 0.03125, %v3316_v6  ;;  %5210 = vrsqrt.f32 %v3439_v49  ;;  %v3415_v32 = vmul.f32 0.03125, %v3337_v11  ;;  %v3740_v49 = vadd.f32 1.0, %v5209_v53 }
 0x56d   : > { %3929 = vrot.lane.b32.xlu0 %v3835_v2, %s5341_s21  ;;  %v3446_v6 = vadd.f32 1e-05, %v3414_v44 }
 0x56e   : > { %v3440_v3 = vadd.f32 1e-05, %v3408_v40  ;;  %v3310_v40 = vmul.f32 %v8135_v52, %v8135_v52 }
 0x56f   : > { %v3340_v28 = vpop.xlane.xlu1 %3339  ;;  %v3319_v43 = vpop.xlane.xlu0 %3318 }
 0x570   : > { %5212 = vrsqrt.f32 %v3440_v3  ;;  %v3409_v39 = vmul.f32 0.03125, %v3319_v43  ;;  %v3447_v3 = vadd.f32 1e-05, %v3415_v32  ;;  %v3404_v44 = vsel %vm1382_vm2, %v3310_v40, 0.0 }
 0x572   : > { %v3441_v19 = vadd.f32 1e-05, %v3409_v39  ;;  %v3416_v39 = vmul.f32 0.03125, %v3340_v28  ;;  %v8149_v28 = vld [vmem:[%s8436_s6] ss:$0 sm:$0xff] }
 0x573   : > { %v3322_v33 = vpop.xlane.xlu1 %3321  ;;  %v3343_v9 = vpop.xlane.xlu0 %3342 }
 0x574   : > { %v3410_v23 = vmul.f32 0.03125, %v3322_v33  ;;  %5214 = vrsqrt.f32 %v3441_v19  ;;  %v3417_v11 = vmul.f32 0.03125, %v3343_v9 }
 0x576   : > { %v3442_v55 = vadd.f32 1e-05, %v3410_v23 }
 0x577   : > { %v3346_v2 = vpop.xlane.xlu1 %3345  ;;  %v3325_v56 = vpop.xlane.xlu0 %3324 }
 0x578   : > { %5216 = vrsqrt.f32 %v3442_v55  ;;  %v3411_v43 = vmul.f32 0.03125, %v3325_v56  ;;  %v3448_v55 = vadd.f32 1e-05, %v3416_v39  ;;  %v3418_v9 = vmul.f32 0.03125, %v3346_v2 }
 0x579   : > { %v5211_v10 = vpop.eup %5210  ;;  %5218 = vrcp.f32 %v3740_v49  ;;  %v3449_v56 = vadd.f32 1e-05, %v3417_v11 }
 0x57a   : > { %v3443_v7 = vadd.f32 1e-05, %v3411_v43  ;;  %5220 = vrsqrt.f32 %v3446_v6  ;;  %v3503_v33 = vmul.f32 %v5211_v10, %v7919_v0 }
 0x57b   : > { %v3328_v19 = vpop.xlane.xlu1 %3327  ;;  %v3349_v53 = vpop.xlane.xlu0 %3348  ;;  %5222 = vrsqrt.f32 %v3447_v3 }
 0x57c   : > { %v3412_v32 = vmul.f32 0.03125, %v3328_v19  ;;  %3405 = vadd.xlane.f32.xlu1 %v3404_v44  ;;  %5224 = vrsqrt.f32 %v3443_v7  ;;  %v3542_v49 = vmul.f32 %v8142_v45, %v3503_v33  ;;  %v3419_v43 = vmul.f32 0.03125, %v3349_v53 }
 0x57d   : > { %v5213_v23 = vpop.eup %5212  ;;  %v3450_v44 = vadd.f32 1e-05, %v3418_v9 }
 0x57e   : > { %v3504_v6 = vmul.f32 %v5213_v23, %v7926_v38  ;;  %v3444_v40 = vadd.f32 1e-05, %v3412_v32  ;;  %v3581_v3 = vadd.f32 %v8149_v28, %v3542_v49  ;;  %v3451_v7 = vadd.f32 1e-05, %v3419_v43 }
 0x57f   : > { %v3331_v0 = vpop.xlane.xlu0 %3330 }
 0x580   : > { %v3543_v10 = vmul.f32 %v8142_v45, %v3504_v6  ;;  %5226 = vrsqrt.f32 %v3444_v40  ;;  %v3413_v19 = vmul.f32 0.03125, %v3331_v0  ;;  %v3965_v39 = vmul.f32 %v7876_v26, %v3581_v3 }
 0x581   : > { %5228 = vrsqrt.f32 %v3448_v55  ;;  %v5215_v2 = vpop.eup %5214 }
 0x582   : > { %5230 = vrsqrt.f32 %v3449_v56  ;;  %v3445_v33 = vadd.f32 1e-05, %v3413_v19  ;;  %v3582_v38 = vadd.f32 %v8149_v28, %v3543_v10  ;;  %4705 = vmatprep.mubr.msk.f32.mxu0 %vm1382_vm2, %v3965_v39  ;;  %v3505_v11 = vmul.f32 %v5215_v2, %v7941_v48 }
 0x584   : > { %5232 = vrsqrt.f32 %v3445_v33  ;;  %v3966_v53 = vmul.f32 %v7812_v63, %v3582_v38  ;;  %v3544_v23 = vmul.f32 %v8142_v45, %v3505_v11 }
 0x585   : > { %v5217_v32 = vpop.eup %5216  ;;  %5234 = vrsqrt.f32 %v3450_v44 }
 0x586   : > { %5236 = vrsqrt.f32 %v3451_v7  ;;  %4706 = vmatmul.mubr.msk.f32.vlgmr.msra.gmra.mxu0 %vm1382_vm2, %v3966_v53  ;;  %v3506_v26 = vmul.f32 %v5217_v32, %v7951_v61  ;;  %v5219_v55 = vpop.eup %5218  ;;  %v3583_v9 = vadd.f32 %v8149_v28, %v3544_v23 }
 0x587   : > { %v5221_v49 = vpop.eup %5220  ;;  %v3836_v43 = vmul.f32 %v5219_v55, %v8624_v18 }
 0x588   : > { %v3545_v6 = vmul.f32 %v8142_v45, %v3506_v26  ;;  %v5223_v56 = vpop.eup %5222  ;;  %v3967_v48 = vmul.f32 %v7820_v59, %v3583_v9  ;;  %v3510_v19 = vmul.f32 %v5221_v49, %v7916_v60 }
 0x589   : > { %v5225_v40 = vpop.eup %5224  ;;  %v3511_v39 = vmul.f32 %v5223_v56, %v7929_v17 }
 0x58a   : > { %v3584_v63 = vadd.f32 %v8149_v28, %v3545_v6  ;;  %4708 = vmatprep.mubr.msk.f32.mxu0 %vm1382_vm2, %v3967_v48  ;;  %v3507_v0 = vmul.f32 %v5225_v40, %v7966_v30  ;;  %v3549_v33 = vmul.f32 %v8142_v45, %v3510_v19 }
 0x58c   : > { %v3968_v61 = vmul.f32 %v7886_v22, %v3584_v63  ;;  %v3546_v10 = vmul.f32 %v8142_v45, %v3507_v0  ;;  %v3588_v26 = vadd.f32 %v8149_v28, %v3549_v33 }
 0x58d   : > { %v5227_v3 = vpop.eup %5226  ;;  %3931 = vrot.lane.b32.xlu1 %v3836_v43, %s5341_s21  ;;  %s296_s21 = sand.u32 1, %s5330_s28  }
 0x58e   : > { %v5229_v44 = vpop.eup %5228  ;;  %4709 = vmatmul.mubr.msk.f32.gmra.mxu0 %vm1382_vm2, %v3968_v61  ;;  %v3508_v59 = vmul.f32 %v5227_v3, %v7975_v57  ;;  %v3585_v18 = vadd.f32 %v8149_v28, %v3546_v10  ;;  %v3550_v57 = vmul.f32 %v8142_v45, %v3511_v39  ;;  %v3972_v6 = vmul.f32 %v7844_v41, %v3588_v26  ;;  %v8217_v61 = vpop.permute.xlu1 %3919  ;;  %s4434_s22 = sshll.u32 %s296_s21, 8  ;;  %s8390_s13 = scalar_lea.sflag [#allocation5], %s296_s21 }
 0x58f   : > { %v5231_v2 = vpop.eup %5230  ;;  %v3512_v38 = vmul.f32 %v5229_v44, %v7938_v13  ;;  %s8313_s23 = scalar_lea.vmem [#allocation4], %s4434_s22 }
 0x590   : > { %v3547_v30 = vmul.f32 %v8142_v45, %v3508_v59  ;;  %v3969_v7 = vmul.f32 %v7828_v14, %v3585_v18  ;;  %v3513_v17 = vmul.f32 %v5231_v2, %v7954_v35  ;;  %v3589_v9 = vadd.f32 %v8149_v28, %v3550_v57  ;;  %s4368_s25 = sshll.u32 %s8313_s23, 4  ;;  %s8382_s25 = int_to_ptr.vmem [resolvable:$true] %s4368_s25 }
 0x591   : > { %v5233_v22 = vpop.eup %5232  ;;  %v3551_v13 = vmul.f32 %v8142_v45, %v3512_v38  ;;  %s5278_s9 = scalar_lea.vmem %s8382_s25, 4096  ;;  %p5285_p0 = scmp.lt.s32.totalorder %s8382_s25, %s5283_s18 }
 0x592   : > { %v5235_v60 = vpop.eup %5234  ;;  %v3586_v11 = vadd.f32 %v8149_v28, %v3547_v30  ;;  %v3509_v53 = vmul.f32 %v5233_v22, %v7987_v36  ;;  %4711 = vmatprep.mubr.msk.f32.mxu0 %vm1382_vm2, %v3969_v7  ;;  %v3552_v35 = vmul.f32 %v8142_v45, %v3513_v17  ;;  %p5279_p11 = scmp.ne.s32.totalorder %s8382_s25, %s5278_s9  ;;  %p5286_p1 = scmp.lt.s32.totalorder %s5284_s19, %s5278_s9 }
 0x593   : > { %v5237_v32 = vpop.eup %5236  ;;  %v3514_v55 = vmul.f32 %v5235_v60, %v7963_v29  ;;  %v3590_v56 = vadd.f32 %v8149_v28, %v3551_v13  ;;  %v3973_v29 = vmul.f32 %v7894_v62, %v3589_v9 }
 0x594   : > { %v3970_v23 = vmul.f32 %v7836_v47, %v3586_v11  ;;  %v3548_v14 = vmul.f32 %v8142_v45, %v3509_v53  ;;  %v3515_v49 = vmul.f32 %v5237_v32, %v7978_v15  ;;  %v3591_v40 = vadd.f32 %v8149_v28, %v3552_v35  ;;  %p5280_p12 = pnand %p5279_p11, %p5428_p5  ;;  %p5287_p2 = por %p5286_p1, %p5285_p0 }
 0x595   : > { %v3553_v48 = vmul.f32 %v8142_v45, %v3514_v55 }
 0x596   : > { %4712 = vmatmul.mubr.msk.f32.gmra.mxu0 %vm1382_vm2, %v3970_v23  ;;  %v3587_v36 = vadd.f32 %v8149_v28, %v3548_v14  ;;  %v3554_v63 = vmul.f32 %v8142_v45, %v3515_v49  ;;  %v3975_v15 = vmul.f32 %v7898_v50, %v3591_v40  ;;  %p5281_p13 = pneg %p5280_p12 }
 0x597   : > { %v3592_v41 = vadd.f32 %v8149_v28, %v3553_v48 }
 0x598   : > { %v3971_v47 = vmul.f32 %v7890_v54, %v3587_v36  ;;  %v3974_v54 = vmul.f32 %v7852_v5, %v3590_v56  ;;  %v3593_v43 = vadd.f32 %v8149_v28, %v3554_v63  ;;  %v8219_v5 = vpop.permute.xlu0 %3917  ;;  %p5288_p3 = pnand %p5287_p2, %p5281_p13 }
 0x599   : > { %v3976_v62 = vmul.f32 %v7860_v24, %v3592_v41 }
 0x59a   : > { %4714 = vmatprep.mubr.msk.f32.mxu0 %vm1382_vm2, %v3971_v47  ;;  %v3977_v0 = vmul.f32 %v7902_v51, %v3593_v43 }
 0x59b   : > { %4715 = vmatmul.mubr.msk.f32.gmra.mxu0 %vm1382_vm2, %v3972_v6 }
 0x59c   : > { %4717 = vmatprep.mubr.msk.f32.mxu0 %vm1382_vm2, %v3973_v29 }
 0x59f   : > { %4718 = vmatmul.mubr.msk.f32.gmra.mxu0 %vm1382_vm2, %v3974_v54 }
 0x5a0   : > { %4720 = vmatprep.mubr.msk.f32.mxu0 %vm1382_vm2, %v3975_v15 }
 0x5a3   : > { %4721 = vmatmul.mubr.msk.f32.gmra.mxu0 %vm1382_vm2, %v3976_v62 }
 0x5a4   : > { %4723 = vmatprep.mubr.msk.f32.mxu0 %vm1382_vm2, %v3977_v0 }
 0x5b0   : > { %v3352_v3 = vpop.xlane.xlu1 %3351 }
 0x5b1   : > { %v3420_v50 = vmul.f32 0.03125, %v3352_v3 }
 0x5b3   : > { %v3452_v10 = vadd.f32 1e-05, %v3420_v50 }
 0x5b4   : > { %v3358_v19 = vpop.xlane.xlu1 %3357  ;;  %v3355_v44 = vpop.xlane.xlu0 %3354 }
 0x5b5   : > { %5238 = vrsqrt.f32 %v3452_v10  ;;  %v3422_v59 = vmul.f32 0.03125, %v3358_v19  ;;  %v3421_v39 = vmul.f32 0.03125, %v3355_v44 }
 0x5b7   : > { %v3454_v2 = vadd.f32 1e-05, %v3422_v59  ;;  %v3453_v24 = vadd.f32 1e-05, %v3421_v39 }
 0x5b8   : > { %v3364_v18 = vpop.xlane.xlu1 %3363  ;;  %v3361_v51 = vpop.xlane.xlu0 %3360 }
 0x5b9   : > { %5240 = vrsqrt.f32 %v3454_v2  ;;  %v3424_v30 = vmul.f32 0.03125, %v3364_v18  ;;  %v3423_v22 = vmul.f32 0.03125, %v3361_v51 }
 0x5ba   : > { %5242 = vrsqrt.f32 %v3453_v24 }
 0x5bb   : > { %v3456_v7 = vadd.f32 1e-05, %v3424_v30  ;;  %v3455_v33 = vadd.f32 1e-05, %v3423_v22 }
 0x5bc   : > { %v3373_v38 = vpop.xlane.xlu1 %3372  ;;  %v3367_v60 = vpop.xlane.xlu0 %3366 }
 0x5bd   : > { %5244 = vrsqrt.f32 %v3456_v7  ;;  %v3427_v11 = vmul.f32 0.03125, %v3373_v38  ;;  %v3425_v53 = vmul.f32 0.03125, %v3367_v60  ;;  %v8626_v38 = vld [vmem:[#allocation31_spill] sm:$0xff] }
 0x5be   : > { %5246 = vrsqrt.f32 %v3455_v33 }
 0x5bf   : > { %v3459_v57 = vadd.f32 1e-05, %v3427_v11  ;;  %v3457_v17 = vadd.f32 1e-05, %v3425_v53  ;;  %v8627_v11 = vld [vmem:[#allocation36_spill] sm:$0xff] }
 0x5c0   : > { %v3382_v32 = vpop.xlane.xlu1 %3381  ;;  %v3370_v23 = vpop.xlane.xlu0 %3369 }
 0x5c1   : > { %5248 = vrsqrt.f32 %v3459_v57  ;;  %v3430_v14 = vmul.f32 0.03125, %v3382_v32  ;;  %v3426_v26 = vmul.f32 0.03125, %v3370_v23 }
 0x5c2   : > { %v5239_v13 = vpop.eup %5238  ;;  %5250 = vrsqrt.f32 %v3457_v17 }
 0x5c3   : > { %v3462_v55 = vadd.f32 1e-05, %v3430_v14  ;;  %v3458_v36 = vadd.f32 1e-05, %v3426_v26  ;;  %v3516_v9 = vmul.f32 %v5239_v13, %v8011_v16 }
 0x5c4   : > { %v3388_v35 = vpop.xlane.xlu1 %3387  ;;  %v3376_v49 = vpop.xlane.xlu0 %3375 }
 0x5c5   : > { %5252 = vrsqrt.f32 %v3462_v55  ;;  %v3432_v47 = vmul.f32 0.03125, %v3388_v35  ;;  %v3428_v6 = vmul.f32 0.03125, %v3376_v49  ;;  %v3555_v56 = vmul.f32 %v8142_v45, %v3516_v9  ;;  %v8628_v9 = vld [vmem:[#allocation34_spill] sm:$0xff] }
 0x5c6   : > { %v5241_v48 = vpop.eup %5240  ;;  %5254 = vrsqrt.f32 %v3458_v36 }
 0x5c7   : > { %v5243_v29 = vpop.eup %5242  ;;  %v3464_v40 = vadd.f32 1e-05, %v3432_v47  ;;  %v3460_v63 = vadd.f32 1e-05, %v3428_v6  ;;  %v3594_v54 = vadd.f32 %v8149_v28, %v3555_v56  ;;  %v3518_v41 = vmul.f32 %v5241_v48, %v8017_v1  ;;  %v8629_v47 = vld [vmem:[#allocation32_spill] sm:$0xff] }
 0x5c8   : > { %v3394_v15 = vpop.xlane.xlu1 %3393  ;;  %v3379_v43 = vpop.xlane.xlu0 %3378  ;;  %v3517_v16 = vmul.f32 %v5243_v29, %v8014_v42 }
 0x5c9   : > { %5256 = vrsqrt.f32 %v3464_v40  ;;  %v3434_v62 = vmul.f32 0.03125, %v3394_v15  ;;  %v3429_v0 = vmul.f32 0.03125, %v3379_v43  ;;  %v3978_v3 = vmul.f32 %v7868_v46, %v3594_v54  ;;  %v8625_v46 = vld [vmem:[#allocation22_spill] sm:$0xff]  ;;  %v8630_v15 = vld [vmem:[#allocation28_spill] sm:$0xff] }
 0x5ca   : > { %v5245_v50 = vpop.eup %5244  ;;  %5258 = vrsqrt.f32 %v3460_v63  ;;  %v3556_v10 = vmul.f32 %v8142_v45, %v3517_v16  ;;  %v3557_v19 = vmul.f32 %v8142_v45, %v3518_v41 }
 0x5cb   : > { %v5247_v44 = vpop.eup %5246  ;;  %v3466_v59 = vadd.f32 1e-05, %v3434_v62  ;;  %v3461_v39 = vadd.f32 1e-05, %v3429_v0  ;;  %4724 = vmatmul.mubr.msk.f32.gmra.mxu0 %vm1382_vm2, %v3978_v3  ;;  %v3520_v1 = vmul.f32 %v5245_v50, %v8027_v27 }
 0x5cc   : > { %v3400_v2 = vpop.xlane.xlu1 %3399  ;;  %v3385_v42 = vpop.xlane.xlu0 %3384  ;;  %v3595_v24 = vadd.f32 %v8149_v28, %v3556_v10  ;;  %v3596_v18 = vadd.f32 %v8149_v28, %v3557_v19  ;;  %v3519_v51 = vmul.f32 %v5247_v44, %v8625_v46  ;;  %v8632_v46 = vld [vmem:[#allocation33_spill] sm:$0xff] }
 0x5cd   : > { %5260 = vrsqrt.f32 %v3466_v59  ;;  %v3436_v30 = vmul.f32 0.03125, %v3400_v2  ;;  %v3431_v22 = vmul.f32 0.03125, %v3385_v42  ;;  %v3559_v7 = vmul.f32 %v8142_v45, %v3520_v1 }
 0x5ce   : > { %v5249_v33 = vpop.eup %5248  ;;  %5262 = vrsqrt.f32 %v3461_v39  ;;  %v3979_v60 = vmul.f32 %v8626_v38, %v3595_v24  ;;  %v3980_v53 = vmul.f32 %v8627_v11, %v3596_v18  ;;  %v3558_v27 = vmul.f32 %v8142_v45, %v3519_v51  ;;  %v8631_v39 = vld [vmem:[#allocation14_spill] sm:$0xff]  ;;  %v8635_v11 = vld [vmem:[#allocation25_spill] sm:$0xff] }
 0x5cf   : > { %v5251_v57 = vpop.eup %5250  ;;  %v3468_v17 = vadd.f32 1e-05, %v3436_v30  ;;  %v3463_v32 = vadd.f32 1e-05, %v3431_v22  ;;  %v3598_v23 = vadd.f32 %v8149_v28, %v3559_v7  ;;  %v3523_v14 = vmul.f32 %v5249_v33, %v8040_v25  ;;  %v8634_v7 = vld [vmem:[#allocation35_spill] sm:$0xff] }
 0x5d0   : > { %4726 = vmatprep.mubr.msk.f32.mxu0 %vm1382_vm2, %v3979_v60  ;;  %v3391_v26 = vpop.xlane.xlu0 %3390  ;;  %v3597_v13 = vadd.f32 %v8149_v28, %v3558_v27  ;;  %v3521_v55 = vmul.f32 %v5251_v57, %v8034_v4 }
 0x5d1   : > { %4727 = vmatmul.mubr.msk.f32.gmra.mxu0 %vm1382_vm2, %v3980_v53  ;;  %v3433_v36 = vmul.f32 0.03125, %v3391_v26  ;;  %v3982_v35 = vmul.f32 %v8628_v9, %v3598_v23  ;;  %5264 = vrsqrt.f32 %v3463_v32  ;;  %v3562_v29 = vmul.f32 %v8142_v45, %v3523_v14  ;;  %v8636_v14 = vld [vmem:[#allocation23_spill] sm:$0xff]  ;;  %v8637_v9 = vld [vmem:[#allocation10_spill] sm:$0xff] }
 0x5d2   : > { %v5253_v49 = vpop.eup %5252  ;;  %v3981_v6 = vmul.f32 %v8629_v47, %v3597_v13  ;;  %v3560_v56 = vmul.f32 %v8142_v45, %v3521_v55  ;;  %5266 = vrsqrt.f32 %v3468_v17  ;;  %v8638_v47 = vld [vmem:[#allocation21_spill] sm:$0xff] }
 0x5d3   : > { %v5255_v48 = vpop.eup %5254  ;;  %v3465_v25 = vadd.f32 1e-05, %v3433_v36  ;;  %v3601_v3 = vadd.f32 %v8149_v28, %v3562_v29  ;;  %v3526_v50 = vmul.f32 %v5253_v49, %v8053_v21 }
 0x5d4   : > { %4729 = vmatprep.mubr.msk.f32.mxu0 %vm1382_vm2, %v3981_v6  ;;  %v3397_v40 = vpop.xlane.xlu0 %3396  ;;  %v3599_v4 = vadd.f32 %v8149_v28, %v3560_v56  ;;  %v3522_v63 = vmul.f32 %v5255_v48, %v8047_v8 }
 0x5d5   : > { %5268 = vrsqrt.f32 %v3465_v25  ;;  %4730 = vmatmul.mubr.msk.f32.gmra.mxu0 %vm1382_vm2, %v3982_v35  ;;  %v3435_v54 = vmul.f32 0.03125, %v3397_v40  ;;  %v3985_v21 = vmul.f32 %v8632_v46, %v3601_v3  ;;  %v3565_v51 = vmul.f32 %v8142_v45, %v3526_v50 }
 0x5d6   : > { %v5257_v41 = vpop.eup %5256  ;;  %v3983_v43 = vmul.f32 %v8630_v15, %v3599_v4  ;;  %v3561_v16 = vmul.f32 %v8142_v45, %v3522_v63 }
 0x5d7   : > { %v5259_v62 = vpop.eup %5258  ;;  %v3467_v0 = vadd.f32 1e-05, %v3435_v54  ;;  %v3528_v42 = vmul.f32 %v5257_v41, %v8065_v12  ;;  %v3604_v27 = vadd.f32 %v8149_v28, %v3565_v51  ;;  %v3924_v41 = vpop.permute.xlu1 %3923 }
 0x5d8   : > { %4732 = vmatprep.mubr.msk.f32.mxu0 %vm1382_vm2, %v3983_v43  ;;  %v3403_v10 = vpop.xlane.xlu0 %3402  ;;  %v3600_v8 = vadd.f32 %v8149_v28, %v3561_v16  ;;  %v3524_v19 = vmul.f32 %v5259_v62, %v8059_v31  ;;  %v8633_v31 = vld [vmem:[#allocation11_spill] sm:$0xff] }
 0x5d9   : > { %5270 = vrsqrt.f32 %v3467_v0  ;;  %v3437_v44 = vmul.f32 0.03125, %v3403_v10  ;;  %v3567_v12 = vmul.f32 %v8142_v45, %v3528_v42  ;;  %v3988_v6 = vmul.f32 %v8638_v47, %v3604_v27 }
 0x5da   : > { %v5261_v59 = vpop.eup %5260  ;;  %v3984_v1 = vmul.f32 %v8631_v39, %v3600_v8  ;;  %v3563_v2 = vmul.f32 %v8142_v45, %v3524_v19 }
 0x5db   : > { %v5263_v24 = vpop.eup %5262  ;;  %v3469_v18 = vadd.f32 1e-05, %v3437_v44  ;;  %v3530_v53 = vmul.f32 %v5261_v59, %v8635_v11  ;;  %v3606_v55 = vadd.f32 %v8149_v28, %v3567_v12  ;;  %v3928_v10 = vpop.permute.xlu1 %3927 }
 0x5dc   : > { %4733 = vmatmul.mubr.msk.f32.gmra.mxu0 %vm1382_vm2, %v3984_v1  ;;  %v3602_v30 = vadd.f32 %v8149_v28, %v3563_v2  ;;  %v3525_v22 = vmul.f32 %v5263_v24, %v8633_v31  ;;  %v3922_v56 = vpop.permute.xlu0 %3921 }
 0x5dd   : > { %5272 = vrsqrt.f32 %v3469_v18  ;;  %4735 = vmatprep.mubr.msk.f32.mxu0 %vm1382_vm2, %v3985_v21  ;;  %v3569_v36 = vmul.f32 %v8142_v45, %v3530_v53  ;;  %v3990_v40 = vmul.f32 %v8217_v61, %v3606_v55 }
 0x5de   : > { %v3986_v33 = vmul.f32 %v8634_v7, %v3602_v30  ;;  %v3564_v38 = vmul.f32 %v8142_v45, %v3525_v22  ;;  %v5265_v60 = vpop.eup %5264 }
 0x5df   : > { %v5267_v57 = vpop.eup %5266  ;;  %v3527_v32 = vmul.f32 %v5265_v60, %v8083_v34  ;;  %v3608_v4 = vadd.f32 %v8149_v28, %v3569_v36 }
 0x5e0   : > { %4736 = vmatmul.mubr.msk.f32.gmra.mxu0 %vm1382_vm2, %v3986_v33  ;;  %v3603_v17 = vadd.f32 %v8149_v28, %v3564_v38  ;;  %v3532_v35 = vmul.f32 %v5267_v57, %v8637_v9 }
 0x5e1   : > { %v3566_v13 = vmul.f32 %v8142_v45, %v3527_v32  ;;  %v3992_v62 = vmul.f32 %v3924_v41, %v3608_v4 }
 0x5e2   : > { %v5269_v23 = vpop.eup %5268  ;;  %v3987_v26 = vmul.f32 %v8636_v14, %v3603_v17 }
 0x5e3   : > { %v3529_v49 = vmul.f32 %v5269_v23, %v8099_v20  ;;  %v3605_v34 = vadd.f32 %v8149_v28, %v3566_v13  ;;  %v3571_v20 = vmul.f32 %v8142_v45, %v3532_v35 }
 0x5e4   : > { %4738 = vmatprep.mubr.msk.f32.mxu0 %vm1382_vm2, %v3987_v26 }
 0x5e5   : > { %v3568_v48 = vmul.f32 %v8142_v45, %v3529_v49  ;;  %4739 = vmatmul.mubr.msk.f32.gmra.mxu0 %vm1382_vm2, %v3988_v6  ;;  %v3989_v29 = vmul.f32 %v8219_v5, %v3605_v34  ;;  %v3926_v5 = vpop.permute.xlu0 %3925  ;;  %v3610_v61 = vadd.f32 %v8149_v28, %v3571_v20 }
 0x5e6   : > { %v5271_v25 = vpop.eup %5270 }
 0x5e7   : > { %v3607_v63 = vadd.f32 %v8149_v28, %v3568_v48  ;;  %v3531_v54 = vmul.f32 %v5271_v25, %v8107_v37  ;;  %4741 = vmatprep.mubr.msk.f32.mxu0 %vm1382_vm2, %v3989_v29  ;;  %v3994_v8 = vmul.f32 %v3928_v10, %v3610_v61 }
 0x5e9   : > { %v3991_v15 = vmul.f32 %v3922_v56, %v3607_v63  ;;  %v3570_v43 = vmul.f32 %v8142_v45, %v3531_v54  ;;  %4742 = vmatmul.mubr.msk.f32.gmra.mxu0 %vm1382_vm2, %v3990_v40  ;;  %v3930_v44 = vpop.permute.xlu0 %3929 }
 0x5ea   : > { %v5273_v16 = vpop.eup %5272 }
 0x5eb   : > { %v3609_v0 = vadd.f32 %v8149_v28, %v3570_v43  ;;  %v3533_v3 = vmul.f32 %v5273_v16, %v8114_v58  ;;  %4744 = vmatprep.mubr.msk.f32.mxu0 %vm1382_vm2, %v3991_v15 }
 0x5ed   : > { %v3993_v37 = vmul.f32 %v3926_v5, %v3609_v0  ;;  %v3572_v50 = vmul.f32 %v8142_v45, %v3533_v3  ;;  %4745 = vmatmul.mubr.msk.f32.gmra.mxu0 %vm1382_vm2, %v3992_v62 }
 0x5ef   : > { %v3611_v19 = vadd.f32 %v8149_v28, %v3572_v50  ;;  %4747 = vmatprep.mubr.msk.f32.mxu0 %vm1382_vm2, %v3993_v37 }
 0x5f1   : > { %v3995_v59 = vmul.f32 %v3930_v44, %v3611_v19  ;;  %4748 = vmatmul.mubr.msk.f32.gmra.mxu0 %vm1382_vm2, %v3994_v8 }
 0x5f3   : > { %4750 = vmatprep.mubr.msk.f32.mxu0 %vm1382_vm2, %v3995_v59 }
 0x605   : > { %v3406_v58 = vpop.xlane.xlu1 %3405 }
 0x606   : > { %v3438_v39 = vmul.f32 0.03125, %v3406_v58 }
 0x608   : > { %v3470_v1 = vadd.f32 1e-05, %v3438_v39 }
 0x609   : > { %v3932_v46 = vpop.permute.xlu1 %3931 }
 0x60a   : > { %5274 = vrsqrt.f32 %v3470_v1 }
 0x617   : > { %v5275_v2 = vpop.eup %5274 }
 0x618   : > { %v3534_v42 = vmul.f32 %v5275_v2, %v8135_v52 }
 0x61a   : > { %v3573_v24 = vmul.f32 %v8142_v45, %v3534_v42 }
 0x61c   : > { %v3612_v18 = vadd.f32 %v8149_v28, %v3573_v24 }
 0x61e   : > { %v3996_v21 = vmul.f32 %v3932_v46, %v3612_v18 }
 0x620   : > { %4751 = vmatmul.mubr.msk.f32.gmra.mxu0 %vm1382_vm2, %v3996_v21 }
 0x646   : > { %v4707_v51 = vpop.f32.mrf.mxu0 }
 0x647   : > { %4323 = vst.msk [vmem:[%s8313_s23 + $0x8] sm:$0xff] %vm338_vm0, %v4707_v51 }
 0x648   : > { %v4163_v52 = vpop.f32.mrf.mxu0 }
 0x649   : > { %4322 = vst.msk [vmem:[%s8313_s23] sm:$0xff] %vm338_vm0, %v4163_v52 }
 0x64e   : > { %v4710_v45 = vpop.f32.mrf.mxu0 }
 0x64f   : > { %4325 = vst.msk [vmem:[%s8313_s23 + $0x18] sm:$0xff] %vm338_vm0, %v4710_v45 }
 0x650   : > { %v4173_v28 = vpop.f32.mrf.mxu0 }
 0x651   : > { %4324 = vst.msk [vmem:[%s8313_s23 + $0x10] sm:$0xff] %vm338_vm0, %v4173_v28 }
 0x656   : > { %v4713_v30 = vpop.f32.mrf.mxu0 }
 0x657   : > { %4327 = vst.msk [vmem:[%s8313_s23 + $0x28] sm:$0xff] %vm338_vm0, %v4713_v30 }
 0x658   : > { %v4183_v31 = vpop.f32.mrf.mxu0 }
 0x659   : > { %4326 = vst.msk [vmem:[%s8313_s23 + $0x20] sm:$0xff] %vm338_vm0, %v4183_v31 }
 0x65b   : > { %v4716_v22 = vpop.f32.mrf.mxu0 }
 0x65c   : > { %4329 = vst.msk [vmem:[%s8313_s23 + $0x38] sm:$0xff] %vm338_vm0, %v4716_v22 }
 0x65d   : > { %v4193_v7 = vpop.f32.mrf.mxu0 }
 0x65e   : > { %4328 = vst.msk [vmem:[%s8313_s23 + $0x30] sm:$0xff] %vm338_vm0, %v4193_v7 }
 0x65f   : > { %v4719_v33 = vpop.f32.mrf.mxu0 }
 0x660   : > { %4331 = vst.msk [vmem:[%s8313_s23 + $0x48] sm:$0xff] %vm338_vm0, %v4719_v33 }
 0x661   : > { %v4203_v38 = vpop.f32.mrf.mxu0 }
 0x662   : > { %4330 = vst.msk [vmem:[%s8313_s23 + $0x40] sm:$0xff] %vm338_vm0, %v4203_v38 }
 0x663   : > { %v4722_v12 = vpop.f32.mrf.mxu0 }
 0x664   : > { %4333 = vst.msk [vmem:[%s8313_s23 + $0x58] sm:$0xff] %vm338_vm0, %v4722_v12 }
 0x665   : > { %v4213_v60 = vpop.f32.mrf.mxu0 }
 0x666   : > { %4332 = vst.msk [vmem:[%s8313_s23 + $0x50] sm:$0xff] %vm338_vm0, %v4213_v60 }
 0x68b   : > { %v4725_v11 = vpop.f32.mrf.mxu0 }
 0x68c   : > { %4335 = vst.msk [vmem:[%s8313_s23 + $0x68] sm:$0xff] %vm338_vm0, %v4725_v11 }
 0x68d   : > { %v4223_v53 = vpop.f32.mrf.mxu0 }
 0x68e   : > { %4334 = vst.msk [vmem:[%s8313_s23 + $0x60] sm:$0xff] %vm338_vm0, %v4223_v53 }
 0x691   : > { %v4728_v27 = vpop.f32.mrf.mxu0 }
 0x692   : > { %4337 = vst.msk [vmem:[%s8313_s23 + $0x78] sm:$0xff] %vm338_vm0, %v4728_v27 }
 0x693   : > { %v4233_v57 = vpop.f32.mrf.mxu0 }
 0x694   : > { %4336 = vst.msk [vmem:[%s8313_s23 + $0x70] sm:$0xff] %vm338_vm0, %v4233_v57 }
 0x695   : > { %v4731_v17 = vpop.f32.mrf.mxu0 }
 0x696   : > { %4339 = vst.msk [vmem:[%s8313_s23 + $0x88] sm:$0xff] %vm338_vm0, %v4731_v17 }
 0x697   : > { %v4243_v32 = vpop.f32.mrf.mxu0 }
 0x698   : > { %4338 = vst.msk [vmem:[%s8313_s23 + $0x80] sm:$0xff] %vm338_vm0, %v4243_v32 }
 0x69c   : > { %v4734_v23 = vpop.f32.mrf.mxu0 }
 0x69d   : > { %4341 = vst.msk [vmem:[%s8313_s23 + $0x98] sm:$0xff] %vm338_vm0, %v4734_v23 }
 0x69e   : > { %v4253_v14 = vpop.f32.mrf.mxu0 }
 0x69f   : > { %4340 = vst.msk [vmem:[%s8313_s23 + $0x90] sm:$0xff] %vm338_vm0, %v4253_v14 }
 0x6a0   : > { %v4737_v26 = vpop.f32.mrf.mxu0 }
 0x6a1   : > { %4343 = vst.msk [vmem:[%s8313_s23 + $0xa8] sm:$0xff] %vm338_vm0, %v4737_v26 }
 0x6a2   : > { %v4263_v13 = vpop.f32.mrf.mxu0 }
 0x6a3   : > { %4342 = vst.msk [vmem:[%s8313_s23 + $0xa0] sm:$0xff] %vm338_vm0, %v4263_v13 }
 0x6a5   : > { %v4740_v55 = vpop.f32.mrf.mxu0 }
 0x6a6   : > { %4345 = vst.msk [vmem:[%s8313_s23 + $0xb8] sm:$0xff] %vm338_vm0, %v4740_v55 }
 0x6a7   : > { %v4273_v36 = vpop.f32.mrf.mxu0 }
 0x6a8   : > { %4344 = vst.msk [vmem:[%s8313_s23 + $0xb0] sm:$0xff] %vm338_vm0, %v4273_v36 }
 0x6a9   : > { %v4743_v9 = vpop.f32.mrf.mxu0 }
 0x6aa   : > { %4347 = vst.msk [vmem:[%s8313_s23 + $0xc8] sm:$0xff] %vm338_vm0, %v4743_v9 }
 0x6ab   : > { %v4283_v35 = vpop.f32.mrf.mxu0 }
 0x6ac   : > { %4346 = vst.msk [vmem:[%s8313_s23 + $0xc0] sm:$0xff] %vm338_vm0, %v4283_v35 }
 0x6ad   : > { %v4746_v49 = vpop.f32.mrf.mxu0 }
 0x6ae   : > { %4349 = vst.msk [vmem:[%s8313_s23 + $0xd8] sm:$0xff] %vm338_vm0, %v4746_v49 }
 0x6af   : > { %v4293_v47 = vpop.f32.mrf.mxu0 }
 0x6b0   : > { %4348 = vst.msk [vmem:[%s8313_s23 + $0xd0] sm:$0xff] %vm338_vm0, %v4293_v47 }
 0x6b1   : > { %v4749_v6 = vpop.f32.mrf.mxu0 }
 0x6b2   : > { %4351 = vst.msk [vmem:[%s8313_s23 + $0xe8] sm:$0xff] %vm338_vm0, %v4749_v6 }
 0x6b3   : > { %v4303_v56 = vpop.f32.mrf.mxu0 }
 0x6b4   : > { %4350 = vst.msk [vmem:[%s8313_s23 + $0xe0] sm:$0xff] %vm338_vm0, %v4303_v56 }
 0x6e0   : > { %v4752_v34 = vpop.f32.mrf.mxu0 }
 0x6e1   : > { %4353 = vst.msk [vmem:[%s8313_s23 + $0xf8] sm:$0xff] %vm338_vm0, %v4752_v34 }
 0x6e2   : > { %v4313_v48 = vpop.f32.mrf.mxu0 }
 0x6e3   : > { %4352 = vst.msk [vmem:[%s8313_s23 + $0xf0] sm:$0xff] %vm338_vm0, %v4313_v48 }
 0x6e4   : > { %5291 = shalt.err (!%p5288_p3)
}
 0x6e5   : > { %s5292_s20 = scalar_lea.hbm %s8380_s12, 4096  ;;  %s5296_s23 = scalar_lea.hbm %s8438_s8, 8192 }
 0x6e6   : > { %p5293_p4 = scmp.ne.s32.totalorder %s8380_s12, %s5292_s20  ;;  %p5297_p9 = scmp.lt.s32.totalorder %s8380_s12, %s8438_s8 }
 0x6e7   : > { %p5298_p10 = scmp.lt.s32.totalorder %s5296_s23, %s5292_s20 }
 0x6e8   : > { %p5294_p7 = pnand %p5293_p4, %p5428_p5 }
 0x6e9   : > { %p5299_p11 = por %p5298_p10, %p5297_p9 }
 0x6ea   : > { %p5295_p8 = pneg %p5294_p7 }
 0x6ec   : > { %p5300_p12 = pnand %p5299_p11, %p5295_p8 }
 0x6ee   : > { %5303 = shalt.err (!%p5300_p12)
}
 0x6ef   : > { %s5343_s10 = smov 128   ;;  %s5344_s9 = smov 8  }
 0x6f0   : > { %4817 = dma.vmem_to_hbm [thread:$0]  (%p5428_p5), %s8382_s25, 4096, %s8380_s12, %s8390_s13, %s5343_s10, %s5343_s10, %s5344_s9  }
 0x6f1 PF: > { %p4823_p13 = scmp.ge.s32.totalorder %s5338_s30, 2  ;;  %s4383_s17 = sand.u32 1, %s5326_s27  }
 0x6f2   : > { %s4384_s18 = scalar_lea.sflag [#allocation5], %s4383_s17 }
 0x6f3   : > { %p4820_p0 = pnand %p4823_p13, %p5432_p6 }
 0x6f5   : > { %p4821_p1 = pneg %p4820_p0 }
 0x6f7   : > { %5321 = dma.done.wait (%p4821_p1), %s4384_s18, 4096  }
 0x6f8   : > { %5323 = vsyncadd (%p4821_p1), %s4384_s18, 4294963200  ;;  %p18_p2 = scmp.ge.s32.totalorder %s5415_s11, 4   ;;  %s8639_s27 = smov %s5330_s28 }
 0x6f9   : > { %s8640_s28 = smov %s5334_s29  ;;  %s8641_s29 = smov %s5426_s14 }
 0x6fa   : > { %s8642_s30 = smov %s5415_s11  ;;  %20 = sbr.rel (!%p18_p2) target bundleno = 3 (0x3), region = 96 }
 0x6ff   :  { %4389 = vsyncpa [#allocation5], 1 }
 0x700   :  { %4391 = vsyncpa [#allocation5 + $0x1], 1 }

</bundles_post_ra>
